<compile_context>
chip_gen: v7x
topology: tpu7x:2x2x1
jax: 0.10.0
libtpu: 0.0.40
codegen_flags: <defaults>
</compile_context>

<pallas_src>
import functools

import jax
import jax.numpy as jnp
from jax.experimental import pallas as pl
from jax.experimental.pallas import tpu as pltpu


def _heads_kernel(x_ref, w_ref, o_ref, *, n_heads, head_size):
    # x_ref: (Bb, T, C)   w_ref: (C, 3*nH*H)   o_ref: (Bb, T, nH*H)
    Bb, T, C = x_ref.shape
    H = head_size
    nH = n_heads
    HH = nH * H
    cd = x_ref.dtype                       # compute dtype for MXU operands
    approx_recip = cd != jnp.float32       # exact division for f32 validation path

    # ---- fused K/Q/V projection for ALL heads: one MXU matmul, lane-dense N ----
    x2d = x_ref[...].reshape(Bb * T, C)
    kqv = jnp.dot(x2d, w_ref[...], preferred_element_type=jnp.float32)  # (Bb*T, 3*HH) f32

    # ---- causal mask, shared across batch and heads ----
    row = jax.lax.broadcasted_iota(jnp.int32, (T, T), 0)
    col = jax.lax.broadcasted_iota(jnp.int32, (T, T), 1)
    causal = (row >= col)[None, :, :]                                    # (1, T, T)

    # ---- per-head attention (statically unrolled; nH is small) ----
    # TODO(synk): flash-style KV-tiled restructure for production T (see header).
    for n in range(nH):
        k = kqv[:, 0 * HH + n * H: 0 * HH + (n + 1) * H].reshape(Bb, T, H)
        q = kqv[:, 1 * HH + n * H: 1 * HH + (n + 1) * H].reshape(Bb, T, H)
        v = kqv[:, 2 * HH + n * H: 2 * HH + (n + 1) * H].reshape(Bb, T, H)

        # C**-0.5 scale is pre-folded into the Q weight columns (no '* scale' here).
        wei = jnp.einsum('bqh,bkh->bqk', q.astype(cd), k.astype(cd),
                         preferred_element_type=jnp.float32)             # (Bb, T, T) f32
        wei = jnp.where(causal, wei, -jnp.inf)

        # softmax in f32; normalization folded into the output scaling
        m = jnp.max(wei, axis=-1, keepdims=True)
        p = jnp.exp(wei - m)                                             # (Bb, T, T) f32
        denom = jnp.sum(p, axis=-1, keepdims=True)                       # (Bb, T, 1)

        # TODO(synk): nn.Dropout(0.2) is identity in eval mode; training-mode dropout
        # (pltpu.prng_seed + pltpu.prng_random_bits mask on `p`) is not implemented.

        out = jnp.einsum('bqk,bkh->bqh', p.astype(cd), v.astype(cd),
                         preferred_element_type=jnp.float32)             # (Bb, T, H) f32

        if approx_recip:
            inv = pl.reciprocal(denom, approx=True)   # EUP slot; fine under bf16 noise
        else:
            inv = 1.0 / denom                          # exact for the f32 path
        o_ref[:, :, n * H:(n + 1) * H] = (out * inv).astype(o_ref.dtype)


def _pick_batch_block(B, T, target_rows=1024):
    """Largest divisor of B with bb*T <= target_rows (projection rows per grid step).
    No forced multi-step grid: on single-TC v5e/v6e an extra step is pure overhead.
    TODO(synk): on v7x prefer an even number of grid steps (megacore sharding) once
    per-step work exceeds a few microseconds of compute."""
    divisors = [d for d in range(1, B + 1) if B % d == 0]
    fitting = [d for d in divisors if d * T <= target_rows]
    return max(fitting) if fitting else 1


def fuse_head_weights(wk, wq, wv):
    """wk/wq/wv: (n_heads, C, H) pre-transposed nn.Linear(C, H, bias=False) weights.
    Returns (C, 3*n_heads*H) fused weight [K | Q | V] with the reference module's
    C**-0.5 scale folded into the Q columns (one-time transform outside the kernel)."""
    nH, C, H = wk.shape
    scale = float(C) ** -0.5               # matches the reference quirk: C ** (-0.5)

    def cols(w):
        return jnp.transpose(w, (1, 0, 2)).reshape(C, nH * H)

    return jnp.concatenate([cols(wk), cols(wq * scale), cols(wv)], axis=1)


def heads_forward(x, wk, wq, wv, *, compute_dtype=jnp.float32, batch_block=None):
    """x: (B, T, C) f32; wk/wq/wv: (n_heads, C, H) f32 (pre-transposed nn.Linear
    weights).  Returns (B, T, n_heads*H) f32 — n_heads independent causal-attention
    Heads, outputs concatenated along the last dim (n_heads=1 == the PyTorch Head)."""
    B, T, C = x.shape
    nH, _, H = wk.shape
    HH = nH * H

    w_kqv = fuse_head_weights(wk, wq, wv)

    # Cast at the HBM boundary: halves the x stream / VMEM footprint for bf16 and
    # removes per-step VPU input casts inside the kernel.
    x_in = x.astype(compute_dtype)
    w_in = w_kqv.astype(compute_dtype)

    bb = batch_block if batch_block is not None else _pick_batch_block(B, T)
    assert B % bb == 0, "batch block must divide B"
    grid = (B // bb,)

    bytes_accessed = (x_in.size * x_in.dtype.itemsize
                      + w_in.size * w_in.dtype.itemsize
                      + B * T * HH * 4)
    cost = pl.CostEstimate(
        flops=2 * B * T * C * 3 * HH + 4 * B * nH * T * T * H,
        transcendentals=B * nH * T * T,
        bytes_accessed=bytes_accessed,
    )

    kernel = functools.partial(_heads_kernel, n_heads=nH, head_size=H)

    return pl.pallas_call(
        kernel,
        out_shape=jax.ShapeDtypeStruct((B, T, HH), jnp.float32),
        grid=grid,
        in_specs=[
            pl.BlockSpec((bb, T, C), lambda b: (b, 0, 0)),
            pl.BlockSpec((C, 3 * HH), lambda b: (0, 0)),
        ],
        out_specs=pl.BlockSpec((bb, T, HH), lambda b: (b, 0, 0)),
        compiler_params=pltpu.CompilerParams(
            dimension_semantics=("parallel",),
            vmem_limit_bytes=32 * 1024 * 1024,
        ),
        cost_estimate=cost,
    )(x_in, w_in)


def reference_head(x, wk, wq, wv):
    """Pure-JAX reference of the PyTorch Head.forward (eval mode), highest precision."""
    B, T, C = x.shape
    hp = jax.lax.Precision.HIGHEST
    k = jnp.einsum('btc,ch->bth', x, wk, precision=hp)
    q = jnp.einsum('btc,ch->bth', x, wq, precision=hp)
    v = jnp.einsum('btc,ch->bth', x, wv, precision=hp)
    wei = jnp.einsum('bqh,bkh->bqk', q, k, precision=hp) * (C ** -0.5)
    tril = jnp.tril(jnp.ones((T, T), dtype=jnp.float32))
    wei = jnp.where(tril == 0, -jnp.inf, wei)
    wei = jax.nn.softmax(wei, axis=-1)
    return jnp.einsum('bqk,bkh->bqh', wei, v, precision=hp)


if __name__ == "__main__":
    # Pin matmul precision so the f32 reference and the in-kernel MXU matmuls are
    # compared apples-to-apples.
    jax.config.update("jax_default_matmul_precision", "highest")

    # Small shapes consistent with the module: block_size T=8; n_embd scaled down to
    # C=64; head_size H=16 with 8 fused heads so the output last dim is 128 lanes.
    B, T, C, H, NH = 2, 8, 64, 16, 8

    key = jax.random.PRNGKey(0)
    kx, kk, kq, kv = jax.random.split(key, 4)
    x = jax.random.normal(kx, (B, T, C), dtype=jnp.float32)
    # nn.Linear(C, H, bias=False) weights, stored pre-transposed as (C, H), per head.
    wk = jax.random.normal(kk, (NH, C, H), dtype=jnp.float32) * (C ** -0.5)
    wq = jax.random.normal(kq, (NH, C, H), dtype=jnp.float32) * (C ** -0.5)
    wv = jax.random.normal(kv, (NH, C, H), dtype=jnp.float32) * (C ** -0.5)

    # Per-head reference (exact single-Head module forward, concatenated over heads).
    ref = jnp.concatenate(
        [reference_head(x, wk[n], wq[n], wv[n]) for n in range(NH)], axis=-1)

    # f32 matmul path (exact normalization; validation tolerance well above f32 noise).
    out = jax.block_until_ready(heads_forward(x, wk, wq, wv))
    assert out.shape == (B, T, NH * H)
    assert jnp.allclose(out, ref, atol=5e-3, rtol=5e-3), "f32 kernel mismatch vs reference"

    # bf16 MXU-operand path (f32 accumulation + f32 softmax) — the MXU win on v6e/v7x.
    out_bf16 = jax.block_until_ready(
        heads_forward(x, wk, wq, wv, compute_dtype=jnp.bfloat16))
    assert jnp.allclose(out_bf16, ref, atol=5e-2, rtol=5e-2), "bf16 kernel mismatch vs reference"

    # n_heads=1 recovers the exact single-head `Head` module API/semantics.
    out1 = jax.block_until_ready(heads_forward(x, wk[:1], wq[:1], wv[:1]))
    ref1 = reference_head(x, wk[0], wq[0], wv[0])
    assert out1.shape == (B, T, H)
    assert jnp.allclose(out1, ref1, atol=5e-3, rtol=5e-3), "single-head kernel mismatch"

    print("KERNEL_OK")
</pallas_src>

<mosaic_0001>
module attributes {stable_mosaic.version = 11 : i64} {
  func.func @_heads_kernel(%arg0: i32, %arg1: memref<2x8x64xf32, #tpu.memory_space<vmem>>, %arg2: memref<64x384xf32, #tpu.memory_space<vmem>>, %arg3: memref<2x8x128xf32, #tpu.memory_space<vmem>>) attributes {dimension_semantics = [#tpu.dimension_semantics<parallel>], iteration_bounds = array<i64: 1>, scalar_prefetch = 0 : i64, scratch_operands = 0 : i64, tpu.core_type = #tpu.core_type<tc>, window_params = [{transform_indices = @transform_0, window_bounds = array<i64: 2, 8, 64>}, {pipeline_mode = #tpu.pipeline_mode<synchronous>, transform_indices = @transform_1, window_bounds = array<i64: 64, 384>}, {transform_indices = @transform_2, window_bounds = array<i64: 2, 8, 128>}]} {
    %c0 = arith.constant 0 : index
    %c0_0 = arith.constant 0 : index
    %c0_1 = arith.constant 0 : index
    %0 = vector.load %arg1[%c0, %c0_0, %c0_1] : memref<2x8x64xf32, #tpu.memory_space<vmem>>, vector<2x8x64xf32>
    %1 = vector.shape_cast %0 : vector<2x8x64xf32> to vector<16x64xf32>
    %c0_2 = arith.constant 0 : index
    %c0_3 = arith.constant 0 : index
    %2 = vector.load %arg2[%c0_2, %c0_3] : memref<64x384xf32, #tpu.memory_space<vmem>>, vector<64x384xf32>
    %cst = arith.constant dense<0.000000e+00> : vector<16x384xf32>
    %3 = tpu.matmul %1, %2, %cst {dimension_numbers = #tpu.dot_dimension_numbers<[1], [0], [0], [1], [0, 0, 1, 1], [], []>, precision = #tpu.contract_precision<fp32>} : vector<16x64xf32>, vector<64x384xf32>, vector<16x384xf32> -> vector<16x384xf32>
    %4 = tpu.iota {dimensions = array<i32: 0>} : vector<8x8xi32>
    %5 = tpu.iota {dimensions = array<i32: 1>} : vector<8x8xi32>
    %6 = arith.cmpi sge, %4, %5 : vector<8x8xi32>
    %7 = vector.shape_cast %6 : vector<8x8xi1> to vector<1x8x8xi1>
    %8 = vector.extract_strided_slice %3 {offsets = [0, 0], sizes = [16, 16], strides = [1, 1]} : vector<16x384xf32> to vector<16x16xf32>
    %9 = vector.shape_cast %8 : vector<16x16xf32> to vector<2x8x16xf32>
    %10 = vector.extract_strided_slice %3 {offsets = [0, 128], sizes = [16, 16], strides = [1, 1]} : vector<16x384xf32> to vector<16x16xf32>
    %11 = vector.shape_cast %10 : vector<16x16xf32> to vector<2x8x16xf32>
    %12 = vector.extract_strided_slice %3 {offsets = [0, 256], sizes = [16, 16], strides = [1, 1]} : vector<16x384xf32> to vector<16x16xf32>
    %13 = vector.shape_cast %12 : vector<16x16xf32> to vector<2x8x16xf32>
    "tpu.trace_start"() <{level = 10 : i32, message = "bqh,bkh->bqk"}> : () -> ()
    %cst_4 = arith.constant dense<0.000000e+00> : vector<2x8x8xf32>
    %14 = tpu.matmul %11, %9, %cst_4 {dimension_numbers = #tpu.dot_dimension_numbers<[2], [2], [1], [1], [0, 0, 0, 1, 1, 1], [0], [0]>, precision = #tpu.contract_precision<fp32>} : vector<2x8x16xf32>, vector<2x8x16xf32>, vector<2x8x8xf32> -> vector<2x8x8xf32>
    %cst_5 = arith.constant 0xFF800000 : f32
    "tpu.trace_stop"() : () -> ()
    %15 = vector.shape_cast %7 : vector<1x8x8xi1> to vector<1x8x8xi1>
    %16 = vector.broadcast %15 : vector<1x8x8xi1> to vector<2x8x8xi1>
    %17 = vector.broadcast %cst_5 : f32 to vector<2x8x8xf32>
    %18 = arith.select %16, %14, %17 : vector<2x8x8xi1>, vector<2x8x8xf32>
    %cst_6 = arith.constant dense<0xFF800000> : vector<2x8xf32>
    %19 = vector.multi_reduction <maximumf>, %18, %cst_6 [2] : vector<2x8x8xf32> to vector<2x8xf32>
    %20 = vector.shape_cast %19 : vector<2x8xf32> to vector<2x8x1xf32>
    %21 = vector.broadcast %20 : vector<2x8x1xf32> to vector<2x8x8xf32>
    %22 = arith.subf %18, %21 : vector<2x8x8xf32>
    %23 = math.exp %22 : vector<2x8x8xf32>
    %cst_7 = arith.constant dense<0.000000e+00> : vector<2x8xf32>
    %24 = vector.multi_reduction <add>, %23, %cst_7 [2] : vector<2x8x8xf32> to vector<2x8xf32>
    %25 = vector.shape_cast %24 : vector<2x8xf32> to vector<2x8x1xf32>
    "tpu.trace_start"() <{level = 10 : i32, message = "bqk,bkh->bqh"}> : () -> ()
    %cst_8 = arith.constant dense<0.000000e+00> : vector<2x8x16xf32>
    %26 = tpu.matmul %23, %13, %cst_8 {dimension_numbers = #tpu.dot_dimension_numbers<[2], [1], [1], [2], [0, 0, 0, 1, 1, 2], [0], [0]>, precision = #tpu.contract_precision<fp32>} : vector<2x8x8xf32>, vector<2x8x16xf32>, vector<2x8x16xf32> -> vector<2x8x16xf32>
    "tpu.trace_stop"() : () -> ()
    %cst_9 = arith.constant 1.000000e+00 : f32
    %27 = vector.broadcast %cst_9 : f32 to vector<2x8x1xf32>
    %28 = arith.divf %27, %25 : vector<2x8x1xf32>
    %29 = vector.broadcast %28 : vector<2x8x1xf32> to vector<2x8x16xf32>
    %30 = arith.mulf %26, %29 : vector<2x8x16xf32>
    %c0_10 = arith.constant 0 : index
    %c0_11 = arith.constant 0 : index
    %c0_12 = arith.constant 0 : index
    %31 = vector.load %arg3[%c0_10, %c0_11, %c0_12] : memref<2x8x128xf32, #tpu.memory_space<vmem>>, vector<2x8x16xf32>
    tpu.vector_store %arg3[%c0_10, %c0_11, %c0_12], %30 {strides = array<i32>} : memref<2x8x128xf32, #tpu.memory_space<vmem>>, vector<2x8x16xf32>,
    %32 = vector.extract_strided_slice %3 {offsets = [0, 16], sizes = [16, 16], strides = [1, 1]} : vector<16x384xf32> to vector<16x16xf32>
    %33 = vector.shape_cast %32 : vector<16x16xf32> to vector<2x8x16xf32>
    %34 = vector.extract_strided_slice %3 {offsets = [0, 144], sizes = [16, 16], strides = [1, 1]} : vector<16x384xf32> to vector<16x16xf32>
    %35 = vector.shape_cast %34 : vector<16x16xf32> to vector<2x8x16xf32>
    %36 = vector.extract_strided_slice %3 {offsets = [0, 272], sizes = [16, 16], strides = [1, 1]} : vector<16x384xf32> to vector<16x16xf32>
    %37 = vector.shape_cast %36 : vector<16x16xf32> to vector<2x8x16xf32>
    "tpu.trace_start"() <{level = 10 : i32, message = "bqh,bkh->bqk"}> : () -> ()
    %cst_13 = arith.constant dense<0.000000e+00> : vector<2x8x8xf32>
    %38 = tpu.matmul %35, %33, %cst_13 {dimension_numbers = #tpu.dot_dimension_numbers<[2], [2], [1], [1], [0, 0, 0, 1, 1, 1], [0], [0]>, precision = #tpu.contract_precision<fp32>} : vector<2x8x16xf32>, vector<2x8x16xf32>, vector<2x8x8xf32> -> vector<2x8x8xf32>
    %cst_14 = arith.constant 0xFF800000 : f32
    "tpu.trace_stop"() : () -> ()
    %39 = vector.shape_cast %7 : vector<1x8x8xi1> to vector<1x8x8xi1>
    %40 = vector.broadcast %39 : vector<1x8x8xi1> to vector<2x8x8xi1>
    %41 = vector.broadcast %cst_14 : f32 to vector<2x8x8xf32>
    %42 = arith.select %40, %38, %41 : vector<2x8x8xi1>, vector<2x8x8xf32>
    %cst_15 = arith.constant dense<0xFF800000> : vector<2x8xf32>
    %43 = vector.multi_reduction <maximumf>, %42, %cst_15 [2] : vector<2x8x8xf32> to vector<2x8xf32>
    %44 = vector.shape_cast %43 : vector<2x8xf32> to vector<2x8x1xf32>
    %45 = vector.broadcast %44 : vector<2x8x1xf32> to vector<2x8x8xf32>
    %46 = arith.subf %42, %45 : vector<2x8x8xf32>
    %47 = math.exp %46 : vector<2x8x8xf32>
    %cst_16 = arith.constant dense<0.000000e+00> : vector<2x8xf32>
    %48 = vector.multi_reduction <add>, %47, %cst_16 [2] : vector<2x8x8xf32> to vector<2x8xf32>
    %49 = vector.shape_cast %48 : vector<2x8xf32> to vector<2x8x1xf32>
    "tpu.trace_start"() <{level = 10 : i32, message = "bqk,bkh->bqh"}> : () -> ()
    %cst_17 = arith.constant dense<0.000000e+00> : vector<2x8x16xf32>
    %50 = tpu.matmul %47, %37, %cst_17 {dimension_numbers = #tpu.dot_dimension_numbers<[2], [1], [1], [2], [0, 0, 0, 1, 1, 2], [0], [0]>, precision = #tpu.contract_precision<fp32>} : vector<2x8x8xf32>, vector<2x8x16xf32>, vector<2x8x16xf32> -> vector<2x8x16xf32>
    "tpu.trace_stop"() : () -> ()
    %cst_18 = arith.constant 1.000000e+00 : f32
    %51 = vector.broadcast %cst_18 : f32 to vector<2x8x1xf32>
    %52 = arith.divf %51, %49 : vector<2x8x1xf32>
    %53 = vector.broadcast %52 : vector<2x8x1xf32> to vector<2x8x16xf32>
    %54 = arith.mulf %50, %53 : vector<2x8x16xf32>
    %c0_19 = arith.constant 0 : index
    %c0_20 = arith.constant 0 : index
    %c16 = arith.constant 16 : index
    %55 = vector.load %arg3[%c0_19, %c0_20, %c16] : memref<2x8x128xf32, #tpu.memory_space<vmem>>, vector<2x8x16xf32>
    tpu.vector_store %arg3[%c0_19, %c0_20, %c16], %54 {strides = array<i32>} : memref<2x8x128xf32, #tpu.memory_space<vmem>>, vector<2x8x16xf32>,
    %56 = vector.extract_strided_slice %3 {offsets = [0, 32], sizes = [16, 16], strides = [1, 1]} : vector<16x384xf32> to vector<16x16xf32>
    %57 = vector.shape_cast %56 : vector<16x16xf32> to vector<2x8x16xf32>
    %58 = vector.extract_strided_slice %3 {offsets = [0, 160], sizes = [16, 16], strides = [1, 1]} : vector<16x384xf32> to vector<16x16xf32>
    %59 = vector.shape_cast %58 : vector<16x16xf32> to vector<2x8x16xf32>
    %60 = vector.extract_strided_slice %3 {offsets = [0, 288], sizes = [16, 16], strides = [1, 1]} : vector<16x384xf32> to vector<16x16xf32>
    %61 = vector.shape_cast %60 : vector<16x16xf32> to vector<2x8x16xf32>
    "tpu.trace_start"() <{level = 10 : i32, message = "bqh,bkh->bqk"}> : () -> ()
    %cst_21 = arith.constant dense<0.000000e+00> : vector<2x8x8xf32>
    %62 = tpu.matmul %59, %57, %cst_21 {dimension_numbers = #tpu.dot_dimension_numbers<[2], [2], [1], [1], [0, 0, 0, 1, 1, 1], [0], [0]>, precision = #tpu.contract_precision<fp32>} : vector<2x8x16xf32>, vector<2x8x16xf32>, vector<2x8x8xf32> -> vector<2x8x8xf32>
    %cst_22 = arith.constant 0xFF800000 : f32
    "tpu.trace_stop"() : () -> ()
    %63 = vector.shape_cast %7 : vector<1x8x8xi1> to vector<1x8x8xi1>
    %64 = vector.broadcast %63 : vector<1x8x8xi1> to vector<2x8x8xi1>
    %65 = vector.broadcast %cst_22 : f32 to vector<2x8x8xf32>
    %66 = arith.select %64, %62, %65 : vector<2x8x8xi1>, vector<2x8x8xf32>
    %cst_23 = arith.constant dense<0xFF800000> : vector<2x8xf32>
    %67 = vector.multi_reduction <maximumf>, %66, %cst_23 [2] : vector<2x8x8xf32> to vector<2x8xf32>
    %68 = vector.shape_cast %67 : vector<2x8xf32> to vector<2x8x1xf32>
    %69 = vector.broadcast %68 : vector<2x8x1xf32> to vector<2x8x8xf32>
    %70 = arith.subf %66, %69 : vector<2x8x8xf32>
    %71 = math.exp %70 : vector<2x8x8xf32>
    %cst_24 = arith.constant dense<0.000000e+00> : vector<2x8xf32>
    %72 = vector.multi_reduction <add>, %71, %cst_24 [2] : vector<2x8x8xf32> to vector<2x8xf32>
    %73 = vector.shape_cast %72 : vector<2x8xf32> to vector<2x8x1xf32>
    "tpu.trace_start"() <{level = 10 : i32, message = "bqk,bkh->bqh"}> : () -> ()
    %cst_25 = arith.constant dense<0.000000e+00> : vector<2x8x16xf32>
    %74 = tpu.matmul %71, %61, %cst_25 {dimension_numbers = #tpu.dot_dimension_numbers<[2], [1], [1], [2], [0, 0, 0, 1, 1, 2], [0], [0]>, precision = #tpu.contract_precision<fp32>} : vector<2x8x8xf32>, vector<2x8x16xf32>, vector<2x8x16xf32> -> vector<2x8x16xf32>
    "tpu.trace_stop"() : () -> ()
    %cst_26 = arith.constant 1.000000e+00 : f32
    %75 = vector.broadcast %cst_26 : f32 to vector<2x8x1xf32>
    %76 = arith.divf %75, %73 : vector<2x8x1xf32>
    %77 = vector.broadcast %76 : vector<2x8x1xf32> to vector<2x8x16xf32>
    %78 = arith.mulf %74, %77 : vector<2x8x16xf32>
    %c0_27 = arith.constant 0 : index
    %c0_28 = arith.constant 0 : index
    %c32 = arith.constant 32 : index
    %79 = vector.load %arg3[%c0_27, %c0_28, %c32] : memref<2x8x128xf32, #tpu.memory_space<vmem>>, vector<2x8x16xf32>
    tpu.vector_store %arg3[%c0_27, %c0_28, %c32], %78 {strides = array<i32>} : memref<2x8x128xf32, #tpu.memory_space<vmem>>, vector<2x8x16xf32>,
    %80 = vector.extract_strided_slice %3 {offsets = [0, 48], sizes = [16, 16], strides = [1, 1]} : vector<16x384xf32> to vector<16x16xf32>
    %81 = vector.shape_cast %80 : vector<16x16xf32> to vector<2x8x16xf32>
    %82 = vector.extract_strided_slice %3 {offsets = [0, 176], sizes = [16, 16], strides = [1, 1]} : vector<16x384xf32> to vector<16x16xf32>
    %83 = vector.shape_cast %82 : vector<16x16xf32> to vector<2x8x16xf32>
    %84 = vector.extract_strided_slice %3 {offsets = [0, 304], sizes = [16, 16], strides = [1, 1]} : vector<16x384xf32> to vector<16x16xf32>
    %85 = vector.shape_cast %84 : vector<16x16xf32> to vector<2x8x16xf32>
    "tpu.trace_start"() <{level = 10 : i32, message = "bqh,bkh->bqk"}> : () -> ()
    %cst_29 = arith.constant dense<0.000000e+00> : vector<2x8x8xf32>
    %86 = tpu.matmul %83, %81, %cst_29 {dimension_numbers = #tpu.dot_dimension_numbers<[2], [2], [1], [1], [0, 0, 0, 1, 1, 1], [0], [0]>, precision = #tpu.contract_precision<fp32>} : vector<2x8x16xf32>, vector<2x8x16xf32>, vector<2x8x8xf32> -> vector<2x8x8xf32>
    %cst_30 = arith.constant 0xFF800000 : f32
    "tpu.trace_stop"() : () -> ()
    %87 = vector.shape_cast %7 : vector<1x8x8xi1> to vector<1x8x8xi1>
    %88 = vector.broadcast %87 : vector<1x8x8xi1> to vector<2x8x8xi1>
    %89 = vector.broadcast %cst_30 : f32 to vector<2x8x8xf32>
    %90 = arith.select %88, %86, %89 : vector<2x8x8xi1>, vector<2x8x8xf32>
    %cst_31 = arith.constant dense<0xFF800000> : vector<2x8xf32>
    %91 = vector.multi_reduction <maximumf>, %90, %cst_31 [2] : vector<2x8x8xf32> to vector<2x8xf32>
    %92 = vector.shape_cast %91 : vector<2x8xf32> to vector<2x8x1xf32>
    %93 = vector.broadcast %92 : vector<2x8x1xf32> to vector<2x8x8xf32>
    %94 = arith.subf %90, %93 : vector<2x8x8xf32>
    %95 = math.exp %94 : vector<2x8x8xf32>
    %cst_32 = arith.constant dense<0.000000e+00> : vector<2x8xf32>
    %96 = vector.multi_reduction <add>, %95, %cst_32 [2] : vector<2x8x8xf32> to vector<2x8xf32>
    %97 = vector.shape_cast %96 : vector<2x8xf32> to vector<2x8x1xf32>
    "tpu.trace_start"() <{level = 10 : i32, message = "bqk,bkh->bqh"}> : () -> ()
    %cst_33 = arith.constant dense<0.000000e+00> : vector<2x8x16xf32>
    %98 = tpu.matmul %95, %85, %cst_33 {dimension_numbers = #tpu.dot_dimension_numbers<[2], [1], [1], [2], [0, 0, 0, 1, 1, 2], [0], [0]>, precision = #tpu.contract_precision<fp32>} : vector<2x8x8xf32>, vector<2x8x16xf32>, vector<2x8x16xf32> -> vector<2x8x16xf32>
    "tpu.trace_stop"() : () -> ()
    %cst_34 = arith.constant 1.000000e+00 : f32
    %99 = vector.broadcast %cst_34 : f32 to vector<2x8x1xf32>
    %100 = arith.divf %99, %97 : vector<2x8x1xf32>
    %101 = vector.broadcast %100 : vector<2x8x1xf32> to vector<2x8x16xf32>
    %102 = arith.mulf %98, %101 : vector<2x8x16xf32>
    %c0_35 = arith.constant 0 : index
    %c0_36 = arith.constant 0 : index
    %c48 = arith.constant 48 : index
    %103 = vector.load %arg3[%c0_35, %c0_36, %c48] : memref<2x8x128xf32, #tpu.memory_space<vmem>>, vector<2x8x16xf32>
    tpu.vector_store %arg3[%c0_35, %c0_36, %c48], %102 {strides = array<i32>} : memref<2x8x128xf32, #tpu.memory_space<vmem>>, vector<2x8x16xf32>,
    %104 = vector.extract_strided_slice %3 {offsets = [0, 64], sizes = [16, 16], strides = [1, 1]} : vector<16x384xf32> to vector<16x16xf32>
    %105 = vector.shape_cast %104 : vector<16x16xf32> to vector<2x8x16xf32>
    %106 = vector.extract_strided_slice %3 {offsets = [0, 192], sizes = [16, 16], strides = [1, 1]} : vector<16x384xf32> to vector<16x16xf32>
    %107 = vector.shape_cast %106 : vector<16x16xf32> to vector<2x8x16xf32>
    %108 = vector.extract_strided_slice %3 {offsets = [0, 320], sizes = [16, 16], strides = [1, 1]} : vector<16x384xf32> to vector<16x16xf32>
    %109 = vector.shape_cast %108 : vector<16x16xf32> to vector<2x8x16xf32>
    "tpu.trace_start"() <{level = 10 : i32, message = "bqh,bkh->bqk"}> : () -> ()
    %cst_37 = arith.constant dense<0.000000e+00> : vector<2x8x8xf32>
    %110 = tpu.matmul %107, %105, %cst_37 {dimension_numbers = #tpu.dot_dimension_numbers<[2], [2], [1], [1], [0, 0, 0, 1, 1, 1], [0], [0]>, precision = #tpu.contract_precision<fp32>} : vector<2x8x16xf32>, vector<2x8x16xf32>, vector<2x8x8xf32> -> vector<2x8x8xf32>
    %cst_38 = arith.constant 0xFF800000 : f32
    "tpu.trace_stop"() : () -> ()
    %111 = vector.shape_cast %7 : vector<1x8x8xi1> to vector<1x8x8xi1>
    %112 = vector.broadcast %111 : vector<1x8x8xi1> to vector<2x8x8xi1>
    %113 = vector.broadcast %cst_38 : f32 to vector<2x8x8xf32>
    %114 = arith.select %112, %110, %113 : vector<2x8x8xi1>, vector<2x8x8xf32>
    %cst_39 = arith.constant dense<0xFF800000> : vector<2x8xf32>
    %115 = vector.multi_reduction <maximumf>, %114, %cst_39 [2] : vector<2x8x8xf32> to vector<2x8xf32>
    %116 = vector.shape_cast %115 : vector<2x8xf32> to vector<2x8x1xf32>
    %117 = vector.broadcast %116 : vector<2x8x1xf32> to vector<2x8x8xf32>
    %118 = arith.subf %114, %117 : vector<2x8x8xf32>
    %119 = math.exp %118 : vector<2x8x8xf32>
    %cst_40 = arith.constant dense<0.000000e+00> : vector<2x8xf32>
    %120 = vector.multi_reduction <add>, %119, %cst_40 [2] : vector<2x8x8xf32> to vector<2x8xf32>
    %121 = vector.shape_cast %120 : vector<2x8xf32> to vector<2x8x1xf32>
    "tpu.trace_start"() <{level = 10 : i32, message = "bqk,bkh->bqh"}> : () -> ()
    %cst_41 = arith.constant dense<0.000000e+00> : vector<2x8x16xf32>
    %122 = tpu.matmul %119, %109, %cst_41 {dimension_numbers = #tpu.dot_dimension_numbers<[2], [1], [1], [2], [0, 0, 0, 1, 1, 2], [0], [0]>, precision = #tpu.contract_precision<fp32>} : vector<2x8x8xf32>, vector<2x8x16xf32>, vector<2x8x16xf32> -> vector<2x8x16xf32>
    "tpu.trace_stop"() : () -> ()
    %cst_42 = arith.constant 1.000000e+00 : f32
    %123 = vector.broadcast %cst_42 : f32 to vector<2x8x1xf32>
    %124 = arith.divf %123, %121 : vector<2x8x1xf32>
    %125 = vector.broadcast %124 : vector<2x8x1xf32> to vector<2x8x16xf32>
    %126 = arith.mulf %122, %125 : vector<2x8x16xf32>
    %c0_43 = arith.constant 0 : index
    %c0_44 = arith.constant 0 : index
    %c64 = arith.constant 64 : index
    %127 = vector.load %arg3[%c0_43, %c0_44, %c64] : memref<2x8x128xf32, #tpu.memory_space<vmem>>, vector<2x8x16xf32>
    tpu.vector_store %arg3[%c0_43, %c0_44, %c64], %126 {strides = array<i32>} : memref<2x8x128xf32, #tpu.memory_space<vmem>>, vector<2x8x16xf32>,
    %128 = vector.extract_strided_slice %3 {offsets = [0, 80], sizes = [16, 16], strides = [1, 1]} : vector<16x384xf32> to vector<16x16xf32>
    %129 = vector.shape_cast %128 : vector<16x16xf32> to vector<2x8x16xf32>
    %130 = vector.extract_strided_slice %3 {offsets = [0, 208], sizes = [16, 16], strides = [1, 1]} : vector<16x384xf32> to vector<16x16xf32>
    %131 = vector.shape_cast %130 : vector<16x16xf32> to vector<2x8x16xf32>
    %132 = vector.extract_strided_slice %3 {offsets = [0, 336], sizes = [16, 16], strides = [1, 1]} : vector<16x384xf32> to vector<16x16xf32>
    %133 = vector.shape_cast %132 : vector<16x16xf32> to vector<2x8x16xf32>
    "tpu.trace_start"() <{level = 10 : i32, message = "bqh,bkh->bqk"}> : () -> ()
    %cst_45 = arith.constant dense<0.000000e+00> : vector<2x8x8xf32>
    %134 = tpu.matmul %131, %129, %cst_45 {dimension_numbers = #tpu.dot_dimension_numbers<[2], [2], [1], [1], [0, 0, 0, 1, 1, 1], [0], [0]>, precision = #tpu.contract_precision<fp32>} : vector<2x8x16xf32>, vector<2x8x16xf32>, vector<2x8x8xf32> -> vector<2x8x8xf32>
    %cst_46 = arith.constant 0xFF800000 : f32
    "tpu.trace_stop"() : () -> ()
    %135 = vector.shape_cast %7 : vector<1x8x8xi1> to vector<1x8x8xi1>
    %136 = vector.broadcast %135 : vector<1x8x8xi1> to vector<2x8x8xi1>
    %137 = vector.broadcast %cst_46 : f32 to vector<2x8x8xf32>
    %138 = arith.select %136, %134, %137 : vector<2x8x8xi1>, vector<2x8x8xf32>
    %cst_47 = arith.constant dense<0xFF800000> : vector<2x8xf32>
    %139 = vector.multi_reduction <maximumf>, %138, %cst_47 [2] : vector<2x8x8xf32> to vector<2x8xf32>
    %140 = vector.shape_cast %139 : vector<2x8xf32> to vector<2x8x1xf32>
    %141 = vector.broadcast %140 : vector<2x8x1xf32> to vector<2x8x8xf32>
    %142 = arith.subf %138, %141 : vector<2x8x8xf32>
    %143 = math.exp %142 : vector<2x8x8xf32>
    %cst_48 = arith.constant dense<0.000000e+00> : vector<2x8xf32>
    %144 = vector.multi_reduction <add>, %143, %cst_48 [2] : vector<2x8x8xf32> to vector<2x8xf32>
    %145 = vector.shape_cast %144 : vector<2x8xf32> to vector<2x8x1xf32>
    "tpu.trace_start"() <{level = 10 : i32, message = "bqk,bkh->bqh"}> : () -> ()
    %cst_49 = arith.constant dense<0.000000e+00> : vector<2x8x16xf32>
    %146 = tpu.matmul %143, %133, %cst_49 {dimension_numbers = #tpu.dot_dimension_numbers<[2], [1], [1], [2], [0, 0, 0, 1, 1, 2], [0], [0]>, precision = #tpu.contract_precision<fp32>} : vector<2x8x8xf32>, vector<2x8x16xf32>, vector<2x8x16xf32> -> vector<2x8x16xf32>
    "tpu.trace_stop"() : () -> ()
    %cst_50 = arith.constant 1.000000e+00 : f32
    %147 = vector.broadcast %cst_50 : f32 to vector<2x8x1xf32>
    %148 = arith.divf %147, %145 : vector<2x8x1xf32>
    %149 = vector.broadcast %148 : vector<2x8x1xf32> to vector<2x8x16xf32>
    %150 = arith.mulf %146, %149 : vector<2x8x16xf32>
    %c0_51 = arith.constant 0 : index
    %c0_52 = arith.constant 0 : index
    %c80 = arith.constant 80 : index
    %151 = vector.load %arg3[%c0_51, %c0_52, %c80] : memref<2x8x128xf32, #tpu.memory_space<vmem>>, vector<2x8x16xf32>
    tpu.vector_store %arg3[%c0_51, %c0_52, %c80], %150 {strides = array<i32>} : memref<2x8x128xf32, #tpu.memory_space<vmem>>, vector<2x8x16xf32>,
    %152 = vector.extract_strided_slice %3 {offsets = [0, 96], sizes = [16, 16], strides = [1, 1]} : vector<16x384xf32> to vector<16x16xf32>
    %153 = vector.shape_cast %152 : vector<16x16xf32> to vector<2x8x16xf32>
    %154 = vector.extract_strided_slice %3 {offsets = [0, 224], sizes = [16, 16], strides = [1, 1]} : vector<16x384xf32> to vector<16x16xf32>
    %155 = vector.shape_cast %154 : vector<16x16xf32> to vector<2x8x16xf32>
    %156 = vector.extract_strided_slice %3 {offsets = [0, 352], sizes = [16, 16], strides = [1, 1]} : vector<16x384xf32> to vector<16x16xf32>
    %157 = vector.shape_cast %156 : vector<16x16xf32> to vector<2x8x16xf32>
    "tpu.trace_start"() <{level = 10 : i32, message = "bqh,bkh->bqk"}> : () -> ()
    %cst_53 = arith.constant dense<0.000000e+00> : vector<2x8x8xf32>
    %158 = tpu.matmul %155, %153, %cst_53 {dimension_numbers = #tpu.dot_dimension_numbers<[2], [2], [1], [1], [0, 0, 0, 1, 1, 1], [0], [0]>, precision = #tpu.contract_precision<fp32>} : vector<2x8x16xf32>, vector<2x8x16xf32>, vector<2x8x8xf32> -> vector<2x8x8xf32>
    %cst_54 = arith.constant 0xFF800000 : f32
    "tpu.trace_stop"() : () -> ()
    %159 = vector.shape_cast %7 : vector<1x8x8xi1> to vector<1x8x8xi1>
    %160 = vector.broadcast %159 : vector<1x8x8xi1> to vector<2x8x8xi1>
    %161 = vector.broadcast %cst_54 : f32 to vector<2x8x8xf32>
    %162 = arith.select %160, %158, %161 : vector<2x8x8xi1>, vector<2x8x8xf32>
    %cst_55 = arith.constant dense<0xFF800000> : vector<2x8xf32>
    %163 = vector.multi_reduction <maximumf>, %162, %cst_55 [2] : vector<2x8x8xf32> to vector<2x8xf32>
    %164 = vector.shape_cast %163 : vector<2x8xf32> to vector<2x8x1xf32>
    %165 = vector.broadcast %164 : vector<2x8x1xf32> to vector<2x8x8xf32>
    %166 = arith.subf %162, %165 : vector<2x8x8xf32>
    %167 = math.exp %166 : vector<2x8x8xf32>
    %cst_56 = arith.constant dense<0.000000e+00> : vector<2x8xf32>
    %168 = vector.multi_reduction <add>, %167, %cst_56 [2] : vector<2x8x8xf32> to vector<2x8xf32>
    %169 = vector.shape_cast %168 : vector<2x8xf32> to vector<2x8x1xf32>
    "tpu.trace_start"() <{level = 10 : i32, message = "bqk,bkh->bqh"}> : () -> ()
    %cst_57 = arith.constant dense<0.000000e+00> : vector<2x8x16xf32>
    %170 = tpu.matmul %167, %157, %cst_57 {dimension_numbers = #tpu.dot_dimension_numbers<[2], [1], [1], [2], [0, 0, 0, 1, 1, 2], [0], [0]>, precision = #tpu.contract_precision<fp32>} : vector<2x8x8xf32>, vector<2x8x16xf32>, vector<2x8x16xf32> -> vector<2x8x16xf32>
    "tpu.trace_stop"() : () -> ()
    %cst_58 = arith.constant 1.000000e+00 : f32
    %171 = vector.broadcast %cst_58 : f32 to vector<2x8x1xf32>
    %172 = arith.divf %171, %169 : vector<2x8x1xf32>
    %173 = vector.broadcast %172 : vector<2x8x1xf32> to vector<2x8x16xf32>
    %174 = arith.mulf %170, %173 : vector<2x8x16xf32>
    %c0_59 = arith.constant 0 : index
    %c0_60 = arith.constant 0 : index
    %c96 = arith.constant 96 : index
    %175 = vector.load %arg3[%c0_59, %c0_60, %c96] : memref<2x8x128xf32, #tpu.memory_space<vmem>>, vector<2x8x16xf32>
    tpu.vector_store %arg3[%c0_59, %c0_60, %c96], %174 {strides = array<i32>} : memref<2x8x128xf32, #tpu.memory_space<vmem>>, vector<2x8x16xf32>,
    %176 = vector.extract_strided_slice %3 {offsets = [0, 112], sizes = [16, 16], strides = [1, 1]} : vector<16x384xf32> to vector<16x16xf32>
    %177 = vector.shape_cast %176 : vector<16x16xf32> to vector<2x8x16xf32>
    %178 = vector.extract_strided_slice %3 {offsets = [0, 240], sizes = [16, 16], strides = [1, 1]} : vector<16x384xf32> to vector<16x16xf32>
    %179 = vector.shape_cast %178 : vector<16x16xf32> to vector<2x8x16xf32>
    %180 = vector.extract_strided_slice %3 {offsets = [0, 368], sizes = [16, 16], strides = [1, 1]} : vector<16x384xf32> to vector<16x16xf32>
    %181 = vector.shape_cast %180 : vector<16x16xf32> to vector<2x8x16xf32>
    "tpu.trace_start"() <{level = 10 : i32, message = "bqh,bkh->bqk"}> : () -> ()
    %cst_61 = arith.constant dense<0.000000e+00> : vector<2x8x8xf32>
    %182 = tpu.matmul %179, %177, %cst_61 {dimension_numbers = #tpu.dot_dimension_numbers<[2], [2], [1], [1], [0, 0, 0, 1, 1, 1], [0], [0]>, precision = #tpu.contract_precision<fp32>} : vector<2x8x16xf32>, vector<2x8x16xf32>, vector<2x8x8xf32> -> vector<2x8x8xf32>
    %cst_62 = arith.constant 0xFF800000 : f32
    "tpu.trace_stop"() : () -> ()
    %183 = vector.shape_cast %7 : vector<1x8x8xi1> to vector<1x8x8xi1>
    %184 = vector.broadcast %183 : vector<1x8x8xi1> to vector<2x8x8xi1>
    %185 = vector.broadcast %cst_62 : f32 to vector<2x8x8xf32>
    %186 = arith.select %184, %182, %185 : vector<2x8x8xi1>, vector<2x8x8xf32>
    %cst_63 = arith.constant dense<0xFF800000> : vector<2x8xf32>
    %187 = vector.multi_reduction <maximumf>, %186, %cst_63 [2] : vector<2x8x8xf32> to vector<2x8xf32>
    %188 = vector.shape_cast %187 : vector<2x8xf32> to vector<2x8x1xf32>
    %189 = vector.broadcast %188 : vector<2x8x1xf32> to vector<2x8x8xf32>
    %190 = arith.subf %186, %189 : vector<2x8x8xf32>
    %191 = math.exp %190 : vector<2x8x8xf32>
    %cst_64 = arith.constant dense<0.000000e+00> : vector<2x8xf32>
    %192 = vector.multi_reduction <add>, %191, %cst_64 [2] : vector<2x8x8xf32> to vector<2x8xf32>
    %193 = vector.shape_cast %192 : vector<2x8xf32> to vector<2x8x1xf32>
    "tpu.trace_start"() <{level = 10 : i32, message = "bqk,bkh->bqh"}> : () -> ()
    %cst_65 = arith.constant dense<0.000000e+00> : vector<2x8x16xf32>
    %194 = tpu.matmul %191, %181, %cst_65 {dimension_numbers = #tpu.dot_dimension_numbers<[2], [1], [1], [2], [0, 0, 0, 1, 1, 2], [0], [0]>, precision = #tpu.contract_precision<fp32>} : vector<2x8x8xf32>, vector<2x8x16xf32>, vector<2x8x16xf32> -> vector<2x8x16xf32>
    "tpu.trace_stop"() : () -> ()
    %cst_66 = arith.constant 1.000000e+00 : f32
    %195 = vector.broadcast %cst_66 : f32 to vector<2x8x1xf32>
    %196 = arith.divf %195, %193 : vector<2x8x1xf32>
    %197 = vector.broadcast %196 : vector<2x8x1xf32> to vector<2x8x16xf32>
    %198 = arith.mulf %194, %197 : vector<2x8x16xf32>
    %c0_67 = arith.constant 0 : index
    %c0_68 = arith.constant 0 : index
    %c112 = arith.constant 112 : index
    %199 = vector.load %arg3[%c0_67, %c0_68, %c112] : memref<2x8x128xf32, #tpu.memory_space<vmem>>, vector<2x8x16xf32>
    tpu.vector_store %arg3[%c0_67, %c0_68, %c112], %198 {strides = array<i32>} : memref<2x8x128xf32, #tpu.memory_space<vmem>>, vector<2x8x16xf32>,
    return
  }
  func.func @transform_0(%arg0: i32) -> (i32, i32, i32) {
    %c0_i32 = arith.constant 0 : i32
    %c0_i32_0 = arith.constant 0 : i32
    %c0_i32_1 = arith.constant 0 : i32
    return %arg0, %c0_i32, %c0_i32_0 : i32, i32, i32
  }
  func.func @transform_1(%arg0: i32) -> (i32, i32) {
    %c0_i32 = arith.constant 0 : i32
    %c0_i32_0 = arith.constant 0 : i32
    %c0_i32_1 = arith.constant 0 : i32
    return %c0_i32, %c0_i32_0 : i32, i32
  }
  func.func @transform_2(%arg0: i32) -> (i32, i32, i32) {
    %c0_i32 = arith.constant 0 : i32
    %c0_i32_0 = arith.constant 0 : i32
    %c0_i32_1 = arith.constant 0 : i32
    return %arg0, %c0_i32, %c0_i32_0 : i32, i32, i32
  }
}

</mosaic_0001>

<bundles_post_ra>
// kernel: tpu_custom_call.1
= control target key start
LH: loop header
LB: loop body
LE: loop exit
PB: predicated region body
PF: predicated region fallthrough
CT: control target
= control target key end

     0   :  { %7 = vsyncpa [#allocation3], 0  ;;  %s20070_s0 = inlined_call_operand.hbm [shape: f32[2,8,64], index: 0, kind: input, shape index: {}]   ;;  %s20071_s1 = inlined_call_operand.hbm [shape: f32[64,384], index: 1, kind: input, shape index: {}]   ;;  %s20072_s2 = inlined_call_operand.hbm [shape: f32[2,8,128], index: 2, kind: output, shape index: {}]  }
   0x1   :  { %8 = vsyncpa [#allocation6], 0 }
   0x2   :  { %9 = vsyncpa [#allocation4], 0  ;;  %s18363_s9 = smov [#allocation2]   ;;  %s18291_s13 = scalar_lea.hbm %s20070_s0, 256 }
   0x3   :  { %s15_s10 = sshll.u32 %s18363_s9, 4  ;;  %p18292_p0 = scmp.ne.s32.totalorder %s20070_s0, %s18291_s13  ;;  %s16_s10 = int_to_ptr.vmem [resolvable:$true] %s15_s10 }
   0x4   :  { %p18295_p1 = scmp.lt.u32.totalorder %s18291_s13, %s20070_s0 }
   0x6   :  { %p18297_p2 = pnand %p18295_p1, %p18292_p0 }
   0x8   :  { %18300 = shalt.err (!%p18297_p2)
}
   0x9   :  { %s18301_s18 = scalar_lea.vmem %s16_s10, 256  ;;  %p18306_p4 = scmp.lt.s32.totalorder %s16_s10, %s16_s10 }
   0xa   :  { %p18302_p3 = scmp.ne.s32.totalorder %s16_s10, %s18301_s18  ;;  %p18307_p5 = scmp.lt.s32.totalorder %s18301_s18, %s18301_s18 }
   0xc   :  { %p18308_p6 = por %p18307_p5, %p18306_p4 }
   0xe   :  { %p18309_p7 = pnand %p18308_p6, %p18302_p3 }
  0x10   :  { %18312 = shalt.err (!%p18309_p7)
}
  0x11   :  { %s18364_s19 = smov 128   ;;  %s18365_s20 = smov 8  }
  0x12   :  { %21 = dma.hbm_to_vmem [thread:$0]  %s20070_s0, 256, %s16_s10, [#allocation3], %s18364_s19, %s18364_s19, %s18365_s20  }
  0x13   :  { %s18366_s23 = smov [#allocation5]   ;;  %s18313_s27 = scalar_lea.hbm %s20071_s1, 3072 }
  0x14   :  { %s27_s24 = sshll.u32 %s18366_s23, 4  ;;  %p18314_p8 = scmp.ne.s32.totalorder %s20071_s1, %s18313_s27  ;;  %s28_s24 = int_to_ptr.vmem [resolvable:$true] %s27_s24 }
  0x15   :  { %p18317_p9 = scmp.lt.u32.totalorder %s18313_s27, %s20071_s1 }
  0x17   :  { %p18319_p10 = pnand %p18317_p9, %p18314_p8 }
  0x19   :  { %18322 = shalt.err (!%p18319_p10)
}
  0x1a   :  { %s18323_s4 = scalar_lea.vmem %s28_s24, 3072  ;;  %p18328_p12 = scmp.lt.s32.totalorder %s28_s24, %s28_s24 }
  0x1b   :  { %p18324_p11 = scmp.ne.s32.totalorder %s28_s24, %s18323_s4  ;;  %p18329_p13 = scmp.lt.s32.totalorder %s18323_s4, %s18323_s4 }
  0x1d   :  { %p18330_p0 = por %p18329_p13, %p18328_p12 }
  0x1f   :  { %p18331_p1 = pnand %p18330_p0, %p18324_p11 }
  0x21   :  { %18334 = shalt.err (!%p18331_p1)
}
  0x22   :  { %s18367_s0 = smov 384   ;;  %s18368_s5 = smov 24  }
  0x23   :  { %33 = dma.hbm_to_vmem [thread:$0]  %s20071_s1, 3072, %s28_s24, [#allocation6], %s18367_s0, %s18367_s0, %s18368_s5  }
  0x24   :  { %18357 = dma.done.wait [#allocation3], 256  }
  0x25   :  { %18358 = vsyncadd [#allocation3], 4294967040 }
  0x26   :  { %18359 = dma.done.wait [#allocation6], 3072  }
  0x27   :  { %18360 = vsyncadd [#allocation6], 4294964224  ;;  %v18369_v0 = vmov 0.0   ;;  %v43_v1 = vld [vmem:[#allocation5 + $0x8] sm:$0xff]  ;;  %v46_v2 = vld [vmem:[#allocation5 + $0x20] sm:$0xff]  ;;  %vm66_vm0 = vcmask 523264  }
  0x28   :  { %153 = vmatprep.mubr.f32.mxu0 %v18369_v0  ;;  %v42_v3 = vld [vmem:[#allocation5] sm:$0xff]  ;;  %v73_v4 = vand.u32 4294901760, %v43_v1  ;;  %v77_v5 = vand.u32 4294901760, %v46_v2  ;;  %v45_v6 = vld [vmem:[#allocation5 + $0x18] sm:$0xff]  ;;  %v52_v9 = vld [vmem:[#allocation5 + $0x50] sm:$0xff]  ;;  %vm18370_vm1 = vmmov 0  }
  0x29   :  { %v75_v7 = vand.u32 4294901760, %v42_v3  ;;  %v49_v8 = vld [vmem:[#allocation5 + $0x38] sm:$0xff]  ;;  %v79_v10 = vand.u32 4294901760, %v45_v6  ;;  %v85_v12 = vand.u32 4294901760, %v52_v9  ;;  %v48_v13 = vld [vmem:[#allocation5 + $0x30] sm:$0xff]  ;;  %v51_v14 = vld [vmem:[#allocation5 + $0x48] sm:$0xff] }
  0x2a   :  { %v81_v11 = vand.u32 4294901760, %v49_v8  ;;  %v55_v15 = vld [vmem:[#allocation5 + $0x68] sm:$0xff]  ;;  %v18422_v16 = vpack.c.bf16 %v77_v5, %v73_v4  ;;  %v18424_v17 = vsub.f32 %v43_v1, %v73_v4  ;;  %v18426_v18 = vsub.f32 %v46_v2, %v77_v5  ;;  %v58_v20 = vld [vmem:[#allocation5 + $0x80] sm:$0xff]  ;;  %v57_v22 = vld [vmem:[#allocation5 + $0x78] sm:$0xff]  ;;  %s18371_s1 = smov 112   ;;  %s18372_s8 = smov 96  }
  0x2b   :  { %v18428_v19 = vsub.f32 %v42_v3, %v75_v7  ;;  %v54_v21 = vld [vmem:[#allocation5 + $0x60] sm:$0xff]  ;;  %v18430_v23 = vpack.c.bf16 %v79_v10, %v75_v7  ;;  %v18432_v24 = vsub.f32 %v45_v6, %v79_v10  ;;  %v61_v27 = vld [vmem:[#allocation5 + $0x98] sm:$0xff]  ;;  %v18439_v28 = vsub.f32 %v52_v9, %v85_v12  ;;  %v64_v35 = vld [vmem:[#allocation5 + $0xb0] sm:$0xff]  ;;  %s18373_s9 = smov 80   ;;  %s18374_s10 = smov 64  }
  0x2c   :  { %v18434_v25 = vpack.c.bf16 %v85_v12, %v81_v11  ;;  %v18436_v26 = vsub.f32 %v49_v8, %v81_v11  ;;  %17670 = vmatprep.subr.bf16.mxu0 %v18422_v16  ;;  %v83_v29 = vand.u32 4294901760, %v48_v13  ;;  %v87_v30 = vand.u32 4294901760, %v51_v14  ;;  %v60_v37 = vld [vmem:[#allocation5 + $0x90] sm:$0xff]  ;;  %v63_v42 = vld [vmem:[#allocation5 + $0xa8] sm:$0xff]  ;;  %s18375_s11 = smov 48   ;;  %s18376_s12 = smov 32  }
  0x2d   :  { %v89_v31 = vand.u32 4294901760, %v55_v15  ;;  %17672 = vmatpush1.bf16.msra.mxu0 %v18430_v23  ;;  %v93_v32 = vand.u32 4294901760, %v58_v20  ;;  %v91_v33 = vand.u32 4294901760, %v54_v21  ;;  %v95_v34 = vand.u32 4294901760, %v57_v22  ;;  %v40_v43 = vld [vmem:[#allocation2] sm:$0xff]  ;;  %s18377_s13 = smov 16  }
  0x2e   :  { %v97_v36 = vand.u32 4294901760, %v61_v27  ;;  %17674 = vmatprep.subr.bf16.mxu0 %v18434_v25  ;;  %v18443_v38 = vpack.c.bf16 %v87_v30, %v83_v29  ;;  %v18445_v39 = vsub.f32 %v48_v13, %v83_v29  ;;  %v18447_v40 = vsub.f32 %v51_v14, %v87_v30  ;;  %s18378_s14 = smov [#allocation7]  }
  0x2f   :  { %v18449_v41 = vsub.f32 %v55_v15, %v89_v31  ;;  %v18451_v44 = vpack.c.bf16 %v93_v32, %v89_v31  ;;  %v18453_v45 = vsub.f32 %v58_v20, %v93_v32  ;;  %v18455_v46 = vpack.c.bf16 %v95_v34, %v91_v33  ;;  %s16138_s15 = sshll.u32 %s18378_s14, 4  ;;  %s16139_s15 = int_to_ptr.vmem [resolvable:$true] %s16138_s15 }
  0x30   :  { %v18457_v47 = vsub.f32 %v54_v21, %v91_v33  ;;  %v18459_v48 = vsub.f32 %v57_v22, %v95_v34  ;;  %v101_v49 = vand.u32 4294901760, %v64_v35  ;;  %v18461_v50 = vsub.f32 %v61_v27, %v97_v36  ;;  %s18335_s16 = scalar_lea.vmem %s16139_s15, 256  ;;  %p18340_p3 = scmp.lt.s32.totalorder %s16139_s15, %s16139_s15 }
  0x31   :  { %v99_v51 = vand.u32 4294901760, %v60_v37  ;;  %17676 = vmatpush1.bf16.msra.mxu0 %v18443_v38  ;;  %v103_v52 = vand.u32 4294901760, %v63_v42  ;;  %v178_v53 = vand.u32 4294901760, %v18424_v17  ;;  %v190_v54 = vand.u32 4294901760, %v18426_v18  ;;  %p18336_p2 = scmp.ne.s32.totalorder %s16139_s15, %s18335_s16  ;;  %p18341_p4 = scmp.lt.s32.totalorder %s18335_s16, %s18335_s16 }
  0x32   :  { %v68_v55 = vsel %vm66_vm0, %v40_v43, 0  ;;  %17678 = vmatprep.subr.bf16.mxu0 %v18451_v44  ;;  %v18468_v56 = vpack.c.bf16 %v101_v49, %v97_v36  ;;  %v18470_v57 = vsub.f32 %v64_v35, %v101_v49  ;;  %v184_v2 = vand.u32 4294901760, %v18428_v19 }
  0x33   :  { %v18472_v58 = vsub.f32 %v60_v37, %v99_v51  ;;  %v18474_v59 = vand.u32 4294901760, %v68_v55  ;;  %v18476_v60 = vpack.c.bf16 %v103_v52, %v99_v51  ;;  %v18478_v61 = vsub.f32 %v63_v42, %v103_v52  ;;  %v41_v42 = vld [vmem:[#allocation2 + $0x8] sm:$0xff]  ;;  %p18342_p5 = por %p18341_p4, %p18340_p3 }
  0x34   :  { %v179_v62 = vsub.f32 %v18424_v17, %v178_v53  ;;  %v191_v63 = vsub.f32 %v18426_v18, %v190_v54  ;;  %v20090_v3 = vand.u32 4294901760, %v18432_v24  ;;  %v20086_v4 = vand.u32 4294901760, %v18436_v26 }
  0x35   :  { %v18487_v1 = vsub.f32 %v68_v55, %v18474_v59  ;;  %17680 = vmatpush1.bf16.msra.mxu0 %v18455_v46  ;;  %v20083_v7 = vand.u32 4294901760, %v18439_v28  ;;  %v20082_v8 = vand.u32 4294901760, %v18445_v39  ;;  %v185_v10 = vsub.f32 %v18428_v19, %v184_v2  ;;  %p18343_p6 = pnand %p18342_p5, %p18336_p2 }
  0x36   :  { %v180_v5 = vand.u32 4294901760, %v179_v62  ;;  %v192_v6 = vand.u32 4294901760, %v191_v63  ;;  %17682 = vmatprep.subr.bf16.mxu0 %v18468_v56  ;;  %v197_v11 = vsub.f32 %v18432_v24, %v20090_v3  ;;  %v203_v12 = vsub.f32 %v18436_v26, %v20086_v4 }
  0x37   :  { %v18497_v9 = vand.u32 4294901760, %v18487_v1  ;;  %v215_v14 = vsub.f32 %v18439_v28, %v20083_v7  ;;  %v209_v15 = vsub.f32 %v18445_v39, %v20082_v8  ;;  %v20081_v20 = vand.u32 4294901760, %v18447_v40 }
  0x38   :  { %v17685_v13 = vpack.c.bf16 %v192_v6, %v180_v5  ;;  %v186_v22 = vand.u32 4294901760, %v185_v10  ;;  %v198_v27 = vand.u32 4294901760, %v197_v11  ;;  %v204_v29 = vand.u32 4294901760, %v203_v12 }
  0x39   :  { %v157_v21 = vsub.f32 %v18487_v1, %v18497_v9  ;;  %17684 = vmatpush1.bf16.msra.mxu0 %v18476_v60  ;;  %v216_v30 = vand.u32 4294901760, %v215_v14  ;;  %v210_v31 = vand.u32 4294901760, %v209_v15  ;;  %v221_v32 = vsub.f32 %v18447_v40, %v20081_v20 }
  0x3a   :  { %v20080_v33 = vand.u32 4294901760, %v18449_v41  ;;  %17686 = vmatprep.subr.bf16.mxu0 %v17685_v13  ;;  %v17687_v35 = vpack.c.bf16 %v198_v27, %v186_v22  ;;  %v20079_v36 = vand.u32 4294901760, %v18453_v45  ;;  %v20078_v37 = vand.u32 4294901760, %v18457_v47 }
  0x3b   :  { %v158_v34 = vand.u32 4294901760, %v157_v21  ;;  %v17689_v43 = vpack.c.bf16 %v216_v30, %v204_v29  ;;  %v222_v49 = vand.u32 4294901760, %v221_v32  ;;  %v20077_v52 = vand.u32 4294901760, %v18459_v48 }
  0x3c   :  { %v227_v51 = vsub.f32 %v18449_v41, %v20080_v33  ;;  %v239_v55 = vsub.f32 %v18453_v45, %v20079_v36  ;;  %v233_v62 = vsub.f32 %v18457_v47, %v20078_v37  ;;  %v20076_v63 = vand.u32 4294901760, %v18461_v50 }
  0x3d   :  { %159 = vmatmul.mubr.f32.vlgmr.msra.gmra.mrb[0].mxu0 %v158_v34  ;;  %v20075_v5 = vand.u32 4294901760, %v18470_v57  ;;  %16611 = vmatprep.mubr.f32.mxu1 %v158_v34  ;;  %v17691_v6 = vpack.c.bf16 %v222_v49, %v210_v31  ;;  %v245_v11 = vsub.f32 %v18459_v48, %v20077_v52  ;;  %v71_v12 = vsel %vm66_vm0, %v41_v42, 0 }
  0x3e   :  { %17688 = vmatpush1.bf16.msra.mxu0 %v17687_v35  ;;  %v228_v10 = vand.u32 4294901760, %v227_v51  ;;  %164 = vmatprep.mubr.f32.mxu0 %v18369_v0  ;;  %v240_v13 = vand.u32 4294901760, %v239_v55  ;;  %v234_v14 = vand.u32 4294901760, %v233_v62  ;;  %v251_v15 = vsub.f32 %v18461_v50, %v20076_v63 }
  0x3f   :  { %17690 = vmatprep.subr.bf16.mxu0 %v17689_v43  ;;  %v263_v21 = vsub.f32 %v18470_v57, %v20075_v5  ;;  %v246_v22 = vand.u32 4294901760, %v245_v11  ;;  %v18547_v27 = vand.u32 4294901760, %v71_v12  ;;  %v20074_v29 = vand.u32 4294901760, %v18472_v58  ;;  %v47_v11 = vld [vmem:[#allocation5 + $0x28] sm:$0xff]  ;;  %v65_v5 = vld [vmem:[#allocation5 + $0xb8] sm:$0xff] }
  0x40   :  { %v20073_v30 = vand.u32 4294901760, %v18478_v61  ;;  %v17693_v31 = vpack.c.bf16 %v240_v13, %v228_v10  ;;  %v252_v32 = vand.u32 4294901760, %v251_v15  ;;  %v50_v13 = vld [vmem:[#allocation5 + $0x40] sm:$0xff]  ;;  %v17705_v63 = vpack.c.bf16 %v18439_v28, %v18436_v26 }
  0x41   :  { %v264_v34 = vand.u32 4294901760, %v263_v21  ;;  %v17695_v35 = vpack.c.bf16 %v246_v22, %v234_v14  ;;  %v18552_v42 = vsub.f32 %v71_v12, %v18547_v27  ;;  %v257_v43 = vsub.f32 %v18472_v58, %v20074_v29  ;;  %v53_v14 = vld [vmem:[#allocation5 + $0x58] sm:$0xff]  ;;  %v56_v21 = vld [vmem:[#allocation5 + $0x70] sm:$0xff]  ;;  %v59_v22 = vld [vmem:[#allocation5 + $0x88] sm:$0xff] }
  0x42   :  { %17692 = vmatpush1.bf16.msra.mxu0 %v17691_v6  ;;  %v269_v49 = vsub.f32 %v18478_v61, %v20073_v30  ;;  %v44_v6 = vld [vmem:[#allocation5 + $0x10] sm:$0xff]  ;;  %v779_v29 = vand.u32 4294901760, %v53_v14  ;;  %v791_v33 = vand.u32 4294901760, %v65_v5  ;;  %vm1354_vm2 = vcmask 130048  }
  0x43   :  { %17694 = vmatprep.subr.bf16.mxu0 %v17693_v31  ;;  %v17697_v51 = vpack.c.bf16 %v264_v34, %v252_v32  ;;  %v18561_v55 = vand.u32 4294901760, %v18552_v42  ;;  %v258_v62 = vand.u32 4294901760, %v257_v43  ;;  %v17701_v31 = vpack.c.bf16 %v18426_v18, %v18424_v17  ;;  %v62_v43 = vld [vmem:[#allocation5 + $0xa0] sm:$0xff] }
  0x44   :  { %v270_v10 = vand.u32 4294901760, %v269_v49  ;;  %v770_v32 = vand.u32 4294901760, %v44_v6  ;;  %v773_v34 = vand.u32 4294901760, %v47_v11  ;;  %v776_v49 = vand.u32 4294901760, %v50_v13 }
  0x45   :  { %v168_v12 = vsub.f32 %v18552_v42, %v18561_v55  ;;  %v788_v37 = vand.u32 4294901760, %v62_v43  ;;  %v20093_v17 = vand.u32 4294901760, %v18439_v28  ;;  %v20096_v28 = vand.u32 4294901760, %v18449_v41 }
  0x46   :  { %17696 = vmatpush1.bf16.msra.mxu0 %v17695_v35  ;;  %v17699_v15 = vpack.c.bf16 %v270_v10, %v258_v62  ;;  %v17703_v35 = vpack.c.bf16 %v18432_v24, %v18428_v19  ;;  %v782_v62 = vand.u32 4294901760, %v56_v21  ;;  %v785_v10 = vand.u32 4294901760, %v59_v22 }
  0x47   :  { %17698 = vmatprep.subr.bf16.mxu0 %v17697_v51  ;;  %v18565_v30 = vand.u32 4294901760, %v168_v12  ;;  %v18572_v51 = vpack.c.bf16 %v773_v34, %v770_v32  ;;  %v18574_v12 = vsub.f32 %v44_v6, %v770_v32  ;;  %v18579_v52 = vpack.c.bf16 %v779_v29, %v776_v49 }
  0x48   :  { %v18581_v36 = vsub.f32 %v47_v11, %v773_v34  ;;  %v18585_v8 = vsub.f32 %v50_v13, %v776_v49  ;;  %v18587_v6 = vsub.f32 %v53_v14, %v779_v29  ;;  %v18591_v32 = vsub.f32 %v56_v21, %v782_v62 }
  0x49   :  { %170 = vmatmul.mubr.f32.gmra.mrb[2].mxu0 %v18565_v30  ;;  %17766 = vmatprep.subr.bf16.mxu1 %v18572_v51  ;;  %v20085_v20 = vand.u32 4294901760, %v18574_v12  ;;  %v18593_v7 = vsub.f32 %v59_v22, %v785_v10  ;;  %v18597_v11 = vpack.c.bf16 %v785_v10, %v782_v62  ;;  %v17707_v21 = vpack.c.bf16 %v18447_v40, %v18445_v39 }
  0x4a   :  { %17700 = vmatpush1.bf16.msra.mxu0 %v17699_v15  ;;  %320 = vmatprep.mubr.f32.mxu0 %v18369_v0  ;;  %v20084_v15 = vand.u32 4294901760, %v18581_v36  ;;  %v20088_v29 = vand.u32 4294901760, %v18585_v8  ;;  %v20087_v14 = vand.u32 4294901760, %v18587_v6  ;;  %v18612_v34 = vpack.c.bf16 %v791_v33, %v788_v37 }
  0x4b   :  { %17702 = vmatprep.subr.bf16.mxu0 %v17701_v31  ;;  %17768 = vmatpush3.bf16.msra.mxu1 %v18572_v51  ;;  %v866_v13 = vsub.f32 %v18574_v12, %v20085_v20  ;;  %v17709_v31 = vpack.c.bf16 %v18453_v45, %v18449_v41  ;;  %v20089_v49 = vand.u32 4294901760, %v18591_v32  ;;  %v18617_v62 = vsub.f32 %v62_v43, %v788_v37 }
  0x4c   :  { %17770 = vmatprep.subr.bf16.mxu1 %v18579_v52  ;;  %v873_v22 = vsub.f32 %v18581_v36, %v20084_v15  ;;  %v18619_v10 = vsub.f32 %v65_v5, %v791_v33  ;;  %v880_v20 = vsub.f32 %v18585_v8, %v20088_v29  ;;  %v887_v4 = vsub.f32 %v18587_v6, %v20087_v14 }
  0x4d   :  { %322 = vmatmul.mubr.f32.vlgmr.msra.gmra.mrb[0].mxu0 %v18474_v59  ;;  %v17711_v37 = vpack.c.bf16 %v18459_v48, %v18457_v47  ;;  %v17713_v33 = vpack.c.bf16 %v18470_v57, %v18461_v50  ;;  %v894_v5 = vsub.f32 %v18591_v32, %v20089_v49  ;;  %v907_v43 = vand.u32 4294901760, %v18617_v62 }
  0x4e   :  { %17704 = vmatpush1.bf16.msra.mxu0 %v17703_v35  ;;  %327 = vmatprep.mubr.f32.mxu0 %v18369_v0  ;;  %v900_v35 = vand.u32 4294901760, %v18593_v7  ;;  %v874_v15 = vand.u32 4294901760, %v873_v22  ;;  %v881_v22 = vand.u32 4294901760, %v880_v20  ;;  %v888_v14 = vand.u32 4294901760, %v887_v4 }
  0x4f   :  { %17706 = vmatprep.subr.bf16.mxu0 %v17705_v63  ;;  %17772 = vmatpush3.bf16.msra.mxu1 %v18579_v52  ;;  %v867_v63 = vand.u32 4294901760, %v866_v13  ;;  %v914_v13 = vand.u32 4294901760, %v18619_v10  ;;  %v17715_v29 = vpack.c.bf16 %v18478_v61, %v18472_v58  ;;  %v908_v49 = vsub.f32 %v18617_v62, %v907_v43 }
  0x50   :  { %17774 = vmatprep.subr.bf16.mxu1 %v18597_v11  ;;  %v17785_v3 = vpack.c.bf16 %v888_v14, %v881_v22  ;;  %v17805_v18 = vpack.c.bf16 %v18593_v7, %v18591_v32  ;;  %v20094_v19 = vand.u32 4294901760, %v18445_v39  ;;  %v20098_v39 = vand.u32 4294901760, %v18457_v47 }
  0x51   :  { %329 = vmatmul.mubr.f32.gmra.mrb[2].mxu0 %v18547_v27  ;;  %v915_v4 = vsub.f32 %v18619_v10, %v914_v13  ;;  %v20100_v41 = vand.u32 4294901760, %v18461_v50  ;;  %v17841_v50 = vpack.c.bf16 %v914_v13, %v907_v43  ;;  %vm2263_vm4 = vcmask 64512  }
  0x52   :  { %17708 = vmatpush1.bf16.msra.mxu0 %v17707_v21  ;;  %431 = vmatprep.mubr.f32.mxu0 %v18369_v0  ;;  %v17781_v21 = vpack.c.bf16 %v874_v15, %v867_v63  ;;  %v895_v15 = vand.u32 4294901760, %v894_v5  ;;  %vm5036_vm5 = vcmask 261248   ;;  %vm6885_vm6 = vcmask 392448  }
  0x53   :  { %17710 = vmatprep.subr.bf16.mxu0 %v17709_v31  ;;  %17776 = vmatpush3.bf16.msra.mxu1 %v18597_v11  ;;  %v901_v31 = vsub.f32 %v18593_v7, %v900_v35  ;;  %v916_v14 = vand.u32 4294901760, %v915_v4  ;;  %vm8734_vm7 = vcmask 523648   ;;  %vm10583_vm8 = vcmask 654848  }
  0x54   :  { %17778 = vmatprep.subr.bf16.mxu1 %v18612_v34  ;;  %vm12432_vm9 = vcmask 786048   ;;  %vm14281_vm10 = vcmask 917248   ;;  %vm16130_vm11 = vcmask 1048448  }
  0x55   :  { %v902_v20 = vand.u32 4294901760, %v901_v31 }
  0x56   :  { %17712 = vmatpush1.bf16.msra.mxu0 %v17711_v37  ;;  %v909_v37 = vand.u32 4294901760, %v908_v49  ;;  %v17801_v49 = vpack.c.bf16 %v18587_v6, %v18585_v8 }
  0x57   :  { %17714 = vmatprep.subr.bf16.mxu0 %v17713_v33  ;;  %17780 = vmatpush3.bf16.msra.mxu1 %v18612_v34  ;;  %v17789_v63 = vpack.c.bf16 %v902_v20, %v895_v15  ;;  %v20091_v33 = vand.u32 4294901760, %v18432_v24  ;;  %v20095_v24 = vand.u32 4294901760, %v18447_v40  ;;  %v20099_v40 = vand.u32 4294901760, %v18459_v48 }
  0x58   :  { %17782 = vmatprep.subr.bf16.mxu1 %v17781_v21  ;;  %v20102_v15 = vand.u32 4294901760, %v18472_v58  ;;  %v20103_v20 = vand.u32 4294901760, %v18478_v61 }
  0x59   :  { %v17735_v5 = vpack.c.bf16 %v20091_v33, %v184_v2  ;;  %v17743_v2 = vpack.c.bf16 %v20099_v40, %v20098_v39  ;;  %v1349_v33 = vlaneseq }
  0x5a   :  { %17716 = vmatpush1.bf16.msra.mxu0 %v17715_v29  ;;  %16612 = vmatmul.mubr.f32.vlgmr.msra.gmra.mrb[0].mxu1 %v18565_v30  ;;  %v17793_v30 = vpack.c.bf16 %v916_v14, %v909_v37  ;;  %v17797_v29 = vpack.c.bf16 %v18581_v36, %v18574_v12  ;;  %v17747_v4 = vpack.c.bf16 %v20103_v20, %v20102_v15 }
  0x5b   :  { %17718 = vmatprep.subr.bf16.mxu0 %v18422_v16  ;;  %17784 = vmatpush3.bf16.msra.mxu1 %v17781_v21  ;;  %v20092_v21 = vand.u32 4294901760, %v18436_v26  ;;  %v17739_v26 = vpack.c.bf16 %v20095_v24, %v20094_v19 }
  0x5c   :  { %16630 = vmatprep.mubr.f32.mxu1 %v18474_v59  ;;  %17786 = vmatprep.subr.bf16.mxu1 %v17785_v3 }
  0x5d   :  { %434 = vmatmul.mubr.f32.vlgmr.msra.gmra.mrb[0].mxu0 %v18487_v1  ;;  %v17737_v22 = vpack.c.bf16 %v20093_v17, %v20092_v21  ;;  %v1352_v21 = vand.u32 127, %v1349_v33 }
  0x5e   :  { %17720 = vmatpush1.bf16.msra.mxu0 %v18430_v23  ;;  %439 = vmatprep.mubr.f32.mxu0 %v18369_v0 }
  0x5f   :  { %17722 = vmatprep.subr.bf16.mxu0 %v18434_v25  ;;  %17788 = vmatpush3.bf16.msra.mxu1 %v17785_v3  ;;  %v17733_v3 = vpack.c.bf16 %v190_v54, %v178_v53  ;;  %v20097_v53 = vand.u32 4294901760, %v18453_v45  ;;  %v20101_v45 = vand.u32 4294901760, %v18470_v57 }
  0x60   :  { %17790 = vmatprep.subr.bf16.mxu1 %v17789_v63 }
  0x61   :  { %442 = vmatmul.mubr.f32.gmra.mrb[2].mxu0 %v18552_v42  ;;  %v17741_v54 = vpack.c.bf16 %v20097_v53, %v20096_v28  ;;  %v17745_v31 = vpack.c.bf16 %v20101_v45, %v20100_v41 }
  0x62   :  { %17724 = vmatpush1.bf16.msra.mxu0 %v18443_v38  ;;  %528 = vmatprep.mubr.f32.mxu0 %v18369_v0 }
  0x63   :  { %17726 = vmatprep.subr.bf16.mxu0 %v18451_v44  ;;  %17792 = vmatpush3.bf16.msra.mxu1 %v17789_v63 }
  0x64   :  { %17794 = vmatprep.subr.bf16.mxu1 %v17793_v30 }
  0x66   :  { %17728 = vmatpush1.bf16.msra.mxu0 %v18455_v46 }
  0x67   :  { %17730 = vmatprep.subr.bf16.mxu0 %v18468_v56  ;;  %17796 = vmatpush3.bf16.msra.mxu1 %v17793_v30 }
  0x68   :  { %17798 = vmatprep.subr.bf16.mxu1 %v17797_v29 }
  0x6a   :  { %17732 = vmatpush1.bf16.msra.mxu0 %v18476_v60  ;;  %16631 = vmatmul.mubr.f32.vlgmr.msra.gmra.mrb[0].mxu1 %v18547_v27 }
  0x6b   :  { %17734 = vmatprep.subr.bf16.mxu0 %v17733_v3  ;;  %17800 = vmatpush3.bf16.msra.mxu1 %v17797_v29 }
  0x6c   :  { %16649 = vmatprep.mubr.f32.mxu1 %v18487_v1  ;;  %17802 = vmatprep.subr.bf16.mxu1 %v17801_v49  ;;  %v17809_v1 = vpack.c.bf16 %v18619_v10, %v18617_v62 }
  0x6d   :  { %532 = vmatmul.mubr.f32.vlgmr.msra.gmra.mrb[0].mxu0 %v18497_v9 }
  0x6e   :  { %17736 = vmatpush1.bf16.msra.mxu0 %v17735_v5  ;;  %537 = vmatprep.mubr.f32.mxu0 %v18369_v0  ;;  %v1350_v5 = vshrl.u32 %v1349_v33, 7 }
  0x6f   :  { %17738 = vmatprep.subr.bf16.mxu0 %v17737_v22  ;;  %17804 = vmatpush3.bf16.msra.mxu1 %v17801_v49 }
  0x70   :  { %17806 = vmatprep.subr.bf16.mxu1 %v17805_v18  ;;  %vm18863_vm3 = vcmp.ge.s32.totalorder %v1350_v5, %v1352_v21 }
  0x71   :  { %541 = vmatmul.mubr.f32.gmra.mrb[2].mxu0 %v18561_v55 }
  0x72   :  { %17740 = vmatpush1.bf16.msra.mxu0 %v17739_v26  ;;  %659 = vmatprep.mubr.f32.mxu0 %v18369_v0 }
  0x73   :  { %17742 = vmatprep.subr.bf16.mxu0 %v17741_v54  ;;  %17808 = vmatpush3.bf16.msra.mxu1 %v17805_v18 }
  0x74   :  { %17810 = vmatprep.subr.bf16.mxu1 %v17809_v1 }
  0x76   :  { %17744 = vmatpush1.bf16.msra.mxu0 %v17743_v2 }
  0x77   :  { %17746 = vmatprep.subr.bf16.mxu0 %v17745_v31  ;;  %17812 = vmatpush3.bf16.msra.mxu1 %v17809_v1 }
  0x78   :  { %17814 = vmatprep.subr.bf16.mxu1 %v18572_v51 }
  0x7a   :  { %17748 = vmatpush1.bf16.msra.mxu0 %v17747_v4  ;;  %16650 = vmatmul.mubr.f32.vlgmr.msra.gmra.mrb[0].mxu1 %v18552_v42 }
  0x7b   :  { %17750 = vmatprep.subr.bf16.mxu0 %v18422_v16  ;;  %17816 = vmatpush3.bf16.msra.mxu1 %v18572_v51  ;;  %v20104_v16 = vand.u32 4294901760, %v18574_v12 }
  0x7c   :  { %16668 = vmatprep.mubr.f32.mxu1 %v18497_v9  ;;  %17818 = vmatprep.subr.bf16.mxu1 %v18579_v52 }
  0x7d   :  { %661 = vmatmul.mubr.f32.vlgmr.msra.gmra.mrb[0].mxu0 %v18474_v59 }
  0x7e   :  { %17752 = vmatpush1.bf16.msra.mxu0 %v18430_v23  ;;  %666 = vmatprep.mubr.f32.mxu0 %v18369_v0  ;;  %v20105_v23 = vand.u32 4294901760, %v18581_v36 }
  0x7f   :  { %17754 = vmatprep.subr.bf16.mxu0 %v18434_v25  ;;  %17820 = vmatpush3.bf16.msra.mxu1 %v18579_v52 }
  0x80   :  { %17822 = vmatprep.subr.bf16.mxu1 %v18597_v11  ;;  %v17829_v25 = vpack.c.bf16 %v20105_v23, %v20104_v16 }
  0x81   :  { %668 = vmatmul.mubr.f32.gmra.mrb[2].mxu0 %v18547_v27 }
  0x82   :  { %17756 = vmatpush1.bf16.msra.mxu0 %v18443_v38  ;;  %754 = vmatprep.mubr.f32.mxu0 %v18369_v0  ;;  %v20106_v38 = vand.u32 4294901760, %v18585_v8 }
  0x83   :  { %17758 = vmatprep.subr.bf16.mxu0 %v18451_v44  ;;  %17824 = vmatpush3.bf16.msra.mxu1 %v18597_v11  ;;  %v20107_v44 = vand.u32 4294901760, %v18587_v6 }
  0x84   :  { %17826 = vmatprep.subr.bf16.mxu1 %v18612_v34 }
  0x85   :  { %v17833_v47 = vpack.c.bf16 %v20107_v44, %v20106_v38 }
  0x86   :  { %17760 = vmatpush1.bf16.msra.mxu0 %v18455_v46  ;;  %v20108_v46 = vand.u32 4294901760, %v18591_v32 }
  0x87   :  { %17762 = vmatprep.subr.bf16.mxu0 %v18468_v56  ;;  %17828 = vmatpush3.bf16.msra.mxu1 %v18612_v34 }
  0x88   :  { %17830 = vmatprep.subr.bf16.mxu1 %v17829_v25  ;;  %v17837_v48 = vpack.c.bf16 %v900_v35, %v20108_v46 }
  0x8a   :  { %17764 = vmatpush1.bf16.msra.mxu0 %v18476_v60  ;;  %16669 = vmatmul.mubr.f32.vlgmr.msra.gmra.mrb[0].mxu1 %v18561_v55 }
  0x8b   :  { %16739 = vmatprep.subr.mxu0 %v18369_v0  ;;  %17832 = vmatpush3.bf16.msra.mxu1 %v17829_v25 }
  0x8c   :  { %16687 = vmatprep.mubr.f32.mxu1 %v18474_v59  ;;  %17834 = vmatprep.subr.bf16.mxu1 %v17833_v47 }
  0x8d   :  { %756 = vmatmul.mubr.f32.vlgmr.msra.gmra.mrb[0].mxu0 %v18474_v59 }
  0x8e   :  { %761 = vmatprep.mubr.f32.mxu0 %v18369_v0 }
  0x8f   :  { %17836 = vmatpush3.bf16.msra.mxu1 %v17833_v47 }
  0x90   :  { %17838 = vmatprep.subr.bf16.mxu1 %v17837_v48 }
  0x91   :  { %763 = vmatmul.mubr.f32.gmra.mrb[2].mxu0 %v18547_v27 }
  0x92   :  { %16741 = vmatprep.mubr.msk.f32.mxu0 %vm18370_vm1, %v18369_v0 }
  0x93   :  { %17840 = vmatpush3.bf16.msra.mxu1 %v17837_v48 }
  0x94   :  { %17842 = vmatprep.subr.bf16.mxu1 %v17841_v50 }
  0x97   :  { %17844 = vmatpush3.bf16.msra.mxu1 %v17841_v50 }
  0x98   :  { %17846 = vmatprep.subr.bf16.mxu1 %v18572_v51 }
  0x9a   :  { %16688 = vmatmul.mubr.f32.vlgmr.msra.gmra.mrb[0].mxu1 %v18547_v27 }
  0x9b   :  { %17848 = vmatpush3.bf16.msra.mxu1 %v18572_v51  ;;  %16706 = vmatprep.mubr.f32.mxu1 %v18474_v59 }
  0x9c   :  { %17850 = vmatprep.subr.bf16.mxu1 %v18579_v52 }
  0x9f   :  { %17852 = vmatpush3.bf16.msra.mxu1 %v18579_v52 }
  0xa0   :  { %17854 = vmatprep.subr.bf16.mxu1 %v18597_v11 }
  0xa3   :  { %17856 = vmatpush3.bf16.msra.mxu1 %v18597_v11 }
  0xa4   :  { %17858 = vmatprep.subr.bf16.mxu1 %v18612_v34 }
  0xa7   :  { %17860 = vmatpush3.bf16.msra.mxu1 %v18612_v34 }
  0xa8   :  { %16709 = vmatprep.subr.mxu1 %v18369_v0 }
  0xaa   :  { %16707 = vmatmul.mubr.f32.vlgmr.msra.gmra.mrb[0].mxu1 %v18547_v27 }
  0xab   :  { %16711 = vmatprep.mubr.msk.f32.mxu1 %vm18370_vm1, %v18369_v0 }
 0x160   :  { %v18773_v56 = vpop.f32.mrb[0].mxu0 }
 0x161   :  { %v18775_v57 = vpop.f32.mrb[1].mxu0  ;;  %v1359_v58 = vsel %vm1354_vm2, %v18773_v56, 0 }
 0x162   :  { %3188 = vrot.lane.b32.xlu1 %v18775_v57, %s18371_s1  ;;  %v18781_v59 = vand.u32 4294901760, %v1359_v58  ;;  %v1356_v60 = vsel %vm1354_vm2, %v18775_v57, 0 }
 0x163   :  { %v18785_v61 = vand.u32 4294901760, %v1356_v60 }
 0x164   :  { %v18787_v7 = vpop.f32.mrb[2].mxu0  ;;  %16710 = vmatpush3.xpose.msra.mxu1 %v18781_v59  ;;  %v1439_v8 = vsub.f32 %v1359_v58, %v18781_v59 }
 0x165   :  { %v18791_v9 = vpop.f32.mrb[3].mxu0  ;;  %v1811_v36 = vsel %vm1354_vm2, %v18787_v7, 0  ;;  %16714 = vmatprep.subr.mxu1 %v18369_v0  ;;  %v1428_v52 = vsub.f32 %v1356_v60, %v18785_v61 }
 0x166   :  { %3642 = vrot.lane.b32.xlu1 %v18791_v9, %s18371_s1  ;;  %v1814_v27 = vand.u32 4294901760, %v1811_v36  ;;  %v1440_v42 = vand.u32 4294901760, %v1439_v8  ;;  %v1808_v55 = vsel %vm1354_vm2, %v18791_v9, 0 }
 0x167   :  { %v1429_v51 = vand.u32 4294901760, %v1428_v52  ;;  %v18801_v12 = vand.u32 4294901760, %v1808_v55 }
 0x168   :  { %16740 = vmatpush3.xpose.msra.mxu0 %v1814_v27  ;;  %v1891_v6 = vsub.f32 %v1811_v36, %v1814_v27  ;;  %v1441_v32 = vsub.f32 %v1439_v8, %v1440_v42 }
 0x169   :  { %v1430_v11 = vsub.f32 %v1428_v52, %v1429_v51  ;;  %16744 = vmatprep.subr.mxu0 %v18369_v0  ;;  %v1880_v34 = vsub.f32 %v1808_v55, %v18801_v12 }
 0x16a   :  { %3644 = vrot.lane.b32.xlu1 %v18787_v7, %s18371_s1  ;;  %v1442_v35 = vand.u32 4294901760, %v1441_v32  ;;  %v1892_v62 = vand.u32 4294901760, %v1891_v6 }
 0x16b   :  { %v1431_v10 = vand.u32 4294901760, %v1430_v11  ;;  %v1881_v43 = vand.u32 4294901760, %v1880_v34 }
 0x16c   :  { %v1893_v13 = vsub.f32 %v1891_v6, %v1892_v62 }
 0x16d   :  { %16712 = vmatmul.mubr.f32.vlgmr.msra.gmra.mrb[2].mxu1 %v1431_v10  ;;  %v1882_v63 = vsub.f32 %v1880_v34, %v1881_v43 }
 0x16e   :  { %16715 = vmatpush3.xpose.msra.mxu1 %v1442_v35  ;;  %v1894_v37 = vand.u32 4294901760, %v1893_v13  ;;  %16716 = vmatprep.mubr.msk.f32.mxu1 %vm18370_vm1, %v18369_v0 }
 0x16f   :  { %v1883_v14 = vand.u32 4294901760, %v1882_v63  ;;  %16719 = vmatprep.subr.mxu1 %v18369_v0 }
 0x171   :  { %16742 = vmatmul.mubr.f32.vlgmr.msra.gmra.mrb[4].mxu0 %v1883_v14 }
 0x172   :  { %16745 = vmatpush3.xpose.msra.mxu0 %v1894_v37  ;;  %16746 = vmatprep.mubr.msk.f32.mxu0 %vm18370_vm1, %v18369_v0 }
 0x173   :  { %16749 = vmatprep.subr.mxu0 %v18369_v0 }
 0x175   :  { %16717 = vmatmul.mubr.f32.vlgmr.msra.gmra.mrb[2].mxu1 %v18785_v61 }
 0x176   :  { %16720 = vmatpush3.xpose.msra.mxu1 %v1439_v8  ;;  %16721 = vmatprep.mubr.msk.f32.mxu1 %vm18370_vm1, %v18369_v0 }
 0x177   :  { %16724 = vmatprep.subr.mxu1 %v18369_v0 }
 0x179   :  { %16747 = vmatmul.mubr.f32.vlgmr.msra.gmra.mrb[4].mxu0 %v18801_v12 }
 0x17a   :  { %16750 = vmatpush3.xpose.msra.mxu0 %v1891_v6  ;;  %16751 = vmatprep.mubr.msk.f32.mxu0 %vm18370_vm1, %v18369_v0 }
 0x17b   :  { %16754 = vmatprep.subr.mxu0 %v18369_v0 }
 0x17d   :  { %16722 = vmatmul.mubr.f32.vlgmr.msra.gmra.mrb[2].mxu1 %v1428_v52  ;;  %v18824_v30 = vpop.f32.mrb[0].mxu1 }
 0x17e   :  { %16725 = vmatpush3.xpose.msra.mxu1 %v18781_v59  ;;  %16726 = vmatprep.mubr.msk.f32.mxu1 %vm18370_vm1, %v18369_v0  ;;  %v18827_v29 = vpop.f32.mrb[1].mxu1  ;;  %v18856_v49 = vand.u32 4294901760, %v18824_v30 }
 0x17f   :  { %16729 = vmatprep.subr.mxu1 %v18369_v0  ;;  %v18848_v3 = vand.u32 4294901760, %v18827_v29 }
 0x180   :  { %v2812_v23 = vsub.f32 %v18824_v30, %v18856_v49 }
 0x181   :  { %16752 = vmatmul.mubr.f32.vlgmr.msra.gmra.mrb[4].mxu0 %v1880_v34  ;;  %v2363_v31 = vsub.f32 %v18827_v29, %v18848_v3 }
 0x182   :  { %16755 = vmatpush3.xpose.msra.mxu0 %v1814_v27  ;;  %16756 = vmatprep.mubr.msk.f32.mxu0 %vm18370_vm1, %v18369_v0  ;;  %v2813_v50 = vand.u32 4294901760, %v2812_v23 }
 0x183   :  { %16759 = vmatprep.subr.mxu0 %v18369_v0  ;;  %v2364_v16 = vand.u32 4294901760, %v2363_v31 }
 0x184   :  { %v2814_v36 = vsub.f32 %v2812_v23, %v2813_v50 }
 0x185   :  { %16727 = vmatmul.mubr.f32.vlgmr.msra.gmra.mrb[2].mxu1 %v1429_v51  ;;  %v2365_v48 = vsub.f32 %v2363_v31, %v2364_v16 }
 0x186   :  { %16730 = vmatpush3.xpose.msra.mxu1 %v1440_v42  ;;  %16731 = vmatprep.mubr.msk.f32.mxu1 %vm18370_vm1, %v18369_v0  ;;  %v2815_v42 = vand.u32 4294901760, %v2814_v36 }
 0x187   :  { %16734 = vmatprep.subr.mxu1 %v18369_v0  ;;  %v2366_v8 = vand.u32 4294901760, %v2365_v48 }
 0x189   :  { %16757 = vmatmul.mubr.f32.vlgmr.msra.gmra.mrb[4].mxu0 %v1881_v43 }
 0x18a   :  { %16760 = vmatpush3.xpose.msra.mxu0 %v1892_v62  ;;  %16761 = vmatprep.mubr.msk.f32.mxu0 %vm18370_vm1, %v18369_v0 }
 0x18b   :  { %16764 = vmatprep.subr.mxu0 %v18369_v0 }
 0x18d   :  { %16732 = vmatmul.mubr.f32.vlgmr.msra.gmra.mrb[2].mxu1 %v18785_v61 }
 0x18e   :  { %16735 = vmatpush3.xpose.msra.mxu1 %v18781_v59  ;;  %16736 = vmatprep.mubr.msk.f32.mxu1 %vm18370_vm1, %v18369_v0 }
 0x18f   :  { %16769 = vmatprep.subr.mxu1 %v18369_v0 }
 0x191   :  { %16762 = vmatmul.mubr.f32.vlgmr.msra.gmra.mrb[4].mxu0 %v18801_v12 }
 0x192   :  { %16765 = vmatpush3.xpose.msra.mxu0 %v1814_v27  ;;  %16766 = vmatprep.mubr.msk.f32.mxu0 %vm18370_vm1, %v18369_v0 }
 0x193   :  { %16799 = vmatprep.subr.mxu0 %v18369_v0 }
 0x195   :  { %16737 = vmatmul.mubr.f32.vlgmr.msra.gmra.mrb[2].mxu1 %v18785_v61 }
 0x196   :  { %16770 = vmatpush3.msra.mxu1 %v18848_v3  ;;  %16771 = vmatprep.mubr.msk.f32.mxu1 %vm18370_vm1, %v18369_v0 }
 0x197   :  { %16774 = vmatprep.subr.mxu1 %v18369_v0 }
 0x199   :  { %16767 = vmatmul.mubr.f32.vlgmr.msra.gmra.mrb[4].mxu0 %v18801_v12 }
 0x19a   :  { %16800 = vmatpush3.msra.mxu0 %v18856_v49  ;;  %16801 = vmatprep.mubr.msk.f32.mxu0 %vm18370_vm1, %v18369_v0 }
 0x19b   :  { %16804 = vmatprep.subr.mxu0 %v18369_v0 }
 0x1d4   :  { %v3189_v55 = vpop.permute.xlu1 %3188 }
 0x1d5   :  { %v3192_v6 = vsel %vm1354_vm2, %v3189_v55, 0 }
 0x1d6   :  { %v18919_v34 = vand.u32 4294901760, %v3192_v6 }
 0x1d8   :  { %v3643_v51 = vpop.permute.xlu1 %3642  ;;  %v3263_v43 = vsub.f32 %v3192_v6, %v18919_v34 }
 0x1d9   :  { %v3646_v35 = vsel %vm1354_vm2, %v3643_v51, 0 }
 0x1da   :  { %v18929_v13 = vand.u32 4294901760, %v3646_v35  ;;  %v3264_v14 = vand.u32 4294901760, %v3263_v43 }
 0x1dc   :  { %v3645_v11 = vpop.permute.xlu1 %3644  ;;  %v3717_v33 = vsub.f32 %v3646_v35, %v18929_v13 }
 0x1dd   :  { %v3648_v10 = vsel %vm1354_vm2, %v3645_v11, 0 }
 0x1de   :  { %v18932_v63 = vand.u32 4294901760, %v3648_v10 }
 0x1e0   :  { %v3728_v5 = vsub.f32 %v3648_v10, %v18932_v63 }
 0x268   :  { %v1803_v22 = vpop.f32.mrb[2].mxu1 }
 0x269   :  { %v2261_v18 = vsel %vm18863_vm3, %v1803_v22, -inf  ;;  %v16738_v19 = vpop.f32.mrb[3].mxu1  ;;  %v3265_v22 = vsub.f32 %v3263_v43, %v3264_v14 }
 0x26a   :  { %v2264_v24 = vsel %vm2263_vm4, %v2261_v18, -inf }
 0x26b   :  { %2265 = vmax.xlane.f32.xlu0 %v2264_v24  ;;  %v3266_v24 = vand.u32 4294901760, %v3265_v22 }
 0x26c   :  { %v2255_v26 = vpop.f32.mrb[4].mxu0 }
 0x26d   :  { %v2262_v28 = vsel %vm18863_vm3, %v2255_v26, -inf  ;;  %v16768_v53 = vpop.f32.mrb[5].mxu0 }
 0x26e   :  { %v2267_v54 = vsel %vm2263_vm4, %v2262_v28, -inf }
 0x26f   :  { %2268 = vmax.xlane.f32.xlu0 %v2267_v54 }
 0x285   :  { %3190 = vrot.lane.b32.xlu0 %v18773_v56, %s18371_s1 }
 0x2f8   :  { %v2266_v1 = vpop.xlane.xlu0 %2265 }
 0x2f9   :  { %v2270_v39 = vsub.f32 %v2261_v18, %v2266_v1  ;;  %v3729_v18 = vand.u32 4294901760, %v3728_v5 }
 0x2fb   :  { %v2272_v40 = vmul.f32 1.442695, %v2270_v39 }
 0x2fc   :  { %v2269_v2 = vpop.xlane.xlu0 %2268 }
 0x2fd   :  { %18227 = vpow2.f32 %v2272_v40  ;;  %v2271_v41 = vsub.f32 %v2262_v28, %v2269_v2 }
 0x2ff   :  { %v2274_v45 = vmul.f32 1.442695, %v2271_v41 }
 0x300   :  { %v3191_v12 = vpop.permute.xlu0 %3190 }
 0x301   :  { %18229 = vpow2.f32 %v2274_v45  ;;  %v3194_v32 = vsel %vm1354_vm2, %v3191_v12, 0 }
 0x302   :  { %v18923_v62 = vand.u32 4294901760, %v3194_v32 }
 0x304   :  { %v3274_v37 = vsub.f32 %v3194_v32, %v18923_v62 }
 0x306   :  { %v3275_v21 = vand.u32 4294901760, %v3274_v37 }
 0x307   :  { %v18877_v15 = vpop.eup %18227 }
 0x308   :  { %v2283_v20 = vsel %vm2263_vm4, %v18877_v15, 0  ;;  %v3276_v19 = vsub.f32 %v3274_v37, %v3275_v21 }
 0x309   :  { %v18881_v4 = vand.u32 4294901760, %v2283_v20 }
 0x30a   :  { %v3277_v28 = vand.u32 4294901760, %v3276_v19 }
 0x30b   :  { %v18885_v25 = vpop.eup %18229  ;;  %v2352_v38 = vsub.f32 %v2283_v20, %v18881_v4 }
 0x30c   :  { %v2732_v44 = vsel %vm2263_vm4, %v18885_v25, 0 }
 0x30d   :  { %v18890_v47 = vand.u32 4294901760, %v2732_v44  ;;  %v2353_v46 = vand.u32 4294901760, %v2352_v38 }
 0x30f   :  { %v2354_v58 = vsub.f32 %v2352_v38, %v2353_v46  ;;  %v2801_v59 = vsub.f32 %v2732_v44, %v18890_v47 }
 0x311   :  { %v2355_v60 = vand.u32 4294901760, %v2354_v58  ;;  %v2802_v61 = vand.u32 4294901760, %v2801_v59 }
 0x313   :  { %16772 = vmatmul.mubr.f32.vlgmr.msra.gmra.mrb[4].mxu1 %v2355_v60  ;;  %v2803_v52 = vsub.f32 %v2801_v59, %v2802_v61 }
 0x314   :  { %16775 = vmatpush3.msra.mxu1 %v2366_v8  ;;  %16776 = vmatprep.mubr.msk.f32.mxu1 %vm18370_vm1, %v18369_v0 }
 0x315   :  { %v2804_v27 = vand.u32 4294901760, %v2803_v52  ;;  %16779 = vmatprep.subr.mxu1 %v18369_v0 }
 0x317   :  { %16802 = vmatmul.mubr.f32.vlgmr.msra.gmra.mrb[6].mxu0 %v2804_v27 }
 0x318   :  { %16805 = vmatpush3.msra.mxu0 %v2815_v42  ;;  %16806 = vmatprep.mubr.msk.f32.mxu0 %vm18370_vm1, %v18369_v0 }
 0x319   :  { %16809 = vmatprep.subr.mxu0 %v18369_v0 }
 0x31b   :  { %16777 = vmatmul.mubr.f32.vlgmr.msra.gmra.mrb[4].mxu1 %v18881_v4 }
 0x31c   :  { %16780 = vmatpush3.msra.mxu1 %v2363_v31  ;;  %16781 = vmatprep.mubr.msk.f32.mxu1 %vm18370_vm1, %v18369_v0 }
 0x31d   :  { %16784 = vmatprep.subr.mxu1 %v18369_v0 }
 0x31f   :  { %16807 = vmatmul.mubr.f32.vlgmr.msra.gmra.mrb[6].mxu0 %v18890_v47 }
 0x320   :  { %16810 = vmatpush3.msra.mxu0 %v2812_v23  ;;  %16811 = vmatprep.mubr.msk.f32.mxu0 %vm18370_vm1, %v18369_v0 }
 0x321   :  { %16814 = vmatprep.subr.mxu0 %v18369_v0 }
 0x323   :  { %16782 = vmatmul.mubr.f32.vlgmr.msra.gmra.mrb[4].mxu1 %v2352_v38 }
 0x324   :  { %16785 = vmatpush3.msra.mxu1 %v18848_v3  ;;  %16786 = vmatprep.mubr.msk.f32.mxu1 %vm18370_vm1, %v18369_v0 }
 0x325   :  { %16789 = vmatprep.subr.mxu1 %v18369_v0 }
 0x327   :  { %16812 = vmatmul.mubr.f32.vlgmr.msra.gmra.mrb[6].mxu0 %v2801_v59 }
 0x328   :  { %16815 = vmatpush3.msra.mxu0 %v18856_v49  ;;  %16816 = vmatprep.mubr.msk.f32.mxu0 %vm18370_vm1, %v18369_v0 }
 0x329   :  { %16819 = vmatprep.subr.mxu0 %v18369_v0 }
 0x32b   :  { %16787 = vmatmul.mubr.f32.vlgmr.msra.gmra.mrb[4].mxu1 %v2353_v46 }
 0x32c   :  { %16790 = vmatpush3.msra.mxu1 %v2364_v16  ;;  %16791 = vmatprep.mubr.msk.f32.mxu1 %vm18370_vm1, %v18369_v0 }
 0x32d   :  { %16794 = vmatprep.subr.mxu1 %v18369_v0 }
 0x32f   :  { %16817 = vmatmul.mubr.f32.vlgmr.msra.gmra.mrb[6].mxu0 %v2802_v61 }
 0x330   :  { %16820 = vmatpush3.msra.mxu0 %v2813_v50  ;;  %16821 = vmatprep.mubr.msk.f32.mxu0 %vm18370_vm1, %v18369_v0 }
 0x331   :  { %16824 = vmatprep.subr.mxu0 %v18369_v0 }
 0x333   :  { %16792 = vmatmul.mubr.f32.vlgmr.msra.gmra.mrb[4].mxu1 %v18881_v4 }
 0x334   :  { %16795 = vmatpush3.msra.mxu1 %v18848_v3  ;;  %16796 = vmatprep.mubr.msk.f32.mxu1 %vm18370_vm1, %v18369_v0  ;;  %v3718_v3 = vand.u32 4294901760, %v3717_v33 }
 0x335   :  { %16829 = vmatprep.subr.mxu1 %v18369_v0 }
 0x336   :  { %v3719_v26 = vsub.f32 %v3717_v33, %v3718_v3 }
 0x337   :  { %16822 = vmatmul.mubr.f32.vlgmr.msra.gmra.mrb[6].mxu0 %v18890_v47 }
 0x338   :  { %16825 = vmatpush3.msra.mxu0 %v18856_v49  ;;  %16826 = vmatprep.mubr.msk.f32.mxu0 %vm18370_vm1, %v18369_v0  ;;  %v3730_v49 = vsub.f32 %v3728_v5, %v3729_v18  ;;  %v3720_v53 = vand.u32 4294901760, %v3719_v26 }
 0x339   :  { %16859 = vmatprep.subr.mxu0 %v18369_v0 }
 0x33a   :  { %v3731_v54 = vand.u32 4294901760, %v3730_v49 }
 0x33b   :  { %16797 = vmatmul.mubr.f32.vlgmr.msra.gmra.mrb[4].mxu1 %v18881_v4 }
 0x33c   :  { %16830 = vmatpush3.xpose.msra.mxu1 %v18923_v62  ;;  %16831 = vmatprep.mubr.msk.f32.mxu1 %vm18370_vm1, %v18369_v0 }
 0x33d   :  { %16834 = vmatprep.subr.mxu1 %v18369_v0 }
 0x33f   :  { %16827 = vmatmul.mubr.f32.vlgmr.msra.gmra.mrb[6].mxu0 %v18890_v47  ;;  %16832 = vmatmul.mubr.f32.vlgmr.msra.gmra.mrb[6].mxu1 %v3266_v24 }
 0x340   :  { %16835 = vmatpush3.xpose.msra.mxu1 %v3277_v28  ;;  %16860 = vmatpush3.xpose.msra.mxu0 %v18932_v63 }
 0x341   :  { %16861 = vmatprep.mubr.msk.f32.mxu0 %vm18370_vm1, %v18369_v0  ;;  %16864 = vmatprep.subr.mxu0 %v18369_v0 }
 0x342   :  { %16836 = vmatprep.mubr.msk.f32.mxu1 %vm18370_vm1, %v18369_v0  ;;  %16839 = vmatprep.subr.mxu1 %v18369_v0 }
 0x343   :  { %16862 = vmatmul.mubr.f32.vlgmr.msra.gmra.mrb[8].mxu0 %v3720_v53 }
 0x344   :  { %16865 = vmatpush3.xpose.msra.mxu0 %v3731_v54  ;;  %16866 = vmatprep.mubr.msk.f32.mxu0 %vm18370_vm1, %v18369_v0 }
 0x345   :  { %16869 = vmatprep.subr.mxu0 %v18369_v0 }
 0x347   :  { %16837 = vmatmul.mubr.f32.vlgmr.msra.gmra.mrb[6].mxu1 %v18919_v34 }
 0x348   :  { %16840 = vmatpush3.xpose.msra.mxu1 %v3274_v37  ;;  %16841 = vmatprep.mubr.msk.f32.mxu1 %vm18370_vm1, %v18369_v0 }
 0x349   :  { %16844 = vmatprep.subr.mxu1 %v18369_v0 }
 0x34b   :  { %16867 = vmatmul.mubr.f32.vlgmr.msra.gmra.mrb[8].mxu0 %v18929_v13 }
 0x34c   :  { %16870 = vmatpush3.xpose.msra.mxu0 %v3728_v5  ;;  %16871 = vmatprep.mubr.msk.f32.mxu0 %vm18370_vm1, %v18369_v0 }
 0x34d   :  { %16874 = vmatprep.subr.mxu0 %v18369_v0 }
 0x34f   :  { %16842 = vmatmul.mubr.f32.vlgmr.msra.gmra.mrb[6].mxu1 %v3263_v43 }
 0x350   :  { %16845 = vmatpush3.xpose.msra.mxu1 %v18923_v62  ;;  %16846 = vmatprep.mubr.msk.f32.mxu1 %vm18370_vm1, %v18369_v0 }
 0x351   :  { %16849 = vmatprep.subr.mxu1 %v18369_v0 }
 0x353   :  { %16872 = vmatmul.mubr.f32.vlgmr.msra.gmra.mrb[8].mxu0 %v3717_v33 }
 0x354   :  { %16875 = vmatpush3.xpose.msra.mxu0 %v18932_v63  ;;  %16876 = vmatprep.mubr.msk.f32.mxu0 %vm18370_vm1, %v18369_v0 }
 0x355   :  { %16879 = vmatprep.subr.mxu0 %v18369_v0 }
 0x357   :  { %16847 = vmatmul.mubr.f32.vlgmr.msra.gmra.mrb[6].mxu1 %v3264_v14 }
 0x358   :  { %16850 = vmatpush3.xpose.msra.mxu1 %v3275_v21  ;;  %16851 = vmatprep.mubr.msk.f32.mxu1 %vm18370_vm1, %v18369_v0 }
 0x359   :  { %16854 = vmatprep.subr.mxu1 %v18369_v0 }
 0x35b   :  { %16877 = vmatmul.mubr.f32.vlgmr.msra.gmra.mrb[8].mxu0 %v3718_v3 }
 0x35c   :  { %16880 = vmatpush3.xpose.msra.mxu0 %v3729_v18  ;;  %16881 = vmatprep.mubr.msk.f32.mxu0 %vm18370_vm1, %v18369_v0 }
 0x35d   :  { %16884 = vmatprep.subr.mxu0 %v18369_v0 }
 0x35f   :  { %16852 = vmatmul.mubr.f32.vlgmr.msra.gmra.mrb[6].mxu1 %v18919_v34 }
 0x360   :  { %16855 = vmatpush3.xpose.msra.mxu1 %v18923_v62  ;;  %16856 = vmatprep.mubr.msk.f32.mxu1 %vm18370_vm1, %v18369_v0 }
 0x361   :  { %16889 = vmatprep.subr.mxu1 %v18369_v0 }
 0x363   :  { %16882 = vmatmul.mubr.f32.vlgmr.msra.gmra.mrb[8].mxu0 %v18929_v13 }
 0x364   :  { %16885 = vmatpush3.xpose.msra.mxu0 %v18932_v63  ;;  %16886 = vmatprep.mubr.msk.f32.mxu0 %vm18370_vm1, %v18369_v0 }
 0x365   :  { %16919 = vmatprep.subr.mxu0 %v18369_v0 }
 0x367   :  { %16857 = vmatmul.mubr.f32.vlgmr.msra.gmra.mrb[6].mxu1 %v18919_v34 }
 0x368   :  { %16891 = vmatprep.mubr.msk.f32.mxu1 %vm18370_vm1, %v18369_v0 }
 0x36b   :  { %16887 = vmatmul.mubr.f32.vlgmr.msra.gmra.mrb[8].mxu0 %v18929_v13 }
 0x36c   :  { %16921 = vmatprep.mubr.msk.f32.mxu0 %vm18370_vm1, %v18369_v0 }
 0x40e   :  { %v19001_v1 = vpop.f32.mrb[4].mxu1 }
 0x40f   :  { %v16798_v39 = vpop.f32.mrb[5].mxu1 }
 0x412   :  { %v19003_v40 = vpop.f32.mrb[6].mxu0 }
 0x413   :  { %v16828_v2 = vpop.f32.mrb[7].mxu0 }
 0x43a   :  { %v3638_v41 = vpop.f32.mrb[6].mxu1 }
 0x43b   :  { %v4096_v45 = vsel %vm18863_vm3, %v3638_v41, -inf  ;;  %v16858_v31 = vpop.f32.mrb[7].mxu1 }
 0x43c   :  { %v4098_v20 = vsel %vm2263_vm4, %v4096_v45, -inf }
 0x43d   :  { %4099 = vmax.xlane.f32.xlu1 %v4098_v20 }
 0x43e   :  { %v4092_v4 = vpop.f32.mrb[8].mxu0 }
 0x43f   :  { %v4097_v16 = vsel %vm18863_vm3, %v4092_v4, -inf  ;;  %v16888_v23 = vpop.f32.mrb[9].mxu0 }
 0x440   :  { %v4101_v38 = vsel %vm2263_vm4, %v4097_v16, -inf }
 0x441   :  { %4102 = vmax.xlane.f32.xlu0 %v4101_v38 }
 0x44e   :  { %4117 = vrot.lane.b32.xlu1 %v18827_v29, %s18371_s1 }
 0x452   :  { %5039 = vrot.lane.b32.xlu1 %v18775_v57, %s18372_s8 }
 0x456   :  { %5493 = vrot.lane.b32.xlu1 %v18791_v9, %s18372_s8 }
 0x457   :  { %4570 = vrot.lane.b32.xlu0 %v18824_v30, %s18371_s1 }
 0x45a   :  { %5041 = vrot.lane.b32.xlu1 %v18773_v56, %s18372_s8 }
 0x45e   :  { %5495 = vrot.lane.b32.xlu1 %v18787_v7, %s18372_s8 }
 0x4ca   :  { %v4100_v44 = vpop.xlane.xlu1 %4099 }
 0x4cb   :  { %v4104_v47 = vsub.f32 %v4096_v45, %v4100_v44 }
 0x4cd   :  { %v4106_v46 = vmul.f32 1.442695, %v4104_v47 }
 0x4ce   :  { %v4118_v48 = vpop.permute.xlu1 %4117  ;;  %v4103_v50 = vpop.xlane.xlu0 %4102 }
 0x4cf   :  { %18231 = vpow2.f32 %v4106_v46  ;;  %v19023_v58 = vand.u32 4294901760, %v4118_v48  ;;  %v4105_v59 = vsub.f32 %v4097_v16, %v4103_v50 }
 0x4d1   :  { %v4108_v60 = vmul.f32 1.442695, %v4105_v59  ;;  %16890 = vmatpush3.msra.mxu1 %v19023_v58  ;;  %v4201_v36 = vsub.f32 %v4118_v48, %v19023_v58 }
 0x4d2   :  { %v4571_v61 = vpop.permute.xlu0 %4570  ;;  %16894 = vmatprep.subr.mxu1 %v18369_v0  ;;  %v5040_v22 = vpop.permute.xlu1 %5039 }
 0x4d3   :  { %18233 = vpow2.f32 %v4108_v60  ;;  %v19027_v8 = vand.u32 4294901760, %v4571_v61  ;;  %v4202_v55 = vand.u32 4294901760, %v4201_v36  ;;  %v5043_v19 = vsel %vm1354_vm2, %v5040_v22, 0 }
 0x4d4   :  { %v19073_v49 = vand.u32 4294901760, %v5043_v19 }
 0x4d5   :  { %16920 = vmatpush3.msra.mxu0 %v19027_v8  ;;  %v4654_v51 = vsub.f32 %v4571_v61, %v19027_v8  ;;  %v4203_v35 = vsub.f32 %v4201_v36, %v4202_v55 }
 0x4d6   :  { %16924 = vmatprep.subr.mxu0 %v18369_v0  ;;  %v5494_v3 = vpop.permute.xlu1 %5493  ;;  %v5114_v39 = vsub.f32 %v5043_v19, %v19073_v49 }
 0x4d7   :  { %v4655_v62 = vand.u32 4294901760, %v4654_v51  ;;  %v4204_v37 = vand.u32 4294901760, %v4203_v35  ;;  %v5497_v28 = vsel %vm1354_vm2, %v5494_v3, 0 }
 0x4d8   :  { %v19083_v2 = vand.u32 4294901760, %v5497_v28  ;;  %v5115_v31 = vand.u32 4294901760, %v5114_v39 }
 0x4d9   :  { %v19032_v52 = vpop.eup %18231  ;;  %v4656_v14 = vsub.f32 %v4654_v51, %v4655_v62 }
 0x4da   :  { %v4121_v27 = vsel %vm2263_vm4, %v19032_v52, 0  ;;  %v5042_v18 = vpop.permute.xlu1 %5041  ;;  %v5568_v20 = vsub.f32 %v5497_v28, %v19083_v2  ;;  %v5116_v23 = vsub.f32 %v5114_v39, %v5115_v31 }
 0x4db   :  { %v19036_v42 = vand.u32 4294901760, %v4121_v27  ;;  %v4657_v21 = vand.u32 4294901760, %v4656_v14  ;;  %v5045_v24 = vsel %vm1354_vm2, %v5042_v18, 0 }
 0x4dc   :  { %v19077_v53 = vand.u32 4294901760, %v5045_v24  ;;  %v5569_v38 = vand.u32 4294901760, %v5568_v20  ;;  %v5117_v46 = vand.u32 4294901760, %v5116_v23 }
 0x4dd   :  { %v19039_v12 = vpop.eup %18233  ;;  %v4190_v6 = vsub.f32 %v4121_v27, %v19036_v42 }
 0x4de   :  { %v4574_v32 = vsel %vm2263_vm4, %v19039_v12, 0  ;;  %v5496_v26 = vpop.permute.xlu1 %5495  ;;  %v5125_v41 = vsub.f32 %v5045_v24, %v19077_v53  ;;  %v5570_v48 = vsub.f32 %v5568_v20, %v5569_v38  ;;  %v4113_v17 = vsel %vm2263_vm4, %v19039_v12, 0.0 }
 0x4df   :  { %v19044_v11 = vand.u32 4294901760, %v4574_v32  ;;  %v4191_v34 = vand.u32 4294901760, %v4190_v6  ;;  %v5499_v54 = vsel %vm1354_vm2, %v5496_v26, 0 }
 0x4e0   :  { %v19087_v45 = vand.u32 4294901760, %v5499_v54  ;;  %v5126_v4 = vand.u32 4294901760, %v5125_v41  ;;  %v5571_v59 = vand.u32 4294901760, %v5570_v48 }
 0x4e1   :  { %v4192_v10 = vsub.f32 %v4190_v6, %v4191_v34  ;;  %v4643_v43 = vsub.f32 %v4574_v32, %v19044_v11 }
 0x4e2   :  { %v5579_v16 = vsub.f32 %v5499_v54, %v19087_v45  ;;  %v5127_v44 = vsub.f32 %v5125_v41, %v5126_v4 }
 0x4e3   :  { %v4193_v13 = vand.u32 4294901760, %v4192_v10  ;;  %v4644_v63 = vand.u32 4294901760, %v4643_v43 }
 0x4e4   :  { %v5580_v47 = vand.u32 4294901760, %v5579_v16  ;;  %v5128_v50 = vand.u32 4294901760, %v5127_v44 }
 0x4e5   :  { %16892 = vmatmul.mubr.f32.vlgmr.msra.gmra.mrb[8].mxu1 %v4193_v13  ;;  %v4645_v33 = vsub.f32 %v4643_v43, %v4644_v63 }
 0x4e6   :  { %16895 = vmatpush3.msra.mxu1 %v4204_v37  ;;  %16896 = vmatprep.mubr.msk.f32.mxu1 %vm18370_vm1, %v18369_v0 }
 0x4e7   :  { %v4646_v5 = vand.u32 4294901760, %v4645_v33  ;;  %16899 = vmatprep.subr.mxu1 %v18369_v0 }
 0x4e9   :  { %16922 = vmatmul.mubr.f32.vlgmr.msra.gmra.mrb[10].mxu0 %v4646_v5 }
 0x4ea   :  { %16925 = vmatpush3.msra.mxu0 %v4657_v21  ;;  %16926 = vmatprep.mubr.msk.f32.mxu0 %vm18370_vm1, %v18369_v0 }
 0x4eb   :  { %16929 = vmatprep.subr.mxu0 %v18369_v0 }
 0x4ed   :  { %16897 = vmatmul.mubr.f32.vlgmr.msra.gmra.mrb[8].mxu1 %v19036_v42 }
 0x4ee   :  { %16900 = vmatpush3.msra.mxu1 %v4201_v36  ;;  %16901 = vmatprep.mubr.msk.f32.mxu1 %vm18370_vm1, %v18369_v0 }
 0x4ef   :  { %16904 = vmatprep.subr.mxu1 %v18369_v0 }
 0x4f1   :  { %16927 = vmatmul.mubr.f32.vlgmr.msra.gmra.mrb[10].mxu0 %v19044_v11 }
 0x4f2   :  { %16930 = vmatpush3.msra.mxu0 %v4654_v51  ;;  %16931 = vmatprep.mubr.msk.f32.mxu0 %vm18370_vm1, %v18369_v0 }
 0x4f3   :  { %16934 = vmatprep.subr.mxu0 %v18369_v0 }
 0x4f5   :  { %16902 = vmatmul.mubr.f32.vlgmr.msra.gmra.mrb[8].mxu1 %v4190_v6 }
 0x4f6   :  { %16905 = vmatpush3.msra.mxu1 %v19023_v58  ;;  %16906 = vmatprep.mubr.msk.f32.mxu1 %vm18370_vm1, %v18369_v0 }
 0x4f7   :  { %16909 = vmatprep.subr.mxu1 %v18369_v0 }
 0x4f9   :  { %16932 = vmatmul.mubr.f32.vlgmr.msra.gmra.mrb[10].mxu0 %v4643_v43 }
 0x4fa   :  { %16935 = vmatpush3.msra.mxu0 %v19027_v8  ;;  %16936 = vmatprep.mubr.msk.f32.mxu0 %vm18370_vm1, %v18369_v0 }
 0x4fb   :  { %16939 = vmatprep.subr.mxu0 %v18369_v0 }
 0x4fd   :  { %16907 = vmatmul.mubr.f32.vlgmr.msra.gmra.mrb[8].mxu1 %v4191_v34 }
 0x4fe   :  { %16910 = vmatpush3.msra.mxu1 %v4202_v55  ;;  %16911 = vmatprep.mubr.msk.f32.mxu1 %vm18370_vm1, %v18369_v0 }
 0x4ff   :  { %16914 = vmatprep.subr.mxu1 %v18369_v0 }
 0x501   :  { %16937 = vmatmul.mubr.f32.vlgmr.msra.gmra.mrb[10].mxu0 %v4644_v63 }
 0x502   :  { %16940 = vmatpush3.msra.mxu0 %v4655_v62  ;;  %16941 = vmatprep.mubr.msk.f32.mxu0 %vm18370_vm1, %v18369_v0 }
 0x503   :  { %16944 = vmatprep.subr.mxu0 %v18369_v0 }
 0x505   :  { %16912 = vmatmul.mubr.f32.vlgmr.msra.gmra.mrb[8].mxu1 %v19036_v42 }
 0x506   :  { %16915 = vmatpush3.msra.mxu1 %v19023_v58  ;;  %16916 = vmatprep.mubr.msk.f32.mxu1 %vm18370_vm1, %v18369_v0  ;;  %v5581_v58 = vsub.f32 %v5579_v16, %v5580_v47 }
 0x507   :  { %16949 = vmatprep.subr.mxu1 %v18369_v0 }
 0x508   :  { %v5582_v60 = vand.u32 4294901760, %v5581_v58 }
 0x509   :  { %16942 = vmatmul.mubr.f32.vlgmr.msra.gmra.mrb[10].mxu0 %v19044_v11 }
 0x50a   :  { %16945 = vmatpush3.msra.mxu0 %v19027_v8  ;;  %16946 = vmatprep.mubr.msk.f32.mxu0 %vm18370_vm1, %v18369_v0 }
 0x50b   :  { %16979 = vmatprep.subr.mxu0 %v18369_v0 }
 0x50d   :  { %16917 = vmatmul.mubr.f32.vlgmr.msra.gmra.mrb[8].mxu1 %v19036_v42 }
 0x50e   :  { %16950 = vmatpush3.xpose.msra.mxu1 %v19077_v53  ;;  %16951 = vmatprep.mubr.msk.f32.mxu1 %vm18370_vm1, %v18369_v0 }
 0x50f   :  { %16954 = vmatprep.subr.mxu1 %v18369_v0 }
 0x511   :  { %16947 = vmatmul.mubr.f32.vlgmr.msra.gmra.mrb[10].mxu0 %v19044_v11  ;;  %16952 = vmatmul.mubr.f32.vlgmr.msra.gmra.mrb[10].mxu1 %v5117_v46 }
 0x512   :  { %16955 = vmatpush3.xpose.msra.mxu1 %v5128_v50  ;;  %16980 = vmatpush3.xpose.msra.mxu0 %v19087_v45 }
 0x513   :  { %16981 = vmatprep.mubr.msk.f32.mxu0 %vm18370_vm1, %v18369_v0  ;;  %16984 = vmatprep.subr.mxu0 %v18369_v0 }
 0x514   :  { %16956 = vmatprep.mubr.msk.f32.mxu1 %vm18370_vm1, %v18369_v0  ;;  %16959 = vmatprep.subr.mxu1 %v18369_v0 }
 0x515   :  { %16982 = vmatmul.mubr.f32.vlgmr.msra.gmra.mrb[12].mxu0 %v5571_v59 }
 0x516   :  { %16985 = vmatpush3.xpose.msra.mxu0 %v5582_v60  ;;  %16986 = vmatprep.mubr.msk.f32.mxu0 %vm18370_vm1, %v18369_v0 }
 0x517   :  { %16989 = vmatprep.subr.mxu0 %v18369_v0 }
 0x519   :  { %16957 = vmatmul.mubr.f32.vlgmr.msra.gmra.mrb[10].mxu1 %v19073_v49 }
 0x51a   :  { %16960 = vmatpush3.xpose.msra.mxu1 %v5125_v41  ;;  %16961 = vmatprep.mubr.msk.f32.mxu1 %vm18370_vm1, %v18369_v0 }
 0x51b   :  { %16964 = vmatprep.subr.mxu1 %v18369_v0 }
 0x51d   :  { %16987 = vmatmul.mubr.f32.vlgmr.msra.gmra.mrb[12].mxu0 %v19083_v2 }
 0x51e   :  { %16990 = vmatpush3.xpose.msra.mxu0 %v5579_v16  ;;  %16991 = vmatprep.mubr.msk.f32.mxu0 %vm18370_vm1, %v18369_v0 }
 0x51f   :  { %16994 = vmatprep.subr.mxu0 %v18369_v0 }
 0x521   :  { %16962 = vmatmul.mubr.f32.vlgmr.msra.gmra.mrb[10].mxu1 %v5114_v39 }
 0x522   :  { %16965 = vmatpush3.xpose.msra.mxu1 %v19077_v53  ;;  %16966 = vmatprep.mubr.msk.f32.mxu1 %vm18370_vm1, %v18369_v0 }
 0x523   :  { %16969 = vmatprep.subr.mxu1 %v18369_v0 }
 0x525   :  { %16992 = vmatmul.mubr.f32.vlgmr.msra.gmra.mrb[12].mxu0 %v5568_v20 }
 0x526   :  { %16995 = vmatpush3.xpose.msra.mxu0 %v19087_v45  ;;  %16996 = vmatprep.mubr.msk.f32.mxu0 %vm18370_vm1, %v18369_v0 }
 0x527   :  { %16999 = vmatprep.subr.mxu0 %v18369_v0 }
 0x529   :  { %16967 = vmatmul.mubr.f32.vlgmr.msra.gmra.mrb[10].mxu1 %v5115_v31 }
 0x52a   :  { %16970 = vmatpush3.xpose.msra.mxu1 %v5126_v4  ;;  %16971 = vmatprep.mubr.msk.f32.mxu1 %vm18370_vm1, %v18369_v0 }
 0x52b   :  { %16974 = vmatprep.subr.mxu1 %v18369_v0 }
 0x52d   :  { %16997 = vmatmul.mubr.f32.vlgmr.msra.gmra.mrb[12].mxu0 %v5569_v38 }
 0x52e   :  { %17000 = vmatpush3.xpose.msra.mxu0 %v5580_v47  ;;  %17001 = vmatprep.mubr.msk.f32.mxu0 %vm18370_vm1, %v18369_v0 }
 0x52f   :  { %17004 = vmatprep.subr.mxu0 %v18369_v0 }
 0x531   :  { %16972 = vmatmul.mubr.f32.vlgmr.msra.gmra.mrb[10].mxu1 %v19073_v49 }
 0x532   :  { %16975 = vmatpush3.xpose.msra.mxu1 %v19077_v53  ;;  %16976 = vmatprep.mubr.msk.f32.mxu1 %vm18370_vm1, %v18369_v0 }
 0x533   :  { %17009 = vmatprep.subr.mxu1 %v18369_v0 }
 0x535   :  { %17002 = vmatmul.mubr.f32.vlgmr.msra.gmra.mrb[12].mxu0 %v19083_v2 }
 0x536   :  { %17005 = vmatpush3.xpose.msra.mxu0 %v19087_v45  ;;  %17006 = vmatprep.mubr.msk.f32.mxu0 %vm18370_vm1, %v18369_v0 }
 0x537   :  { %17039 = vmatprep.subr.mxu0 %v18369_v0 }
 0x539   :  { %16977 = vmatmul.mubr.f32.vlgmr.msra.gmra.mrb[10].mxu1 %v19073_v49 }
 0x53a   :  { %17011 = vmatprep.mubr.msk.f32.mxu1 %vm18370_vm1, %v18369_v0 }
 0x53d   :  { %17007 = vmatmul.mubr.f32.vlgmr.msra.gmra.mrb[12].mxu0 %v19083_v2 }
 0x53e   :  { %17041 = vmatprep.mubr.msk.f32.mxu0 %vm18370_vm1, %v18369_v0 }
 0x5e0   :  { %v19155_v61 = vpop.f32.mrb[8].mxu1 }
 0x5e1   :  { %v16918_v8 = vpop.f32.mrb[9].mxu1 }
 0x5e4   :  { %v19157_v36 = vpop.f32.mrb[10].mxu0 }
 0x5e5   :  { %v16948_v27 = vpop.f32.mrb[11].mxu0 }
 0x60c   :  { %v5489_v42 = vpop.f32.mrb[10].mxu1 }
 0x60d   :  { %v5947_v55 = vsel %vm18863_vm3, %v5489_v42, -inf  ;;  %v16978_v51 = vpop.f32.mrb[11].mxu1 }
 0x60e   :  { %v5949_v6 = vsel %vm2263_vm4, %v5947_v55, -inf }
 0x60f   :  { %5950 = vmax.xlane.f32.xlu1 %v5949_v6 }
 0x610   :  { %v5943_v32 = vpop.f32.mrb[12].mxu0 }
 0x611   :  { %v5948_v11 = vsel %vm18863_vm3, %v5943_v32, -inf  ;;  %v17008_v34 = vpop.f32.mrb[13].mxu0 }
 0x612   :  { %v5952_v35 = vsel %vm2263_vm4, %v5948_v11, -inf }
 0x613   :  { %5953 = vmax.xlane.f32.xlu0 %v5952_v35 }
 0x620   :  { %6419 = vrot.lane.b32.xlu1 %v18824_v30, %s18372_s8 }
 0x624   :  { %6888 = vrot.lane.b32.xlu1 %v18775_v57, %s18373_s9 }
 0x628   :  { %6890 = vrot.lane.b32.xlu1 %v18773_v56, %s18373_s9 }
 0x629   :  { %5967 = vrot.lane.b32.xlu0 %v18827_v29, %s18372_s8 }
 0x62d   :  { %7342 = vrot.lane.b32.xlu0 %v18791_v9, %s18373_s9 }
 0x631   :  { %7344 = vrot.lane.b32.xlu0 %v18787_v7, %s18373_s9 }
 0x69c   :  { %v5951_v62 = vpop.xlane.xlu1 %5950 }
 0x69d   :  { %v5955_v10 = vsub.f32 %v5947_v55, %v5951_v62 }
 0x69f   :  { %v5957_v43 = vmul.f32 1.442695, %v5955_v10 }
 0x6a0   :  { %v6420_v13 = vpop.permute.xlu1 %6419  ;;  %v5954_v63 = vpop.xlane.xlu0 %5953 }
 0x6a1   :  { %18235 = vpow2.f32 %v5957_v43  ;;  %v19177_v37 = vand.u32 4294901760, %v6420_v13  ;;  %v5956_v14 = vsub.f32 %v5948_v11, %v5954_v63 }
 0x6a3   :  { %v5959_v33 = vmul.f32 1.442695, %v5956_v14  ;;  %17040 = vmatpush3.msra.mxu0 %v19177_v37  ;;  %v6503_v24 = vsub.f32 %v6420_v13, %v19177_v37 }
 0x6a4   :  { %v5968_v5 = vpop.permute.xlu0 %5967  ;;  %17044 = vmatprep.subr.mxu0 %v18369_v0  ;;  %v6889_v46 = vpop.permute.xlu1 %6888 }
 0x6a5   :  { %18237 = vpow2.f32 %v5959_v33  ;;  %v19181_v21 = vand.u32 4294901760, %v5968_v5  ;;  %v6504_v2 = vand.u32 4294901760, %v6503_v24  ;;  %v6892_v58 = vsel %vm1354_vm2, %v6889_v46, 0 }
 0x6a6   :  { %v19227_v8 = vand.u32 4294901760, %v6892_v58 }
 0x6a7   :  { %17010 = vmatpush3.msra.mxu1 %v19181_v21  ;;  %v6051_v22 = vsub.f32 %v5968_v5, %v19181_v21  ;;  %v6505_v16 = vsub.f32 %v6503_v24, %v6504_v2 }
 0x6a8   :  { %17014 = vmatprep.subr.mxu1 %v18369_v0  ;;  %v7343_v48 = vpop.permute.xlu0 %7342  ;;  %v6891_v50 = vpop.permute.xlu1 %6890  ;;  %v6963_v51 = vsub.f32 %v6892_v58, %v19227_v8 }
 0x6a9   :  { %v6052_v26 = vand.u32 4294901760, %v6051_v22  ;;  %v6506_v47 = vand.u32 4294901760, %v6505_v16  ;;  %v6894_v59 = vsel %vm1354_vm2, %v6891_v50, 0  ;;  %v7346_v42 = vsel %vm1354_vm2, %v7343_v48, 0 }
 0x6aa   :  { %v19230_v27 = vand.u32 4294901760, %v6894_v59  ;;  %v19237_v6 = vand.u32 4294901760, %v7346_v42  ;;  %v6964_v34 = vand.u32 4294901760, %v6963_v51 }
 0x6ab   :  { %v19186_v3 = vpop.eup %18235  ;;  %v6053_v41 = vsub.f32 %v6051_v22, %v6052_v26 }
 0x6ac   :  { %v5971_v18 = vsel %vm2263_vm4, %v19186_v3, 0  ;;  %v7345_v60 = vpop.permute.xlu0 %7344  ;;  %v6974_v32 = vsub.f32 %v6894_v59, %v19230_v27  ;;  %v7417_v35 = vsub.f32 %v7346_v42, %v19237_v6  ;;  %v6965_v43 = vsub.f32 %v6963_v51, %v6964_v34 }
 0x6ad   :  { %v19190_v19 = vand.u32 4294901760, %v5971_v18  ;;  %v6054_v23 = vand.u32 4294901760, %v6053_v41  ;;  %v7348_v55 = vsel %vm1354_vm2, %v7345_v60, 0 }
 0x6ae   :  { %v19241_v11 = vand.u32 4294901760, %v7348_v55  ;;  %v6975_v62 = vand.u32 4294901760, %v6974_v32  ;;  %v7418_v13 = vand.u32 4294901760, %v7417_v35  ;;  %v6966_v33 = vand.u32 4294901760, %v6965_v43 }
 0x6af   :  { %v19193_v49 = vpop.eup %18237  ;;  %v6040_v28 = vsub.f32 %v5971_v18, %v19190_v19 }
 0x6b0   :  { %v6423_v53 = vsel %vm2263_vm4, %v19193_v49, 0  ;;  %v7428_v10 = vsub.f32 %v7348_v55, %v19241_v11  ;;  %v6976_v63 = vsub.f32 %v6974_v32, %v6975_v62  ;;  %v7419_v5 = vsub.f32 %v7417_v35, %v7418_v13 }
 0x6b1   :  { %v19198_v54 = vand.u32 4294901760, %v6423_v53  ;;  %v6041_v39 = vand.u32 4294901760, %v6040_v28 }
 0x6b2   :  { %v7429_v14 = vand.u32 4294901760, %v7428_v10 }
 0x6b3   :  { %v6042_v45 = vsub.f32 %v6040_v28, %v6041_v39  ;;  %v6492_v31 = vsub.f32 %v6423_v53, %v19198_v54 }
 0x6b5   :  { %v6043_v20 = vand.u32 4294901760, %v6042_v45  ;;  %v6493_v4 = vand.u32 4294901760, %v6492_v31 }
 0x6b7   :  { %17012 = vmatmul.mubr.f32.vlgmr.msra.gmra.mrb[12].mxu1 %v6043_v20  ;;  %v6494_v38 = vsub.f32 %v6492_v31, %v6493_v4 }
 0x6b8   :  { %17015 = vmatpush3.msra.mxu1 %v6054_v23  ;;  %17016 = vmatprep.mubr.msk.f32.mxu1 %vm18370_vm1, %v18369_v0 }
 0x6b9   :  { %v6495_v44 = vand.u32 4294901760, %v6494_v38  ;;  %17019 = vmatprep.subr.mxu1 %v18369_v0 }
 0x6bb   :  { %17042 = vmatmul.mubr.f32.vlgmr.msra.gmra.mrb[14].mxu0 %v6495_v44 }
 0x6bc   :  { %17045 = vmatpush3.msra.mxu0 %v6506_v47  ;;  %17046 = vmatprep.mubr.msk.f32.mxu0 %vm18370_vm1, %v18369_v0 }
 0x6bd   :  { %17049 = vmatprep.subr.mxu0 %v18369_v0 }
 0x6bf   :  { %17017 = vmatmul.mubr.f32.vlgmr.msra.gmra.mrb[12].mxu1 %v19190_v19 }
 0x6c0   :  { %17020 = vmatpush3.msra.mxu1 %v6051_v22  ;;  %17021 = vmatprep.mubr.msk.f32.mxu1 %vm18370_vm1, %v18369_v0  ;;  %v7420_v22 = vand.u32 4294901760, %v7419_v5 }
 0x6c1   :  { %17024 = vmatprep.subr.mxu1 %v18369_v0 }
 0x6c3   :  { %17047 = vmatmul.mubr.f32.vlgmr.msra.gmra.mrb[14].mxu0 %v19198_v54 }
 0x6c4   :  { %17050 = vmatpush3.msra.mxu0 %v6503_v24  ;;  %17051 = vmatprep.mubr.msk.f32.mxu0 %vm18370_vm1, %v18369_v0 }
 0x6c5   :  { %17054 = vmatprep.subr.mxu0 %v18369_v0 }
 0x6c7   :  { %17022 = vmatmul.mubr.f32.vlgmr.msra.gmra.mrb[12].mxu1 %v6040_v28 }
 0x6c8   :  { %17025 = vmatpush3.msra.mxu1 %v19181_v21  ;;  %17026 = vmatprep.mubr.msk.f32.mxu1 %vm18370_vm1, %v18369_v0 }
 0x6c9   :  { %17029 = vmatprep.subr.mxu1 %v18369_v0 }
 0x6cb   :  { %17052 = vmatmul.mubr.f32.vlgmr.msra.gmra.mrb[14].mxu0 %v6492_v31 }
 0x6cc   :  { %17055 = vmatpush3.msra.mxu0 %v19177_v37  ;;  %17056 = vmatprep.mubr.msk.f32.mxu0 %vm18370_vm1, %v18369_v0 }
 0x6cd   :  { %17059 = vmatprep.subr.mxu0 %v18369_v0 }
 0x6cf   :  { %17027 = vmatmul.mubr.f32.vlgmr.msra.gmra.mrb[12].mxu1 %v6041_v39 }
 0x6d0   :  { %17030 = vmatpush3.msra.mxu1 %v6052_v26  ;;  %17031 = vmatprep.mubr.msk.f32.mxu1 %vm18370_vm1, %v18369_v0 }
 0x6d1   :  { %17034 = vmatprep.subr.mxu1 %v18369_v0 }
 0x6d3   :  { %17057 = vmatmul.mubr.f32.vlgmr.msra.gmra.mrb[14].mxu0 %v6493_v4 }
 0x6d4   :  { %17060 = vmatpush3.msra.mxu0 %v6504_v2  ;;  %17061 = vmatprep.mubr.msk.f32.mxu0 %vm18370_vm1, %v18369_v0 }
 0x6d5   :  { %17064 = vmatprep.subr.mxu0 %v18369_v0 }
 0x6d7   :  { %17032 = vmatmul.mubr.f32.vlgmr.msra.gmra.mrb[12].mxu1 %v19190_v19 }
 0x6d8   :  { %17035 = vmatpush3.msra.mxu1 %v19181_v21  ;;  %17036 = vmatprep.mubr.msk.f32.mxu1 %vm18370_vm1, %v18369_v0  ;;  %v7430_v21 = vsub.f32 %v7428_v10, %v7429_v14 }
 0x6d9   :  { %17069 = vmatprep.subr.mxu1 %v18369_v0 }
 0x6da   :  { %v7431_v18 = vand.u32 4294901760, %v7430_v21 }
 0x6db   :  { %17062 = vmatmul.mubr.f32.vlgmr.msra.gmra.mrb[14].mxu0 %v19198_v54 }
 0x6dc   :  { %17065 = vmatpush3.msra.mxu0 %v19177_v37  ;;  %17066 = vmatprep.mubr.msk.f32.mxu0 %vm18370_vm1, %v18369_v0  ;;  %v6977_v37 = vand.u32 4294901760, %v6976_v63 }
 0x6dd   :  { %17099 = vmatprep.subr.mxu0 %v18369_v0 }
 0x6df   :  { %17037 = vmatmul.mubr.f32.vlgmr.msra.gmra.mrb[12].mxu1 %v19190_v19 }
 0x6e0   :  { %17070 = vmatpush3.xpose.msra.mxu1 %v19230_v27  ;;  %17071 = vmatprep.mubr.msk.f32.mxu1 %vm18370_vm1, %v18369_v0 }
 0x6e1   :  { %17074 = vmatprep.subr.mxu1 %v18369_v0 }
 0x6e3   :  { %17067 = vmatmul.mubr.f32.vlgmr.msra.gmra.mrb[14].mxu0 %v19198_v54  ;;  %17072 = vmatmul.mubr.f32.vlgmr.msra.gmra.mrb[14].mxu1 %v6966_v33 }
 0x6e4   :  { %17075 = vmatpush3.xpose.msra.mxu1 %v6977_v37  ;;  %17100 = vmatpush3.xpose.msra.mxu0 %v19241_v11 }
 0x6e5   :  { %17101 = vmatprep.mubr.msk.f32.mxu0 %vm18370_vm1, %v18369_v0  ;;  %17104 = vmatprep.subr.mxu0 %v18369_v0 }
 0x6e6   :  { %17076 = vmatprep.mubr.msk.f32.mxu1 %vm18370_vm1, %v18369_v0  ;;  %17079 = vmatprep.subr.mxu1 %v18369_v0 }
 0x6e7   :  { %17102 = vmatmul.mubr.f32.vlgmr.msra.gmra.mrb[16].mxu0 %v7420_v22 }
 0x6e8   :  { %17105 = vmatpush3.xpose.msra.mxu0 %v7431_v18  ;;  %17106 = vmatprep.mubr.msk.f32.mxu0 %vm18370_vm1, %v18369_v0 }
 0x6e9   :  { %17109 = vmatprep.subr.mxu0 %v18369_v0 }
 0x6eb   :  { %17077 = vmatmul.mubr.f32.vlgmr.msra.gmra.mrb[14].mxu1 %v19227_v8 }
 0x6ec   :  { %17080 = vmatpush3.xpose.msra.mxu1 %v6974_v32  ;;  %17081 = vmatprep.mubr.msk.f32.mxu1 %vm18370_vm1, %v18369_v0 }
 0x6ed   :  { %17084 = vmatprep.subr.mxu1 %v18369_v0 }
 0x6ef   :  { %17107 = vmatmul.mubr.f32.vlgmr.msra.gmra.mrb[16].mxu0 %v19237_v6 }
 0x6f0   :  { %17110 = vmatpush3.xpose.msra.mxu0 %v7428_v10  ;;  %17111 = vmatprep.mubr.msk.f32.mxu0 %vm18370_vm1, %v18369_v0 }
 0x6f1   :  { %17114 = vmatprep.subr.mxu0 %v18369_v0 }
 0x6f3   :  { %17082 = vmatmul.mubr.f32.vlgmr.msra.gmra.mrb[14].mxu1 %v6963_v51 }
 0x6f4   :  { %17085 = vmatpush3.xpose.msra.mxu1 %v19230_v27  ;;  %17086 = vmatprep.mubr.msk.f32.mxu1 %vm18370_vm1, %v18369_v0 }
 0x6f5   :  { %17089 = vmatprep.subr.mxu1 %v18369_v0 }
 0x6f7   :  { %17112 = vmatmul.mubr.f32.vlgmr.msra.gmra.mrb[16].mxu0 %v7417_v35 }
 0x6f8   :  { %17115 = vmatpush3.xpose.msra.mxu0 %v19241_v11  ;;  %17116 = vmatprep.mubr.msk.f32.mxu0 %vm18370_vm1, %v18369_v0 }
 0x6f9   :  { %17119 = vmatprep.subr.mxu0 %v18369_v0 }
 0x6fb   :  { %17087 = vmatmul.mubr.f32.vlgmr.msra.gmra.mrb[14].mxu1 %v6964_v34 }
 0x6fc   :  { %17090 = vmatpush3.xpose.msra.mxu1 %v6975_v62  ;;  %17091 = vmatprep.mubr.msk.f32.mxu1 %vm18370_vm1, %v18369_v0 }
 0x6fd   :  { %17094 = vmatprep.subr.mxu1 %v18369_v0 }
 0x6ff   :  { %17117 = vmatmul.mubr.f32.vlgmr.msra.gmra.mrb[16].mxu0 %v7418_v13 }
 0x700   :  { %17120 = vmatpush3.xpose.msra.mxu0 %v7429_v14  ;;  %17121 = vmatprep.mubr.msk.f32.mxu0 %vm18370_vm1, %v18369_v0 }
 0x701   :  { %17124 = vmatprep.subr.mxu0 %v18369_v0 }
 0x703   :  { %17092 = vmatmul.mubr.f32.vlgmr.msra.gmra.mrb[14].mxu1 %v19227_v8 }
 0x704   :  { %17095 = vmatpush3.xpose.msra.mxu1 %v19230_v27  ;;  %17096 = vmatprep.mubr.msk.f32.mxu1 %vm18370_vm1, %v18369_v0 }
 0x705   :  { %17129 = vmatprep.subr.mxu1 %v18369_v0 }
 0x707   :  { %17122 = vmatmul.mubr.f32.vlgmr.msra.gmra.mrb[16].mxu0 %v19237_v6 }
 0x708   :  { %17125 = vmatpush3.xpose.msra.mxu0 %v19241_v11  ;;  %17126 = vmatprep.mubr.msk.f32.mxu0 %vm18370_vm1, %v18369_v0 }
 0x709   :  { %17159 = vmatprep.subr.mxu0 %v18369_v0 }
 0x70b   :  { %17097 = vmatmul.mubr.f32.vlgmr.msra.gmra.mrb[14].mxu1 %v19227_v8 }
 0x70c   :  { %17131 = vmatprep.mubr.msk.f32.mxu1 %vm18370_vm1, %v18369_v0 }
 0x70f   :  { %17127 = vmatmul.mubr.f32.vlgmr.msra.gmra.mrb[16].mxu0 %v19237_v6 }
 0x710   :  { %17161 = vmatprep.mubr.msk.f32.mxu0 %vm18370_vm1, %v18369_v0 }
 0x7b2   :  { %v19309_v19 = vpop.f32.mrb[12].mxu1 }
 0x7b3   :  { %v17038_v24 = vpop.f32.mrb[13].mxu1 }
 0x7b6   :  { %v19311_v26 = vpop.f32.mrb[14].mxu0 }
 0x7b7   :  { %v17068_v28 = vpop.f32.mrb[15].mxu0 }
 0x7de   :  { %v7338_v53 = vpop.f32.mrb[14].mxu1 }
 0x7df   :  { %v7796_v54 = vsel %vm18863_vm3, %v7338_v53, -inf  ;;  %v17098_v39 = vpop.f32.mrb[15].mxu1 }
 0x7e0   :  { %v7798_v2 = vsel %vm2263_vm4, %v7796_v54, -inf }
 0x7e1   :  { %7799 = vmax.xlane.f32.xlu1 %v7798_v2 }
 0x7e2   :  { %v7792_v41 = vpop.f32.mrb[16].mxu0 }
 0x7e3   :  { %v7797_v45 = vsel %vm18863_vm3, %v7792_v41, -inf  ;;  %v17128_v31 = vpop.f32.mrb[17].mxu0 }
 0x7e4   :  { %v7801_v20 = vsel %vm2263_vm4, %v7797_v45, -inf }
 0x7e5   :  { %7802 = vmax.xlane.f32.xlu0 %v7801_v20 }
 0x7f2   :  { %8268 = vrot.lane.b32.xlu1 %v18824_v30, %s18373_s9 }
 0x7f6   :  { %8737 = vrot.lane.b32.xlu1 %v18775_v57, %s18374_s10 }
 0x7fa   :  { %8739 = vrot.lane.b32.xlu1 %v18773_v56, %s18374_s10 }
 0x7fb   :  { %7816 = vrot.lane.b32.xlu0 %v18827_v29, %s18373_s9 }
 0x7ff   :  { %9191 = vrot.lane.b32.xlu0 %v18791_v9, %s18374_s10 }
 0x803   :  { %9193 = vrot.lane.b32.xlu0 %v18787_v7, %s18374_s10 }
 0x86e   :  { %v7800_v4 = vpop.xlane.xlu1 %7799 }
 0x86f   :  { %v7804_v16 = vsub.f32 %v7796_v54, %v7800_v4 }
 0x871   :  { %v7806_v23 = vmul.f32 1.442695, %v7804_v16 }
 0x872   :  { %v8269_v38 = vpop.permute.xlu1 %8268  ;;  %v7803_v44 = vpop.xlane.xlu0 %7802 }
 0x873   :  { %18239 = vpow2.f32 %v7806_v23  ;;  %v19331_v47 = vand.u32 4294901760, %v8269_v38  ;;  %v7805_v46 = vsub.f32 %v7797_v45, %v7803_v44 }
 0x875   :  { %v7808_v48 = vmul.f32 1.442695, %v7805_v46  ;;  %17160 = vmatpush3.msra.mxu0 %v19331_v47  ;;  %v8352_v42 = vsub.f32 %v8269_v38, %v19331_v47 }
 0x876   :  { %v7817_v50 = vpop.permute.xlu0 %7816  ;;  %17164 = vmatprep.subr.mxu0 %v18369_v0  ;;  %v8738_v22 = vpop.permute.xlu1 %8737 }
 0x877   :  { %18241 = vpow2.f32 %v7808_v48  ;;  %v19335_v58 = vand.u32 4294901760, %v7817_v50  ;;  %v8353_v35 = vand.u32 4294901760, %v8352_v42  ;;  %v8741_v28 = vsel %vm1354_vm2, %v8738_v22, 0 }
 0x878   :  { %v19381_v39 = vand.u32 4294901760, %v8741_v28 }
 0x879   :  { %17130 = vmatpush3.msra.mxu1 %v19335_v58  ;;  %v7900_v59 = vsub.f32 %v7817_v50, %v19335_v58  ;;  %v8354_v14 = vsub.f32 %v8352_v42, %v8353_v35 }
 0x87a   :  { %17134 = vmatprep.subr.mxu1 %v18369_v0  ;;  %v9192_v18 = vpop.permute.xlu0 %9191  ;;  %v8740_v24 = vpop.permute.xlu1 %8739  ;;  %v8812_v31 = vsub.f32 %v8741_v28, %v19381_v39 }
 0x87b   :  { %v7901_v55 = vand.u32 4294901760, %v7900_v59  ;;  %v8355_v21 = vand.u32 4294901760, %v8354_v14  ;;  %v8743_v53 = vsel %vm1354_vm2, %v8740_v24, 0  ;;  %v9195_v41 = vsel %vm1354_vm2, %v9192_v18, 0 }
 0x87c   :  { %v19384_v2 = vand.u32 4294901760, %v8743_v53  ;;  %v19391_v20 = vand.u32 4294901760, %v9195_v41  ;;  %v8813_v23 = vand.u32 4294901760, %v8812_v31 }
 0x87d   :  { %v19340_v60 = vpop.eup %18239  ;;  %v7902_v62 = vsub.f32 %v7900_v59, %v7901_v55 }
 0x87e   :  { %v7820_v8 = vsel %vm2263_vm4, %v19340_v60, 0  ;;  %v9194_v54 = vpop.permute.xlu0 %9193  ;;  %v8823_v4 = vsub.f32 %v8743_v53, %v19384_v2  ;;  %v9266_v38 = vsub.f32 %v9195_v41, %v19391_v20  ;;  %v8814_v48 = vsub.f32 %v8812_v31, %v8813_v23 }
 0x87f   :  { %v19344_v27 = vand.u32 4294901760, %v7820_v8  ;;  %v7903_v33 = vand.u32 4294901760, %v7902_v62  ;;  %v9197_v45 = vsel %vm1354_vm2, %v9194_v54, 0 }
 0x880   :  { %v19395_v16 = vand.u32 4294901760, %v9197_v45  ;;  %v8824_v44 = vand.u32 4294901760, %v8823_v4  ;;  %v9267_v50 = vand.u32 4294901760, %v9266_v38 }
 0x881   :  { %v19347_v51 = vpop.eup %18241  ;;  %v7889_v6 = vsub.f32 %v7820_v8, %v19344_v27  ;;  %v8815_v8 = vand.u32 4294901760, %v8814_v48 }
 0x882   :  { %v8272_v32 = vsel %vm2263_vm4, %v19347_v51, 0  ;;  %v9277_v46 = vsub.f32 %v9197_v45, %v19395_v16 }
 0x883   :  { %v19352_v11 = vand.u32 4294901760, %v8272_v32  ;;  %v7890_v34 = vand.u32 4294901760, %v7889_v6 }
 0x885   :  { %v7891_v10 = vsub.f32 %v7889_v6, %v7890_v34  ;;  %v8341_v43 = vsub.f32 %v8272_v32, %v19352_v11 }
 0x887   :  { %v7892_v13 = vand.u32 4294901760, %v7891_v10  ;;  %v8342_v63 = vand.u32 4294901760, %v8341_v43 }
 0x889   :  { %17132 = vmatmul.mubr.f32.vlgmr.msra.gmra.mrb[16].mxu1 %v7892_v13  ;;  %v8343_v5 = vsub.f32 %v8341_v43, %v8342_v63 }
 0x88a   :  { %17135 = vmatpush3.msra.mxu1 %v7903_v33  ;;  %17136 = vmatprep.mubr.msk.f32.mxu1 %vm18370_vm1, %v18369_v0 }
 0x88b   :  { %v8344_v37 = vand.u32 4294901760, %v8343_v5  ;;  %17139 = vmatprep.subr.mxu1 %v18369_v0 }
 0x88d   :  { %17162 = vmatmul.mubr.f32.vlgmr.msra.gmra.mrb[18].mxu0 %v8344_v37 }
 0x88e   :  { %17165 = vmatpush3.msra.mxu0 %v8355_v21  ;;  %17166 = vmatprep.mubr.msk.f32.mxu0 %vm18370_vm1, %v18369_v0 }
 0x88f   :  { %17169 = vmatprep.subr.mxu0 %v18369_v0 }
 0x891   :  { %17137 = vmatmul.mubr.f32.vlgmr.msra.gmra.mrb[16].mxu1 %v19344_v27 }
 0x892   :  { %17140 = vmatpush3.msra.mxu1 %v7900_v59  ;;  %17141 = vmatprep.mubr.msk.f32.mxu1 %vm18370_vm1, %v18369_v0  ;;  %v9278_v59 = vand.u32 4294901760, %v9277_v46 }
 0x893   :  { %17144 = vmatprep.subr.mxu1 %v18369_v0 }
 0x895   :  { %17167 = vmatmul.mubr.f32.vlgmr.msra.gmra.mrb[18].mxu0 %v19352_v11 }
 0x896   :  { %17170 = vmatpush3.msra.mxu0 %v8352_v42  ;;  %17171 = vmatprep.mubr.msk.f32.mxu0 %vm18370_vm1, %v18369_v0  ;;  %v9268_v42 = vsub.f32 %v9266_v38, %v9267_v50 }
 0x897   :  { %17174 = vmatprep.subr.mxu0 %v18369_v0 }
 0x899   :  { %17142 = vmatmul.mubr.f32.vlgmr.msra.gmra.mrb[16].mxu1 %v7889_v6  ;;  %v9269_v6 = vand.u32 4294901760, %v9268_v42 }
 0x89a   :  { %17145 = vmatpush3.msra.mxu1 %v19335_v58  ;;  %17146 = vmatprep.mubr.msk.f32.mxu1 %vm18370_vm1, %v18369_v0 }
 0x89b   :  { %17149 = vmatprep.subr.mxu1 %v18369_v0 }
 0x89d   :  { %17172 = vmatmul.mubr.f32.vlgmr.msra.gmra.mrb[18].mxu0 %v8341_v43 }
 0x89e   :  { %17175 = vmatpush3.msra.mxu0 %v19331_v47  ;;  %17176 = vmatprep.mubr.msk.f32.mxu0 %vm18370_vm1, %v18369_v0 }
 0x89f   :  { %17179 = vmatprep.subr.mxu0 %v18369_v0 }
 0x8a1   :  { %17147 = vmatmul.mubr.f32.vlgmr.msra.gmra.mrb[16].mxu1 %v7890_v34 }
 0x8a2   :  { %17150 = vmatpush3.msra.mxu1 %v7901_v55  ;;  %17151 = vmatprep.mubr.msk.f32.mxu1 %vm18370_vm1, %v18369_v0  ;;  %v9279_v55 = vsub.f32 %v9277_v46, %v9278_v59 }
 0x8a3   :  { %17154 = vmatprep.subr.mxu1 %v18369_v0 }
 0x8a5   :  { %17177 = vmatmul.mubr.f32.vlgmr.msra.gmra.mrb[18].mxu0 %v8342_v63 }
 0x8a6   :  { %17180 = vmatpush3.msra.mxu0 %v8353_v35  ;;  %17181 = vmatprep.mubr.msk.f32.mxu0 %vm18370_vm1, %v18369_v0 }
 0x8a7   :  { %17184 = vmatprep.subr.mxu0 %v18369_v0 }
 0x8a9   :  { %17152 = vmatmul.mubr.f32.vlgmr.msra.gmra.mrb[16].mxu1 %v19344_v27 }
 0x8aa   :  { %17155 = vmatpush3.msra.mxu1 %v19335_v58  ;;  %17156 = vmatprep.mubr.msk.f32.mxu1 %vm18370_vm1, %v18369_v0  ;;  %v8825_v58 = vsub.f32 %v8823_v4, %v8824_v44 }
 0x8ab   :  { %17189 = vmatprep.subr.mxu1 %v18369_v0 }
 0x8ad   :  { %17182 = vmatmul.mubr.f32.vlgmr.msra.gmra.mrb[18].mxu0 %v19352_v11 }
 0x8ae   :  { %17185 = vmatpush3.msra.mxu0 %v19331_v47  ;;  %17186 = vmatprep.mubr.msk.f32.mxu0 %vm18370_vm1, %v18369_v0  ;;  %v8826_v47 = vand.u32 4294901760, %v8825_v58 }
 0x8af   :  { %17219 = vmatprep.subr.mxu0 %v18369_v0 }
 0x8b1   :  { %17157 = vmatmul.mubr.f32.vlgmr.msra.gmra.mrb[16].mxu1 %v19344_v27  ;;  %v9280_v27 = vand.u32 4294901760, %v9279_v55 }
 0x8b2   :  { %17190 = vmatpush3.xpose.msra.mxu1 %v19384_v2  ;;  %17191 = vmatprep.mubr.msk.f32.mxu1 %vm18370_vm1, %v18369_v0 }
 0x8b3   :  { %17194 = vmatprep.subr.mxu1 %v18369_v0 }
 0x8b5   :  { %17187 = vmatmul.mubr.f32.vlgmr.msra.gmra.mrb[18].mxu0 %v19352_v11  ;;  %17192 = vmatmul.mubr.f32.vlgmr.msra.gmra.mrb[18].mxu1 %v8815_v8 }
 0x8b6   :  { %17195 = vmatpush3.xpose.msra.mxu1 %v8826_v47  ;;  %17220 = vmatpush3.xpose.msra.mxu0 %v19395_v16 }
 0x8b7   :  { %17221 = vmatprep.mubr.msk.f32.mxu0 %vm18370_vm1, %v18369_v0  ;;  %17224 = vmatprep.subr.mxu0 %v18369_v0 }
 0x8b8   :  { %17196 = vmatprep.mubr.msk.f32.mxu1 %vm18370_vm1, %v18369_v0  ;;  %17199 = vmatprep.subr.mxu1 %v18369_v0 }
 0x8b9   :  { %17222 = vmatmul.mubr.f32.vlgmr.msra.gmra.mrb[20].mxu0 %v9269_v6 }
 0x8ba   :  { %17225 = vmatpush3.xpose.msra.mxu0 %v9280_v27  ;;  %17226 = vmatprep.mubr.msk.f32.mxu0 %vm18370_vm1, %v18369_v0 }
 0x8bb   :  { %17229 = vmatprep.subr.mxu0 %v18369_v0 }
 0x8bd   :  { %17197 = vmatmul.mubr.f32.vlgmr.msra.gmra.mrb[18].mxu1 %v19381_v39 }
 0x8be   :  { %17200 = vmatpush3.xpose.msra.mxu1 %v8823_v4  ;;  %17201 = vmatprep.mubr.msk.f32.mxu1 %vm18370_vm1, %v18369_v0 }
 0x8bf   :  { %17204 = vmatprep.subr.mxu1 %v18369_v0 }
 0x8c1   :  { %17227 = vmatmul.mubr.f32.vlgmr.msra.gmra.mrb[20].mxu0 %v19391_v20 }
 0x8c2   :  { %17230 = vmatpush3.xpose.msra.mxu0 %v9277_v46  ;;  %17231 = vmatprep.mubr.msk.f32.mxu0 %vm18370_vm1, %v18369_v0 }
 0x8c3   :  { %17234 = vmatprep.subr.mxu0 %v18369_v0 }
 0x8c5   :  { %17202 = vmatmul.mubr.f32.vlgmr.msra.gmra.mrb[18].mxu1 %v8812_v31 }
 0x8c6   :  { %17205 = vmatpush3.xpose.msra.mxu1 %v19384_v2  ;;  %17206 = vmatprep.mubr.msk.f32.mxu1 %vm18370_vm1, %v18369_v0 }
 0x8c7   :  { %17209 = vmatprep.subr.mxu1 %v18369_v0 }
 0x8c9   :  { %17232 = vmatmul.mubr.f32.vlgmr.msra.gmra.mrb[20].mxu0 %v9266_v38 }
 0x8ca   :  { %17235 = vmatpush3.xpose.msra.mxu0 %v19395_v16  ;;  %17236 = vmatprep.mubr.msk.f32.mxu0 %vm18370_vm1, %v18369_v0 }
 0x8cb   :  { %17239 = vmatprep.subr.mxu0 %v18369_v0 }
 0x8cd   :  { %17207 = vmatmul.mubr.f32.vlgmr.msra.gmra.mrb[18].mxu1 %v8813_v23 }
 0x8ce   :  { %17210 = vmatpush3.xpose.msra.mxu1 %v8824_v44  ;;  %17211 = vmatprep.mubr.msk.f32.mxu1 %vm18370_vm1, %v18369_v0 }
 0x8cf   :  { %17214 = vmatprep.subr.mxu1 %v18369_v0 }
 0x8d1   :  { %17237 = vmatmul.mubr.f32.vlgmr.msra.gmra.mrb[20].mxu0 %v9267_v50 }
 0x8d2   :  { %17240 = vmatpush3.xpose.msra.mxu0 %v9278_v59  ;;  %17241 = vmatprep.mubr.msk.f32.mxu0 %vm18370_vm1, %v18369_v0 }
 0x8d3   :  { %17244 = vmatprep.subr.mxu0 %v18369_v0 }
 0x8d5   :  { %17212 = vmatmul.mubr.f32.vlgmr.msra.gmra.mrb[18].mxu1 %v19381_v39 }
 0x8d6   :  { %17215 = vmatpush3.xpose.msra.mxu1 %v19384_v2  ;;  %17216 = vmatprep.mubr.msk.f32.mxu1 %vm18370_vm1, %v18369_v0 }
 0x8d7   :  { %17249 = vmatprep.subr.mxu1 %v18369_v0 }
 0x8d9   :  { %17242 = vmatmul.mubr.f32.vlgmr.msra.gmra.mrb[20].mxu0 %v19391_v20 }
 0x8da   :  { %17245 = vmatpush3.xpose.msra.mxu0 %v19395_v16  ;;  %17246 = vmatprep.mubr.msk.f32.mxu0 %vm18370_vm1, %v18369_v0 }
 0x8db   :  { %17279 = vmatprep.subr.mxu0 %v18369_v0 }
 0x8dd   :  { %17217 = vmatmul.mubr.f32.vlgmr.msra.gmra.mrb[18].mxu1 %v19381_v39 }
 0x8de   :  { %17251 = vmatprep.mubr.msk.f32.mxu1 %vm18370_vm1, %v18369_v0 }
 0x8e1   :  { %17247 = vmatmul.mubr.f32.vlgmr.msra.gmra.mrb[20].mxu0 %v19391_v20 }
 0x8e2   :  { %17281 = vmatprep.mubr.msk.f32.mxu0 %vm18370_vm1, %v18369_v0 }
 0x984   :  { %v19463_v32 = vpop.f32.mrb[16].mxu1 }
 0x985   :  { %v17158_v11 = vpop.f32.mrb[17].mxu1 }
 0x988   :  { %v19465_v34 = vpop.f32.mrb[18].mxu0 }
 0x989   :  { %v17188_v35 = vpop.f32.mrb[19].mxu0 }
 0x9b0   :  { %v9187_v62 = vpop.f32.mrb[18].mxu1 }
 0x9b1   :  { %v9645_v10 = vsel %vm18863_vm3, %v9187_v62, -inf  ;;  %v17218_v43 = vpop.f32.mrb[19].mxu1 }
 0x9b2   :  { %v9647_v13 = vsel %vm2263_vm4, %v9645_v10, -inf }
 0x9b3   :  { %9648 = vmax.xlane.f32.xlu1 %v9647_v13 }
 0x9b4   :  { %v9641_v63 = vpop.f32.mrb[20].mxu0 }
 0x9b5   :  { %v9646_v14 = vsel %vm18863_vm3, %v9641_v63, -inf  ;;  %v17248_v33 = vpop.f32.mrb[21].mxu0 }
 0x9b6   :  { %v9650_v5 = vsel %vm2263_vm4, %v9646_v14, -inf }
 0x9b7   :  { %9651 = vmax.xlane.f32.xlu0 %v9650_v5 }
 0x9c4   :  { %10117 = vrot.lane.b32.xlu1 %v18824_v30, %s18374_s10 }
 0x9c8   :  { %10586 = vrot.lane.b32.xlu1 %v18775_v57, %s18375_s11 }
 0x9cc   :  { %10588 = vrot.lane.b32.xlu1 %v18773_v56, %s18375_s11 }
 0x9cd   :  { %9665 = vrot.lane.b32.xlu0 %v18827_v29, %s18374_s10 }
 0x9d1   :  { %11040 = vrot.lane.b32.xlu0 %v18791_v9, %s18375_s11 }
 0x9d5   :  { %11042 = vrot.lane.b32.xlu0 %v18787_v7, %s18375_s11 }
 0xa40   :  { %v9649_v37 = vpop.xlane.xlu1 %9648 }
 0xa41   :  { %v9653_v21 = vsub.f32 %v9645_v10, %v9649_v37 }
 0xa43   :  { %v9655_v22 = vmul.f32 1.442695, %v9653_v21 }
 0xa44   :  { %v10118_v18 = vpop.permute.xlu1 %10117  ;;  %v9652_v24 = vpop.xlane.xlu0 %9651 }
 0xa45   :  { %18243 = vpow2.f32 %v9655_v22  ;;  %v19485_v28 = vand.u32 4294901760, %v10118_v18  ;;  %v9654_v53 = vsub.f32 %v9646_v14, %v9652_v24 }
 0xa47   :  { %v9657_v54 = vmul.f32 1.442695, %v9654_v53  ;;  %17280 = vmatpush3.msra.mxu0 %v19485_v28  ;;  %v10201_v4 = vsub.f32 %v10118_v18, %v19485_v28 }
 0xa48   :  { %v9666_v39 = vpop.permute.xlu0 %9665  ;;  %17284 = vmatprep.subr.mxu0 %v18369_v0  ;;  %v10587_v62 = vpop.permute.xlu1 %10586 }
 0xa49   :  { %18245 = vpow2.f32 %v9657_v54  ;;  %v19489_v2 = vand.u32 4294901760, %v9666_v39  ;;  %v10202_v50 = vand.u32 4294901760, %v10201_v4  ;;  %v10590_v13 = vsel %vm1354_vm2, %v10587_v62, 0 }
 0xa4a   :  { %v19535_v33 = vand.u32 4294901760, %v10590_v13 }
 0xa4b   :  { %17250 = vmatpush3.msra.mxu1 %v19489_v2  ;;  %v9749_v41 = vsub.f32 %v9666_v39, %v19489_v2  ;;  %v10203_v55 = vsub.f32 %v10201_v4, %v10202_v50 }
 0xa4c   :  { %17254 = vmatprep.subr.mxu1 %v18369_v0  ;;  %v11041_v10 = vpop.permute.xlu0 %11040  ;;  %v10589_v43 = vpop.permute.xlu1 %10588  ;;  %v10661_v22 = vsub.f32 %v10590_v13, %v19535_v33 }
 0xa4d   :  { %v9750_v16 = vand.u32 4294901760, %v9749_v41  ;;  %v10204_v35 = vand.u32 4294901760, %v10203_v55  ;;  %v10592_v63 = vsel %vm1354_vm2, %v10589_v43, 0  ;;  %v11044_v37 = vsel %vm1354_vm2, %v11041_v10, 0 }
 0xa4e   :  { %v19538_v5 = vand.u32 4294901760, %v10592_v63  ;;  %v19545_v18 = vand.u32 4294901760, %v11044_v37  ;;  %v10662_v54 = vand.u32 4294901760, %v10661_v22 }
 0xa4f   :  { %v19494_v45 = vpop.eup %18243  ;;  %v9751_v58 = vsub.f32 %v9749_v41, %v9750_v16 }
 0xa50   :  { %v9669_v31 = vsel %vm2263_vm4, %v19494_v45, 0  ;;  %v11043_v14 = vpop.permute.xlu0 %11042  ;;  %v10672_v24 = vsub.f32 %v10592_v63, %v19538_v5  ;;  %v11115_v39 = vsub.f32 %v11044_v37, %v19545_v18 }
 0xa51   :  { %v19498_v20 = vand.u32 4294901760, %v9669_v31  ;;  %v9752_v6 = vand.u32 4294901760, %v9751_v58  ;;  %v11046_v21 = vsel %vm1354_vm2, %v11043_v14, 0 }
 0xa52   :  { %v19549_v53 = vand.u32 4294901760, %v11046_v21 }
 0xa53   :  { %v19501_v23 = vpop.eup %18245  ;;  %v9738_v38 = vsub.f32 %v9669_v31, %v19498_v20 }
 0xa54   :  { %v10121_v44 = vsel %vm2263_vm4, %v19501_v23, 0  ;;  %v11126_v31 = vsub.f32 %v11046_v21, %v19549_v53 }
 0xa55   :  { %v19506_v46 = vand.u32 4294901760, %v10121_v44  ;;  %v9739_v48 = vand.u32 4294901760, %v9738_v38 }
 0xa57   :  { %v9740_v59 = vsub.f32 %v9738_v38, %v9739_v48  ;;  %v10190_v8 = vsub.f32 %v10121_v44, %v19506_v46 }
 0xa59   :  { %v9741_v42 = vand.u32 4294901760, %v9740_v59  ;;  %v10191_v47 = vand.u32 4294901760, %v10190_v8 }
 0xa5b   :  { %17252 = vmatmul.mubr.f32.vlgmr.msra.gmra.mrb[20].mxu1 %v9741_v42  ;;  %v10192_v27 = vsub.f32 %v10190_v8, %v10191_v47 }
 0xa5c   :  { %17255 = vmatpush3.msra.mxu1 %v9752_v6  ;;  %17256 = vmatprep.mubr.msk.f32.mxu1 %vm18370_vm1, %v18369_v0 }
 0xa5d   :  { %v10193_v11 = vand.u32 4294901760, %v10192_v27  ;;  %17259 = vmatprep.subr.mxu1 %v18369_v0 }
 0xa5f   :  { %17282 = vmatmul.mubr.f32.vlgmr.msra.gmra.mrb[22].mxu0 %v10193_v11 }
 0xa60   :  { %17285 = vmatpush3.msra.mxu0 %v10204_v35  ;;  %17286 = vmatprep.mubr.msk.f32.mxu0 %vm18370_vm1, %v18369_v0 }
 0xa61   :  { %17289 = vmatprep.subr.mxu0 %v18369_v0 }
 0xa63   :  { %17257 = vmatmul.mubr.f32.vlgmr.msra.gmra.mrb[20].mxu1 %v19498_v20 }
 0xa64   :  { %17260 = vmatpush3.msra.mxu1 %v9749_v41  ;;  %17261 = vmatprep.mubr.msk.f32.mxu1 %vm18370_vm1, %v18369_v0  ;;  %v10673_v41 = vand.u32 4294901760, %v10672_v24 }
 0xa65   :  { %17264 = vmatprep.subr.mxu1 %v18369_v0 }
 0xa67   :  { %17287 = vmatmul.mubr.f32.vlgmr.msra.gmra.mrb[22].mxu0 %v19506_v46 }
 0xa68   :  { %17290 = vmatpush3.msra.mxu0 %v10201_v4  ;;  %17291 = vmatprep.mubr.msk.f32.mxu0 %vm18370_vm1, %v18369_v0  ;;  %v10663_v4 = vsub.f32 %v10661_v22, %v10662_v54 }
 0xa69   :  { %17294 = vmatprep.subr.mxu0 %v18369_v0 }
 0xa6a   :  { %v10664_v44 = vand.u32 4294901760, %v10663_v4 }
 0xa6b   :  { %17262 = vmatmul.mubr.f32.vlgmr.msra.gmra.mrb[20].mxu1 %v9738_v38  ;;  %v11127_v38 = vand.u32 4294901760, %v11126_v31 }
 0xa6c   :  { %17265 = vmatpush3.msra.mxu1 %v19489_v2  ;;  %17266 = vmatprep.mubr.msk.f32.mxu1 %vm18370_vm1, %v18369_v0 }
 0xa6d   :  { %17269 = vmatprep.subr.mxu1 %v18369_v0 }
 0xa6f   :  { %17292 = vmatmul.mubr.f32.vlgmr.msra.gmra.mrb[22].mxu0 %v10190_v8 }
 0xa70   :  { %17295 = vmatpush3.msra.mxu0 %v19485_v28  ;;  %17296 = vmatprep.mubr.msk.f32.mxu0 %vm18370_vm1, %v18369_v0 }
 0xa71   :  { %17299 = vmatprep.subr.mxu0 %v18369_v0 }
 0xa73   :  { %17267 = vmatmul.mubr.f32.vlgmr.msra.gmra.mrb[20].mxu1 %v9739_v48 }
 0xa74   :  { %17270 = vmatpush3.msra.mxu1 %v9750_v16  ;;  %17271 = vmatprep.mubr.msk.f32.mxu1 %vm18370_vm1, %v18369_v0  ;;  %v10674_v16 = vsub.f32 %v10672_v24, %v10673_v41 }
 0xa75   :  { %17274 = vmatprep.subr.mxu1 %v18369_v0 }
 0xa77   :  { %17297 = vmatmul.mubr.f32.vlgmr.msra.gmra.mrb[22].mxu0 %v10191_v47 }
 0xa78   :  { %17300 = vmatpush3.msra.mxu0 %v10202_v50  ;;  %17301 = vmatprep.mubr.msk.f32.mxu0 %vm18370_vm1, %v18369_v0  ;;  %v11128_v50 = vsub.f32 %v11126_v31, %v11127_v38 }
 0xa79   :  { %17304 = vmatprep.subr.mxu0 %v18369_v0 }
 0xa7b   :  { %17272 = vmatmul.mubr.f32.vlgmr.msra.gmra.mrb[20].mxu1 %v19498_v20 }
 0xa7c   :  { %17275 = vmatpush3.msra.mxu1 %v19489_v2  ;;  %17276 = vmatprep.mubr.msk.f32.mxu1 %vm18370_vm1, %v18369_v0  ;;  %v11116_v2 = vand.u32 4294901760, %v11115_v39 }
 0xa7d   :  { %17309 = vmatprep.subr.mxu1 %v18369_v0 }
 0xa7e   :  { %v11117_v48 = vsub.f32 %v11115_v39, %v11116_v2 }
 0xa7f   :  { %17302 = vmatmul.mubr.f32.vlgmr.msra.gmra.mrb[22].mxu0 %v19506_v46 }
 0xa80   :  { %17305 = vmatpush3.msra.mxu0 %v19485_v28  ;;  %17306 = vmatprep.mubr.msk.f32.mxu0 %vm18370_vm1, %v18369_v0  ;;  %v10675_v28 = vand.u32 4294901760, %v10674_v16  ;;  %v11118_v58 = vand.u32 4294901760, %v11117_v48 }
 0xa81   :  { %17339 = vmatprep.subr.mxu0 %v18369_v0 }
 0xa83   :  { %17277 = vmatmul.mubr.f32.vlgmr.msra.gmra.mrb[20].mxu1 %v19498_v20  ;;  %v11129_v20 = vand.u32 4294901760, %v11128_v50 }
 0xa84   :  { %17310 = vmatpush3.xpose.msra.mxu1 %v19538_v5  ;;  %17311 = vmatprep.mubr.msk.f32.mxu1 %vm18370_vm1, %v18369_v0 }
 0xa85   :  { %17314 = vmatprep.subr.mxu1 %v18369_v0 }
 0xa87   :  { %17307 = vmatmul.mubr.f32.vlgmr.msra.gmra.mrb[22].mxu0 %v19506_v46  ;;  %17312 = vmatmul.mubr.f32.vlgmr.msra.gmra.mrb[22].mxu1 %v10664_v44 }
 0xa88   :  { %17315 = vmatpush3.xpose.msra.mxu1 %v10675_v28  ;;  %17340 = vmatpush3.xpose.msra.mxu0 %v19549_v53 }
 0xa89   :  { %17341 = vmatprep.mubr.msk.f32.mxu0 %vm18370_vm1, %v18369_v0  ;;  %17344 = vmatprep.subr.mxu0 %v18369_v0 }
 0xa8a   :  { %17316 = vmatprep.mubr.msk.f32.mxu1 %vm18370_vm1, %v18369_v0  ;;  %17319 = vmatprep.subr.mxu1 %v18369_v0 }
 0xa8b   :  { %17342 = vmatmul.mubr.f32.vlgmr.msra.gmra.mrb[24].mxu0 %v11118_v58 }
 0xa8c   :  { %17345 = vmatpush3.xpose.msra.mxu0 %v11129_v20  ;;  %17346 = vmatprep.mubr.msk.f32.mxu0 %vm18370_vm1, %v18369_v0 }
 0xa8d   :  { %17349 = vmatprep.subr.mxu0 %v18369_v0 }
 0xa8f   :  { %17317 = vmatmul.mubr.f32.vlgmr.msra.gmra.mrb[22].mxu1 %v19535_v33 }
 0xa90   :  { %17320 = vmatpush3.xpose.msra.mxu1 %v10672_v24  ;;  %17321 = vmatprep.mubr.msk.f32.mxu1 %vm18370_vm1, %v18369_v0 }
 0xa91   :  { %17324 = vmatprep.subr.mxu1 %v18369_v0 }
 0xa93   :  { %17347 = vmatmul.mubr.f32.vlgmr.msra.gmra.mrb[24].mxu0 %v19545_v18 }
 0xa94   :  { %17350 = vmatpush3.xpose.msra.mxu0 %v11126_v31  ;;  %17351 = vmatprep.mubr.msk.f32.mxu0 %vm18370_vm1, %v18369_v0 }
 0xa95   :  { %17354 = vmatprep.subr.mxu0 %v18369_v0 }
 0xa97   :  { %17322 = vmatmul.mubr.f32.vlgmr.msra.gmra.mrb[22].mxu1 %v10661_v22 }
 0xa98   :  { %17325 = vmatpush3.xpose.msra.mxu1 %v19538_v5  ;;  %17326 = vmatprep.mubr.msk.f32.mxu1 %vm18370_vm1, %v18369_v0 }
 0xa99   :  { %17329 = vmatprep.subr.mxu1 %v18369_v0 }
 0xa9b   :  { %17352 = vmatmul.mubr.f32.vlgmr.msra.gmra.mrb[24].mxu0 %v11115_v39 }
 0xa9c   :  { %17355 = vmatpush3.xpose.msra.mxu0 %v19549_v53  ;;  %17356 = vmatprep.mubr.msk.f32.mxu0 %vm18370_vm1, %v18369_v0 }
 0xa9d   :  { %17359 = vmatprep.subr.mxu0 %v18369_v0 }
 0xa9f   :  { %17327 = vmatmul.mubr.f32.vlgmr.msra.gmra.mrb[22].mxu1 %v10662_v54 }
 0xaa0   :  { %17330 = vmatpush3.xpose.msra.mxu1 %v10673_v41  ;;  %17331 = vmatprep.mubr.msk.f32.mxu1 %vm18370_vm1, %v18369_v0 }
 0xaa1   :  { %17334 = vmatprep.subr.mxu1 %v18369_v0 }
 0xaa3   :  { %17357 = vmatmul.mubr.f32.vlgmr.msra.gmra.mrb[24].mxu0 %v11116_v2 }
 0xaa4   :  { %17360 = vmatpush3.xpose.msra.mxu0 %v11127_v38  ;;  %17361 = vmatprep.mubr.msk.f32.mxu0 %vm18370_vm1, %v18369_v0 }
 0xaa5   :  { %17364 = vmatprep.subr.mxu0 %v18369_v0 }
 0xaa7   :  { %17332 = vmatmul.mubr.f32.vlgmr.msra.gmra.mrb[22].mxu1 %v19535_v33 }
 0xaa8   :  { %17335 = vmatpush3.xpose.msra.mxu1 %v19538_v5  ;;  %17336 = vmatprep.mubr.msk.f32.mxu1 %vm18370_vm1, %v18369_v0 }
 0xaa9   :  { %17369 = vmatprep.subr.mxu1 %v18369_v0 }
 0xaab   :  { %17362 = vmatmul.mubr.f32.vlgmr.msra.gmra.mrb[24].mxu0 %v19545_v18 }
 0xaac   :  { %17365 = vmatpush3.xpose.msra.mxu0 %v19549_v53  ;;  %17366 = vmatprep.mubr.msk.f32.mxu0 %vm18370_vm1, %v18369_v0 }
 0xaad   :  { %17399 = vmatprep.subr.mxu0 %v18369_v0 }
 0xaaf   :  { %17337 = vmatmul.mubr.f32.vlgmr.msra.gmra.mrb[22].mxu1 %v19535_v33 }
 0xab0   :  { %17371 = vmatprep.mubr.msk.f32.mxu1 %vm18370_vm1, %v18369_v0 }
 0xab3   :  { %17367 = vmatmul.mubr.f32.vlgmr.msra.gmra.mrb[24].mxu0 %v19545_v18 }
 0xab4   :  { %17401 = vmatprep.mubr.msk.f32.mxu0 %vm18370_vm1, %v18369_v0 }
 0xb56   :  { %v19617_v46 = vpop.f32.mrb[20].mxu1 }
 0xb57   :  { %v17278_v59 = vpop.f32.mrb[21].mxu1 }
 0xb5a   :  { %v19619_v8 = vpop.f32.mrb[22].mxu0 }
 0xb5b   :  { %v17308_v42 = vpop.f32.mrb[23].mxu0 }
 0xb82   :  { %v11036_v47 = vpop.f32.mrb[22].mxu1 }
 0xb83   :  { %v11494_v55 = vsel %vm18863_vm3, %v11036_v47, -inf  ;;  %v17338_v6 = vpop.f32.mrb[23].mxu1 }
 0xb84   :  { %v11496_v27 = vsel %vm2263_vm4, %v11494_v55, -inf }
 0xb85   :  { %11497 = vmax.xlane.f32.xlu1 %v11496_v27 }
 0xb86   :  { %v11490_v11 = vpop.f32.mrb[24].mxu0 }
 0xb87   :  { %v11495_v35 = vsel %vm18863_vm3, %v11490_v11, -inf  ;;  %v17368_v62 = vpop.f32.mrb[25].mxu0 }
 0xb88   :  { %v11499_v10 = vsel %vm2263_vm4, %v11495_v35, -inf }
 0xb89   :  { %11500 = vmax.xlane.f32.xlu0 %v11499_v10 }
 0xb96   :  { %11966 = vrot.lane.b32.xlu1 %v18824_v30, %s18375_s11 }
 0xb9a   :  { %12435 = vrot.lane.b32.xlu1 %v18775_v57, %s18376_s12 }
 0xb9e   :  { %12437 = vrot.lane.b32.xlu1 %v18773_v56, %s18376_s12 }
 0xb9f   :  { %11514 = vrot.lane.b32.xlu0 %v18827_v29, %s18375_s11 }
 0xba3   :  { %12889 = vrot.lane.b32.xlu0 %v18791_v9, %s18376_s12 }
 0xba7   :  { %12891 = vrot.lane.b32.xlu0 %v18787_v7, %s18376_s12 }
 0xc12   :  { %v11498_v43 = vpop.xlane.xlu1 %11497 }
 0xc13   :  { %v11502_v13 = vsub.f32 %v11494_v55, %v11498_v43 }
 0xc15   :  { %v11504_v63 = vmul.f32 1.442695, %v11502_v13 }
 0xc16   :  { %v11967_v14 = vpop.permute.xlu1 %11966  ;;  %v11501_v33 = vpop.xlane.xlu0 %11500 }
 0xc17   :  { %18247 = vpow2.f32 %v11504_v63  ;;  %v19639_v5 = vand.u32 4294901760, %v11967_v14  ;;  %v11503_v37 = vsub.f32 %v11495_v35, %v11501_v33 }
 0xc19   :  { %v11506_v21 = vmul.f32 1.442695, %v11503_v37  ;;  %17400 = vmatpush3.msra.mxu0 %v19639_v5  ;;  %v12050_v41 = vsub.f32 %v11967_v14, %v19639_v5 }
 0xc1a   :  { %v11515_v22 = vpop.permute.xlu0 %11514  ;;  %17404 = vmatprep.subr.mxu0 %v18369_v0  ;;  %v12436_v11 = vpop.permute.xlu1 %12435 }
 0xc1b   :  { %18249 = vpow2.f32 %v11506_v21  ;;  %v19643_v18 = vand.u32 4294901760, %v11515_v22  ;;  %v12051_v48 = vand.u32 4294901760, %v12050_v41  ;;  %v12439_v10 = vsel %vm1354_vm2, %v12436_v11, 0 }
 0xc1c   :  { %v19689_v63 = vand.u32 4294901760, %v12439_v10 }
 0xc1d   :  { %17370 = vmatpush3.msra.mxu1 %v19643_v18  ;;  %v11598_v24 = vsub.f32 %v11515_v22, %v19643_v18  ;;  %v12052_v42 = vsub.f32 %v12050_v41, %v12051_v48 }
 0xc1e   :  { %17374 = vmatprep.subr.mxu1 %v18369_v0  ;;  %v12890_v35 = vpop.permute.xlu0 %12889  ;;  %v12438_v62 = vpop.permute.xlu1 %12437  ;;  %v12510_v21 = vsub.f32 %v12439_v10, %v19689_v63 }
 0xc1f   :  { %v11599_v31 = vand.u32 4294901760, %v11598_v24  ;;  %v12053_v27 = vand.u32 4294901760, %v12052_v42  ;;  %v12441_v43 = vsel %vm1354_vm2, %v12438_v62, 0  ;;  %v12893_v33 = vsel %vm1354_vm2, %v12890_v35, 0 }
 0xc20   :  { %v19692_v14 = vand.u32 4294901760, %v12441_v43  ;;  %v19699_v22 = vand.u32 4294901760, %v12893_v33 }
 0xc21   :  { %v19648_v53 = vpop.eup %18247  ;;  %v11600_v28 = vsub.f32 %v11598_v24, %v11599_v31 }
 0xc22   :  { %v11518_v54 = vsel %vm2263_vm4, %v19648_v53, 0  ;;  %v12892_v13 = vpop.permute.xlu0 %12891 }
 0xc23   :  { %v19652_v39 = vand.u32 4294901760, %v11518_v54  ;;  %v11601_v47 = vand.u32 4294901760, %v11600_v28  ;;  %v12895_v37 = vsel %vm1354_vm2, %v12892_v13, 0 }
 0xc25   :  { %v19655_v4 = vpop.eup %18249  ;;  %v11587_v2 = vsub.f32 %v11518_v54, %v19652_v39  ;;  %v19703_v54 = vand.u32 4294901760, %v12895_v37 }
 0xc26   :  { %v11970_v16 = vsel %vm2263_vm4, %v19655_v4, 0  ;;  %v11511_v12 = vsel %vm2263_vm4, %v19655_v4, 0.0 }
 0xc27   :  { %v19660_v38 = vand.u32 4294901760, %v11970_v16  ;;  %v11588_v44 = vand.u32 4294901760, %v11587_v2 }
 0xc29   :  { %v11589_v50 = vsub.f32 %v11587_v2, %v11588_v44  ;;  %v12039_v58 = vsub.f32 %v11970_v16, %v19660_v38  ;;  %v12975_v16 = vsub.f32 %v12895_v37, %v19703_v54 }
 0xc2b   :  { %v11590_v20 = vand.u32 4294901760, %v11589_v50  ;;  %v12040_v59 = vand.u32 4294901760, %v12039_v58  ;;  %v12976_v28 = vand.u32 4294901760, %v12975_v16 }
 0xc2d   :  { %17372 = vmatmul.mubr.f32.vlgmr.msra.gmra.mrb[24].mxu1 %v11590_v20  ;;  %v12041_v55 = vsub.f32 %v12039_v58, %v12040_v59  ;;  %v12977_v20 = vsub.f32 %v12975_v16, %v12976_v28 }
 0xc2e   :  { %17375 = vmatpush3.msra.mxu1 %v11601_v47  ;;  %17376 = vmatprep.mubr.msk.f32.mxu1 %vm18370_vm1, %v18369_v0 }
 0xc2f   :  { %v12042_v6 = vand.u32 4294901760, %v12041_v55  ;;  %17379 = vmatprep.subr.mxu1 %v18369_v0 }
 0xc31   :  { %17402 = vmatmul.mubr.f32.vlgmr.msra.gmra.mrb[26].mxu0 %v12042_v6 }
 0xc32   :  { %17405 = vmatpush3.msra.mxu0 %v12053_v27  ;;  %17406 = vmatprep.mubr.msk.f32.mxu0 %vm18370_vm1, %v18369_v0 }
 0xc33   :  { %17409 = vmatprep.subr.mxu0 %v18369_v0 }
 0xc35   :  { %17377 = vmatmul.mubr.f32.vlgmr.msra.gmra.mrb[24].mxu1 %v19652_v39 }
 0xc36   :  { %17380 = vmatpush3.msra.mxu1 %v11598_v24  ;;  %17381 = vmatprep.mubr.msk.f32.mxu1 %vm18370_vm1, %v18369_v0  ;;  %v12521_v24 = vsub.f32 %v12441_v43, %v19692_v14 }
 0xc37   :  { %17384 = vmatprep.subr.mxu1 %v18369_v0 }
 0xc39   :  { %17407 = vmatmul.mubr.f32.vlgmr.msra.gmra.mrb[26].mxu0 %v19660_v38 }
 0xc3a   :  { %17410 = vmatpush3.msra.mxu0 %v12050_v41  ;;  %17411 = vmatprep.mubr.msk.f32.mxu0 %vm18370_vm1, %v18369_v0  ;;  %v12511_v41 = vand.u32 4294901760, %v12510_v21 }
 0xc3b   :  { %17414 = vmatprep.subr.mxu0 %v18369_v0 }
 0xc3d   :  { %17382 = vmatmul.mubr.f32.vlgmr.msra.gmra.mrb[24].mxu1 %v11587_v2  ;;  %v12522_v2 = vand.u32 4294901760, %v12521_v24 }
 0xc3e   :  { %17385 = vmatpush3.msra.mxu1 %v19643_v18  ;;  %17386 = vmatprep.mubr.msk.f32.mxu1 %vm18370_vm1, %v18369_v0 }
 0xc3f   :  { %17389 = vmatprep.subr.mxu1 %v18369_v0 }
 0xc41   :  { %17412 = vmatmul.mubr.f32.vlgmr.msra.gmra.mrb[26].mxu0 %v12039_v58 }
 0xc42   :  { %17415 = vmatpush3.msra.mxu0 %v19639_v5  ;;  %17416 = vmatprep.mubr.msk.f32.mxu0 %vm18370_vm1, %v18369_v0 }
 0xc43   :  { %17419 = vmatprep.subr.mxu0 %v18369_v0 }
 0xc45   :  { %17387 = vmatmul.mubr.f32.vlgmr.msra.gmra.mrb[24].mxu1 %v11588_v44  ;;  %v12512_v44 = vsub.f32 %v12510_v21, %v12511_v41 }
 0xc46   :  { %17390 = vmatpush3.msra.mxu1 %v11599_v31  ;;  %17391 = vmatprep.mubr.msk.f32.mxu1 %vm18370_vm1, %v18369_v0  ;;  %v12964_v31 = vsub.f32 %v12893_v33, %v19699_v22 }
 0xc47   :  { %17394 = vmatprep.subr.mxu1 %v18369_v0  ;;  %v12513_v50 = vand.u32 4294901760, %v12512_v44 }
 0xc49   :  { %17417 = vmatmul.mubr.f32.vlgmr.msra.gmra.mrb[26].mxu0 %v12040_v59 }
 0xc4a   :  { %17420 = vmatpush3.msra.mxu0 %v12051_v48  ;;  %17421 = vmatprep.mubr.msk.f32.mxu0 %vm18370_vm1, %v18369_v0  ;;  %v12523_v48 = vsub.f32 %v12521_v24, %v12522_v2 }
 0xc4b   :  { %17424 = vmatprep.subr.mxu0 %v18369_v0 }
 0xc4d   :  { %17392 = vmatmul.mubr.f32.vlgmr.msra.gmra.mrb[24].mxu1 %v19652_v39 }
 0xc4e   :  { %17395 = vmatpush3.msra.mxu1 %v19643_v18  ;;  %17396 = vmatprep.mubr.msk.f32.mxu1 %vm18370_vm1, %v18369_v0  ;;  %v12965_v18 = vand.u32 4294901760, %v12964_v31 }
 0xc4f   :  { %17429 = vmatprep.subr.mxu1 %v18369_v0 }
 0xc50   :  { %v12966_v58 = vsub.f32 %v12964_v31, %v12965_v18 }
 0xc51   :  { %17422 = vmatmul.mubr.f32.vlgmr.msra.gmra.mrb[26].mxu0 %v19660_v38 }
 0xc52   :  { %17425 = vmatpush3.msra.mxu0 %v19639_v5  ;;  %17426 = vmatprep.mubr.msk.f32.mxu0 %vm18370_vm1, %v18369_v0  ;;  %v12524_v5 = vand.u32 4294901760, %v12523_v48  ;;  %v12967_v59 = vand.u32 4294901760, %v12966_v58 }
 0xc53   :  { %17459 = vmatprep.subr.mxu0 %v18369_v0 }
 0xc55   :  { %17397 = vmatmul.mubr.f32.vlgmr.msra.gmra.mrb[24].mxu1 %v19652_v39  ;;  %v12978_v39 = vand.u32 4294901760, %v12977_v20 }
 0xc56   :  { %17430 = vmatpush3.xpose.msra.mxu1 %v19692_v14  ;;  %17431 = vmatprep.mubr.msk.f32.mxu1 %vm18370_vm1, %v18369_v0 }
 0xc57   :  { %17434 = vmatprep.subr.mxu1 %v18369_v0 }
 0xc59   :  { %17427 = vmatmul.mubr.f32.vlgmr.msra.gmra.mrb[26].mxu0 %v19660_v38  ;;  %17432 = vmatmul.mubr.f32.vlgmr.msra.gmra.mrb[26].mxu1 %v12513_v50 }
 0xc5a   :  { %17435 = vmatpush3.xpose.msra.mxu1 %v12524_v5  ;;  %17460 = vmatpush3.xpose.msra.mxu0 %v19703_v54 }
 0xc5b   :  { %17461 = vmatprep.mubr.msk.f32.mxu0 %vm18370_vm1, %v18369_v0  ;;  %17464 = vmatprep.subr.mxu0 %v18369_v0 }
 0xc5c   :  { %17436 = vmatprep.mubr.msk.f32.mxu1 %vm18370_vm1, %v18369_v0  ;;  %17439 = vmatprep.subr.mxu1 %v18369_v0 }
 0xc5d   :  { %17462 = vmatmul.mubr.f32.vlgmr.msra.gmra.mrb[28].mxu0 %v12967_v59 }
 0xc5e   :  { %17465 = vmatpush3.xpose.msra.mxu0 %v12978_v39  ;;  %17466 = vmatprep.mubr.msk.f32.mxu0 %vm18370_vm1, %v18369_v0 }
 0xc5f   :  { %17469 = vmatprep.subr.mxu0 %v18369_v0 }
 0xc61   :  { %17437 = vmatmul.mubr.f32.vlgmr.msra.gmra.mrb[26].mxu1 %v19689_v63 }
 0xc62   :  { %17440 = vmatpush3.xpose.msra.mxu1 %v12521_v24  ;;  %17441 = vmatprep.mubr.msk.f32.mxu1 %vm18370_vm1, %v18369_v0 }
 0xc63   :  { %17444 = vmatprep.subr.mxu1 %v18369_v0 }
 0xc65   :  { %17467 = vmatmul.mubr.f32.vlgmr.msra.gmra.mrb[28].mxu0 %v19699_v22 }
 0xc66   :  { %17470 = vmatpush3.xpose.msra.mxu0 %v12975_v16  ;;  %17471 = vmatprep.mubr.msk.f32.mxu0 %vm18370_vm1, %v18369_v0 }
 0xc67   :  { %17474 = vmatprep.subr.mxu0 %v18369_v0 }
 0xc69   :  { %17442 = vmatmul.mubr.f32.vlgmr.msra.gmra.mrb[26].mxu1 %v12510_v21 }
 0xc6a   :  { %17445 = vmatpush3.xpose.msra.mxu1 %v19692_v14  ;;  %17446 = vmatprep.mubr.msk.f32.mxu1 %vm18370_vm1, %v18369_v0 }
 0xc6b   :  { %17449 = vmatprep.subr.mxu1 %v18369_v0 }
 0xc6d   :  { %17472 = vmatmul.mubr.f32.vlgmr.msra.gmra.mrb[28].mxu0 %v12964_v31 }
 0xc6e   :  { %17475 = vmatpush3.xpose.msra.mxu0 %v19703_v54  ;;  %17476 = vmatprep.mubr.msk.f32.mxu0 %vm18370_vm1, %v18369_v0 }
 0xc6f   :  { %17479 = vmatprep.subr.mxu0 %v18369_v0 }
 0xc71   :  { %17447 = vmatmul.mubr.f32.vlgmr.msra.gmra.mrb[26].mxu1 %v12511_v41 }
 0xc72   :  { %17450 = vmatpush3.xpose.msra.mxu1 %v12522_v2  ;;  %17451 = vmatprep.mubr.msk.f32.mxu1 %vm18370_vm1, %v18369_v0 }
 0xc73   :  { %17454 = vmatprep.subr.mxu1 %v18369_v0 }
 0xc75   :  { %17477 = vmatmul.mubr.f32.vlgmr.msra.gmra.mrb[28].mxu0 %v12965_v18 }
 0xc76   :  { %17480 = vmatpush3.xpose.msra.mxu0 %v12976_v28  ;;  %17481 = vmatprep.mubr.msk.f32.mxu0 %vm18370_vm1, %v18369_v0 }
 0xc77   :  { %17484 = vmatprep.subr.mxu0 %v18369_v0 }
 0xc79   :  { %17452 = vmatmul.mubr.f32.vlgmr.msra.gmra.mrb[26].mxu1 %v19689_v63 }
 0xc7a   :  { %17455 = vmatpush3.xpose.msra.mxu1 %v19692_v14  ;;  %17456 = vmatprep.mubr.msk.f32.mxu1 %vm18370_vm1, %v18369_v0 }
 0xc7b   :  { %17489 = vmatprep.subr.mxu1 %v18369_v0 }
 0xc7d   :  { %17482 = vmatmul.mubr.f32.vlgmr.msra.gmra.mrb[28].mxu0 %v19699_v22 }
 0xc7e   :  { %17485 = vmatpush3.xpose.msra.mxu0 %v19703_v54  ;;  %17486 = vmatprep.mubr.msk.f32.mxu0 %vm18370_vm1, %v18369_v0 }
 0xc7f   :  { %17519 = vmatprep.subr.mxu0 %v18369_v0 }
 0xc81   :  { %17457 = vmatmul.mubr.f32.vlgmr.msra.gmra.mrb[26].mxu1 %v19689_v63 }
 0xc82   :  { %17491 = vmatprep.mubr.msk.f32.mxu1 %vm18370_vm1, %v18369_v0 }
 0xc85   :  { %17487 = vmatmul.mubr.f32.vlgmr.msra.gmra.mrb[28].mxu0 %v19699_v22 }
 0xc86   :  { %17521 = vmatprep.mubr.msk.f32.mxu0 %vm18370_vm1, %v18369_v0 }
 0xd28   :  { %v19771_v38 = vpop.f32.mrb[24].mxu1 }
 0xd29   :  { %v17398_v42 = vpop.f32.mrb[25].mxu1 }
 0xd2c   :  { %v19773_v47 = vpop.f32.mrb[26].mxu0 }
 0xd2d   :  { %v17428_v55 = vpop.f32.mrb[27].mxu0 }
 0xd54   :  { %v12885_v6 = vpop.f32.mrb[26].mxu1 }
 0xd55   :  { %v13343_v27 = vsel %vm18863_vm3, %v12885_v6, -inf  ;;  %v17458_v11 = vpop.f32.mrb[27].mxu1 }
 0xd56   :  { %v13345_v35 = vsel %vm2263_vm4, %v13343_v27, -inf }
 0xd57   :  { %13346 = vmax.xlane.f32.xlu1 %v13345_v35 }
 0xd58   :  { %v13339_v62 = vpop.f32.mrb[28].mxu0 }
 0xd59   :  { %v13344_v10 = vsel %vm18863_vm3, %v13339_v62, -inf  ;;  %v17488_v43 = vpop.f32.mrb[29].mxu0 }
 0xd5a   :  { %v13348_v13 = vsel %vm2263_vm4, %v13344_v10, -inf }
 0xd5b   :  { %13349 = vmax.xlane.f32.xlu0 %v13348_v13 }
 0xd68   :  { %13815 = vrot.lane.b32.xlu1 %v18824_v30, %s18376_s12 }
 0xd6c   :  { %14284 = vrot.lane.b32.xlu1 %v18775_v57, %s18377_s13 }
 0xd70   :  { %14286 = vrot.lane.b32.xlu1 %v18773_v56, %s18377_s13 }
 0xd71   :  { %13363 = vrot.lane.b32.xlu0 %v18827_v29, %s18376_s12 }
 0xd75   :  { %14738 = vrot.lane.b32.xlu0 %v18791_v9, %s18377_s13 }
 0xd79   :  { %14740 = vrot.lane.b32.xlu0 %v18787_v7, %s18377_s13 }
 0xde4   :  { %v13347_v63 = vpop.xlane.xlu1 %13346 }
 0xde5   :  { %v13351_v14 = vsub.f32 %v13343_v27, %v13347_v63 }
 0xde7   :  { %v13353_v33 = vmul.f32 1.442695, %v13351_v14 }
 0xde8   :  { %v13816_v37 = vpop.permute.xlu1 %13815  ;;  %v13350_v21 = vpop.xlane.xlu0 %13349 }
 0xde9   :  { %18251 = vpow2.f32 %v13353_v33  ;;  %v19793_v22 = vand.u32 4294901760, %v13816_v37  ;;  %v13352_v57 = vsub.f32 %v13344_v10, %v13350_v21 }
 0xdeb   :  { %v13355_v24 = vmul.f32 1.442695, %v13352_v57  ;;  %17520 = vmatpush3.msra.mxu0 %v19793_v22  ;;  %v13899_v2 = vsub.f32 %v13816_v37, %v19793_v22 }
 0xdec   :  { %v13364_v56 = vpop.permute.xlu0 %13363  ;;  %17524 = vmatprep.subr.mxu0 %v18369_v0  ;;  %v14285_v62 = vpop.permute.xlu1 %14284 }
 0xded   :  { %18253 = vpow2.f32 %v13355_v24  ;;  %v19797_v9 = vand.u32 4294901760, %v13364_v56  ;;  %v13900_v58 = vand.u32 4294901760, %v13899_v2  ;;  %v14288_v13 = vsel %vm1354_vm2, %v14285_v62, 0 }
 0xdee   :  { %v19843_v33 = vand.u32 4294901760, %v14288_v13 }
 0xdef   :  { %17490 = vmatpush3.msra.mxu1 %v19797_v9  ;;  %v13447_v7 = vsub.f32 %v13364_v56, %v19797_v9  ;;  %v13901_v55 = vsub.f32 %v13899_v2, %v13900_v58 }
 0xdf0   :  { %17494 = vmatprep.subr.mxu1 %v18369_v0  ;;  %v14739_v10 = vpop.permute.xlu0 %14738  ;;  %v14287_v43 = vpop.permute.xlu1 %14286  ;;  %v14359_v24 = vsub.f32 %v14288_v13, %v19843_v33 }
 0xdf1   :  { %v13448_v16 = vand.u32 4294901760, %v13447_v7  ;;  %v13902_v35 = vand.u32 4294901760, %v13901_v55  ;;  %v14290_v63 = vsel %vm1354_vm2, %v14287_v43, 0  ;;  %v14742_v21 = vsel %vm1354_vm2, %v14739_v10, 0 }
 0xdf2   :  { %v19846_v37 = vand.u32 4294901760, %v14290_v63  ;;  %v19853_v56 = vand.u32 4294901760, %v14742_v21 }
 0xdf3   :  { %v19802_v54 = vpop.eup %18251  ;;  %v13449_v5 = vsub.f32 %v13447_v7, %v13448_v16 }
 0xdf4   :  { %v13367_v41 = vsel %vm2263_vm4, %v19802_v54, 0  ;;  %v14741_v14 = vpop.permute.xlu0 %14740 }
 0xdf5   :  { %v19806_v31 = vand.u32 4294901760, %v13367_v41  ;;  %v13450_v6 = vand.u32 4294901760, %v13449_v5  ;;  %v14744_v57 = vsel %vm1354_vm2, %v14741_v14, 0 }
 0xdf7   :  { %v19809_v44 = vpop.eup %18253  ;;  %v13436_v18 = vsub.f32 %v13367_v41, %v19806_v31  ;;  %v19857_v41 = vand.u32 4294901760, %v14744_v57 }
 0xdf8   :  { %v13819_v48 = vsel %vm2263_vm4, %v19809_v44, 0 }
 0xdf9   :  { %v19814_v28 = vand.u32 4294901760, %v13819_v48  ;;  %v13437_v50 = vand.u32 4294901760, %v13436_v18 }
 0xdfb   :  { %v13438_v20 = vsub.f32 %v13436_v18, %v13437_v50  ;;  %v13888_v59 = vsub.f32 %v13819_v48, %v19814_v28  ;;  %v14824_v48 = vsub.f32 %v14744_v57, %v19857_v41 }
 0xdfd   :  { %v13439_v39 = vand.u32 4294901760, %v13438_v20  ;;  %v13889_v42 = vand.u32 4294901760, %v13888_v59  ;;  %v14825_v5 = vand.u32 4294901760, %v14824_v48 }
 0xdff   :  { %17492 = vmatmul.mubr.f32.vlgmr.msra.gmra.mrb[28].mxu1 %v13439_v39  ;;  %v13890_v27 = vsub.f32 %v13888_v59, %v13889_v42  ;;  %v14826_v39 = vsub.f32 %v14824_v48, %v14825_v5 }
 0xe00   :  { %17495 = vmatpush3.msra.mxu1 %v13450_v6  ;;  %17496 = vmatprep.mubr.msk.f32.mxu1 %vm18370_vm1, %v18369_v0 }
 0xe01   :  { %v13891_v11 = vand.u32 4294901760, %v13890_v27  ;;  %17499 = vmatprep.subr.mxu1 %v18369_v0 }
 0xe03   :  { %17522 = vmatmul.mubr.f32.vlgmr.msra.gmra.mrb[30].mxu0 %v13891_v11 }
 0xe04   :  { %17525 = vmatpush3.msra.mxu0 %v13902_v35  ;;  %17526 = vmatprep.mubr.msk.f32.mxu0 %vm18370_vm1, %v18369_v0 }
 0xe05   :  { %17529 = vmatprep.subr.mxu0 %v18369_v0 }
 0xe07   :  { %17497 = vmatmul.mubr.f32.vlgmr.msra.gmra.mrb[28].mxu1 %v19806_v31 }
 0xe08   :  { %17500 = vmatpush3.msra.mxu1 %v13447_v7  ;;  %17501 = vmatprep.mubr.msk.f32.mxu1 %vm18370_vm1, %v18369_v0  ;;  %v14370_v7 = vsub.f32 %v14290_v63, %v19846_v37 }
 0xe09   :  { %17504 = vmatprep.subr.mxu1 %v18369_v0 }
 0xe0b   :  { %17527 = vmatmul.mubr.f32.vlgmr.msra.gmra.mrb[30].mxu0 %v19814_v28 }
 0xe0c   :  { %17530 = vmatpush3.msra.mxu0 %v13899_v2  ;;  %17531 = vmatprep.mubr.msk.f32.mxu0 %vm18370_vm1, %v18369_v0  ;;  %v14360_v2 = vand.u32 4294901760, %v14359_v24 }
 0xe0d   :  { %17534 = vmatprep.subr.mxu0 %v18369_v0 }
 0xe0f   :  { %17502 = vmatmul.mubr.f32.vlgmr.msra.gmra.mrb[28].mxu1 %v13436_v18  ;;  %v14371_v18 = vand.u32 4294901760, %v14370_v7 }
 0xe10   :  { %17505 = vmatpush3.msra.mxu1 %v19797_v9  ;;  %17506 = vmatprep.mubr.msk.f32.mxu1 %vm18370_vm1, %v18369_v0 }
 0xe11   :  { %17509 = vmatprep.subr.mxu1 %v18369_v0 }
 0xe13   :  { %17532 = vmatmul.mubr.f32.vlgmr.msra.gmra.mrb[30].mxu0 %v13888_v59 }
 0xe14   :  { %17535 = vmatpush3.msra.mxu0 %v19793_v22  ;;  %17536 = vmatprep.mubr.msk.f32.mxu0 %vm18370_vm1, %v18369_v0 }
 0xe15   :  { %17539 = vmatprep.subr.mxu0 %v18369_v0 }
 0xe17   :  { %17507 = vmatmul.mubr.f32.vlgmr.msra.gmra.mrb[28].mxu1 %v13437_v50  ;;  %v14361_v50 = vsub.f32 %v14359_v24, %v14360_v2 }
 0xe18   :  { %17510 = vmatpush3.msra.mxu1 %v13448_v16  ;;  %17511 = vmatprep.mubr.msk.f32.mxu1 %vm18370_vm1, %v18369_v0  ;;  %v14813_v16 = vsub.f32 %v14742_v21, %v19853_v56  ;;  %v7813_v21 = vsel %vm2263_vm4, %v19347_v51, 0.0  ;;  %v11508_v51 = vsel %vm2263_vm4, %v19648_v53, 0.0 }
 0xe19   :  { %17514 = vmatprep.subr.mxu1 %v18369_v0  ;;  %v14362_v20 = vand.u32 4294901760, %v14361_v50 }
 0xe1b   :  { %17537 = vmatmul.mubr.f32.vlgmr.msra.gmra.mrb[30].mxu0 %v13889_v42 }
 0xe1c   :  { %17540 = vmatpush3.msra.mxu0 %v13900_v58  ;;  %17541 = vmatprep.mubr.msk.f32.mxu0 %vm18370_vm1, %v18369_v0  ;;  %v14372_v58 = vsub.f32 %v14370_v7, %v14371_v18 }
 0xe1d   :  { %17544 = vmatprep.subr.mxu0 %v18369_v0 }
 0xe1f   :  { %17512 = vmatmul.mubr.f32.vlgmr.msra.gmra.mrb[28].mxu1 %v19806_v31 }
 0xe20   :  { %17515 = vmatpush3.msra.mxu1 %v19797_v9  ;;  %17516 = vmatprep.mubr.msk.f32.mxu1 %vm18370_vm1, %v18369_v0  ;;  %v14814_v9 = vand.u32 4294901760, %v14813_v16 }
 0xe21   :  { %17549 = vmatprep.subr.mxu1 %v18369_v0 }
 0xe22   :  { %v14815_v59 = vsub.f32 %v14813_v16, %v14814_v9 }
 0xe23   :  { %17542 = vmatmul.mubr.f32.vlgmr.msra.gmra.mrb[30].mxu0 %v19814_v28 }
 0xe24   :  { %17545 = vmatpush3.msra.mxu0 %v19793_v22  ;;  %17546 = vmatprep.mubr.msk.f32.mxu0 %vm18370_vm1, %v18369_v0  ;;  %v14373_v22 = vand.u32 4294901760, %v14372_v58  ;;  %v14816_v42 = vand.u32 4294901760, %v14815_v59  ;;  %v2276_v59 = vsel %vm2263_vm4, %v18877_v15, 0.0 }
 0xe25   :  { %17579 = vmatprep.subr.mxu0 %v18369_v0 }
 0xe27   :  { %17517 = vmatmul.mubr.f32.vlgmr.msra.gmra.mrb[28].mxu1 %v19806_v31  ;;  %v14827_v31 = vand.u32 4294901760, %v14826_v39 }
 0xe28   :  { %17550 = vmatpush3.xpose.msra.mxu1 %v19846_v37  ;;  %17551 = vmatprep.mubr.msk.f32.mxu1 %vm18370_vm1, %v18369_v0 }
 0xe29   :  { %17554 = vmatprep.subr.mxu1 %v18369_v0 }
 0xe2b   :  { %17547 = vmatmul.mubr.f32.vlgmr.msra.gmra.mrb[30].mxu0 %v19814_v28  ;;  %17552 = vmatmul.mubr.f32.vlgmr.msra.gmra.mrb[30].mxu1 %v14362_v20 }
 0xe2c   :  { %17555 = vmatpush3.xpose.msra.mxu1 %v14373_v22  ;;  %17580 = vmatpush3.xpose.msra.mxu0 %v19857_v41 }
 0xe2d   :  { %17581 = vmatprep.mubr.msk.f32.mxu0 %vm18370_vm1, %v18369_v0  ;;  %17584 = vmatprep.subr.mxu0 %v18369_v0 }
 0xe2e   :  { %17556 = vmatprep.mubr.msk.f32.mxu1 %vm18370_vm1, %v18369_v0  ;;  %17559 = vmatprep.subr.mxu1 %v18369_v0 }
 0xe2f   :  { %17582 = vmatmul.mubr.f32.vlgmr.msra.gmra.mrb[32].mxu0 %v14816_v42 }
 0xe30   :  { %17585 = vmatpush3.xpose.msra.mxu0 %v14827_v31  ;;  %17586 = vmatprep.mubr.msk.f32.mxu0 %vm18370_vm1, %v18369_v0 }
 0xe31   :  { %17589 = vmatprep.subr.mxu0 %v18369_v0 }
 0xe33   :  { %17557 = vmatmul.mubr.f32.vlgmr.msra.gmra.mrb[30].mxu1 %v19843_v33 }
 0xe34   :  { %17560 = vmatpush3.xpose.msra.mxu1 %v14370_v7  ;;  %17561 = vmatprep.mubr.msk.f32.mxu1 %vm18370_vm1, %v18369_v0 }
 0xe35   :  { %17564 = vmatprep.subr.mxu1 %v18369_v0 }
 0xe37   :  { %17587 = vmatmul.mubr.f32.vlgmr.msra.gmra.mrb[32].mxu0 %v19853_v56 }
 0xe38   :  { %17590 = vmatpush3.xpose.msra.mxu0 %v14824_v48  ;;  %17591 = vmatprep.mubr.msk.f32.mxu0 %vm18370_vm1, %v18369_v0 }
 0xe39   :  { %17594 = vmatprep.subr.mxu0 %v18369_v0 }
 0xe3b   :  { %17562 = vmatmul.mubr.f32.vlgmr.msra.gmra.mrb[30].mxu1 %v14359_v24 }
 0xe3c   :  { %17565 = vmatpush3.xpose.msra.mxu1 %v19846_v37  ;;  %17566 = vmatprep.mubr.msk.f32.mxu1 %vm18370_vm1, %v18369_v0 }
 0xe3d   :  { %17569 = vmatprep.subr.mxu1 %v18369_v0 }
 0xe3f   :  { %17592 = vmatmul.mubr.f32.vlgmr.msra.gmra.mrb[32].mxu0 %v14813_v16 }
 0xe40   :  { %17595 = vmatpush3.xpose.msra.mxu0 %v19857_v41  ;;  %17596 = vmatprep.mubr.msk.f32.mxu0 %vm18370_vm1, %v18369_v0 }
 0xe41   :  { %17599 = vmatprep.subr.mxu0 %v18369_v0 }
 0xe43   :  { %17567 = vmatmul.mubr.f32.vlgmr.msra.gmra.mrb[30].mxu1 %v14360_v2 }
 0xe44   :  { %17570 = vmatpush3.xpose.msra.mxu1 %v14371_v18  ;;  %17571 = vmatprep.mubr.msk.f32.mxu1 %vm18370_vm1, %v18369_v0 }
 0xe45   :  { %17574 = vmatprep.subr.mxu1 %v18369_v0 }
 0xe47   :  { %17597 = vmatmul.mubr.f32.vlgmr.msra.gmra.mrb[32].mxu0 %v14814_v9 }
 0xe48   :  { %17600 = vmatpush3.xpose.msra.mxu0 %v14825_v5  ;;  %17601 = vmatprep.mubr.msk.f32.mxu0 %vm18370_vm1, %v18369_v0 }
 0xe49   :  { %17604 = vmatprep.subr.mxu0 %v18369_v0 }
 0xe4b   :  { %17572 = vmatmul.mubr.f32.vlgmr.msra.gmra.mrb[30].mxu1 %v19843_v33 }
 0xe4c   :  { %17575 = vmatpush3.xpose.msra.mxu1 %v19846_v37  ;;  %17576 = vmatprep.mubr.msk.f32.mxu1 %vm18370_vm1, %v18369_v0  ;;  %v5964_v37 = vsel %vm2263_vm4, %v19193_v49, 0.0  ;;  %v9659_v49 = vsel %vm2263_vm4, %v19494_v45, 0.0 }
 0xe4d   :  { %17609 = vmatprep.subr.mxu1 %v18369_v0 }
 0xe4f   :  { %17602 = vmatmul.mubr.f32.vlgmr.msra.gmra.mrb[32].mxu0 %v19853_v56 }
 0xe50   :  { %17605 = vmatpush3.xpose.msra.mxu0 %v19857_v41  ;;  %17606 = vmatprep.mubr.msk.f32.mxu0 %vm18370_vm1, %v18369_v0 }
 0xe51   :  { %17639 = vmatprep.subr.mxu0 %v18369_v0 }
 0xe53   :  { %17577 = vmatmul.mubr.f32.vlgmr.msra.gmra.mrb[30].mxu1 %v19843_v33  ;;  %v4110_v33 = vsel %vm2263_vm4, %v19032_v52, 0.0  ;;  %v7810_v52 = vsel %vm2263_vm4, %v19340_v60, 0.0  ;;  %v13357_v60 = vsel %vm2263_vm4, %v19802_v54, 0.0 }
 0xe54   :  { %17611 = vmatprep.mubr.msk.f32.mxu1 %vm18370_vm1, %v18369_v0 }
 0xe57   :  { %17607 = vmatmul.mubr.f32.vlgmr.msra.gmra.mrb[32].mxu0 %v19853_v56 }
 0xe58   :  { %17641 = vmatprep.mubr.msk.f32.mxu0 %vm18370_vm1, %v18369_v0 }
 0xefa   :  { %v19925_v28 = vpop.f32.mrb[28].mxu1 }
 0xefb   :  { %v17518_v55 = vpop.f32.mrb[29].mxu1 }
 0xefe   :  { %v19927_v6 = vpop.f32.mrb[30].mxu0 }
 0xeff   :  { %v17548_v27 = vpop.f32.mrb[31].mxu0 }
 0xf26   :  { %v14734_v11 = vpop.f32.mrb[30].mxu1 }
 0xf27   :  { %v15192_v35 = vsel %vm18863_vm3, %v14734_v11, -inf  ;;  %v17578_v62 = vpop.f32.mrb[31].mxu1 }
 0xf28   :  { %v15194_v10 = vsel %vm2263_vm4, %v15192_v35, -inf }
 0xf29   :  { %15195 = vmax.xlane.f32.xlu1 %v15194_v10 }
 0xf2a   :  { %v15188_v43 = vpop.f32.mrb[32].mxu0 }
 0xf2b   :  { %v15193_v13 = vsel %vm18863_vm3, %v15188_v43, -inf  ;;  %v17608_v63 = vpop.f32.mrb[33].mxu0 }
 0xf2c   :  { %v15197_v14 = vsel %vm2263_vm4, %v15193_v13, -inf }
 0xf2d   :  { %15198 = vmax.xlane.f32.xlu0 %v15197_v14 }
 0xf3a   :  { %15664 = vrot.lane.b32.xlu1 %v18824_v30, %s18377_s13  ;;  %v5961_v30 = vsel %vm2263_vm4, %v19186_v3, 0.0  ;;  %v13360_v3 = vsel %vm2263_vm4, %v19809_v44, 0.0 }
 0xf43   :  { %15212 = vrot.lane.b32.xlu0 %v18827_v29, %s18377_s13  ;;  %v9662_v29 = vsel %vm2263_vm4, %v19501_v23, 0.0 }
 0xf5e   :  { %4111 = vadd.xlane.f32.xlu1 %v4110_v33 }
 0xf62   :  { %5965 = vadd.xlane.f32.xlu1 %v5964_v37  ;;  %4114 = vadd.xlane.f32.xlu0 %v4113_v17 }
 0xf66   :  { %7814 = vadd.xlane.f32.xlu1 %v7813_v21  ;;  %5962 = vadd.xlane.f32.xlu0 %v5961_v30 }
 0xf6a   :  { %9663 = vadd.xlane.f32.xlu1 %v9662_v29  ;;  %7811 = vadd.xlane.f32.xlu0 %v7810_v52 }
 0xf6e   :  { %11512 = vadd.xlane.f32.xlu1 %v11511_v12  ;;  %9660 = vadd.xlane.f32.xlu0 %v9659_v49 }
 0xf72   :  { %13361 = vadd.xlane.f32.xlu1 %v13360_v3  ;;  %11509 = vadd.xlane.f32.xlu0 %v11508_v51 }
 0xf76   :  { %13358 = vadd.xlane.f32.xlu0 %v13357_v60 }
 0xfb6   :  { %v15196_v23 = vpop.xlane.xlu1 %15195 }
 0xfb7   :  { %v15200_v57 = vsub.f32 %v15192_v35, %v15196_v23  ;;  %v2279_v35 = vsel %vm2263_vm4, %v18885_v25, 0.0 }
 0xfb9   :  { %v15202_v4 = vmul.f32 1.442695, %v15200_v57 }
 0xfba   :  { %v15665_v24 = vpop.permute.xlu1 %15664  ;;  %v15199_v56 = vpop.xlane.xlu0 %15198 }
 0xfbb   :  { %18255 = vpow2.f32 %v15202_v4  ;;  %v19963_v45 = vand.u32 4294901760, %v15665_v24  ;;  %v15201_v7 = vsub.f32 %v15193_v13, %v15199_v56 }
 0xfbd   :  { %v15204_v41 = vmul.f32 1.442695, %v15201_v7  ;;  %17640 = vmatpush3.msra.mxu0 %v19963_v45  ;;  %v15748_v50 = vsub.f32 %v15665_v24, %v19963_v45 }
 0xfbe   :  { %v15213_v44 = vpop.permute.xlu0 %15212  ;;  %17644 = vmatprep.subr.mxu0 %v18369_v0 }
 0xfbf   :  { %18257 = vpow2.f32 %v15204_v41  ;;  %v19967_v53 = vand.u32 4294901760, %v15213_v44  ;;  %v15749_v31 = vand.u32 4294901760, %v15748_v50 }
 0xfc1   :  { %17610 = vmatpush3.msra.mxu1 %v19967_v53  ;;  %v15296_v54 = vsub.f32 %v15213_v44, %v19967_v53  ;;  %v15750_v43 = vsub.f32 %v15748_v50, %v15749_v31 }
 0xfc2   :  { %17614 = vmatprep.subr.mxu1 %v18369_v0 }
 0xfc3   :  { %v15297_v9 = vand.u32 4294901760, %v15296_v54  ;;  %v15751_v14 = vand.u32 4294901760, %v15750_v43 }
 0xfc5   :  { %v18256_v2 = vpop.eup %18255  ;;  %v15298_v55 = vsub.f32 %v15296_v54, %v15297_v9 }
 0xfc6   :  { %v15216_v16 = vsel %vm2263_vm4, %v18256_v2, 0  ;;  %v15206_v18 = vsel %vm2263_vm4, %v18256_v2, 0.0 }
 0xfc7   :  { %v19974_v48 = vand.u32 4294901760, %v15216_v16  ;;  %15207 = vadd.xlane.f32.xlu0 %v15206_v18  ;;  %v15299_v15 = vand.u32 4294901760, %v15298_v55 }
 0xfc9   :  { %v18258_v58 = vpop.eup %18257  ;;  %v15285_v5 = vsub.f32 %v15216_v16, %v19974_v48 }
 0xfca   :  { %v15668_v20 = vsel %vm2263_vm4, %v18258_v58, 0  ;;  %v15209_v22 = vsel %vm2263_vm4, %v18258_v58, 0.0 }
 0xfcb   :  { %v19982_v39 = vand.u32 4294901760, %v15668_v20  ;;  %2277 = vadd.xlane.f32.xlu0 %v2276_v59  ;;  %15210 = vadd.xlane.f32.xlu1 %v15209_v22  ;;  %v15286_v42 = vand.u32 4294901760, %v15285_v5 }
 0xfcd   :  { %v15287_v27 = vsub.f32 %v15285_v5, %v15286_v42  ;;  %v15737_v11 = vsub.f32 %v15668_v20, %v19982_v39 }
 0xfcf   :  { %2280 = vadd.xlane.f32.xlu1 %v2279_v35  ;;  %v15288_v62 = vand.u32 4294901760, %v15287_v27  ;;  %v15738_v10 = vand.u32 4294901760, %v15737_v11 }
 0xfd1   :  { %17612 = vmatmul.mubr.f32.vlgmr.msra.gmra.mrb[32].mxu1 %v15288_v62  ;;  %v15739_v13 = vsub.f32 %v15737_v11, %v15738_v10 }
 0xfd2   :  { %17615 = vmatpush3.msra.mxu1 %v15299_v15  ;;  %17616 = vmatprep.mubr.msk.f32.mxu1 %vm18370_vm1, %v18369_v0 }
 0xfd3   :  { %v15740_v63 = vand.u32 4294901760, %v15739_v13  ;;  %17619 = vmatprep.subr.mxu1 %v18369_v0 }
 0xfd5   :  { %17642 = vmatmul.mubr.f32.vlgmr.msra.gmra.mrb[34].mxu0 %v15740_v63 }
 0xfd6   :  { %17645 = vmatpush3.msra.mxu0 %v15751_v14  ;;  %17646 = vmatprep.mubr.msk.f32.mxu0 %vm18370_vm1, %v18369_v0 }
 0xfd7   :  { %17649 = vmatprep.subr.mxu0 %v18369_v0 }
 0xfd9   :  { %17617 = vmatmul.mubr.f32.vlgmr.msra.gmra.mrb[32].mxu1 %v19974_v48 }
 0xfda   :  { %17620 = vmatpush3.msra.mxu1 %v15296_v54  ;;  %17621 = vmatprep.mubr.msk.f32.mxu1 %vm18370_vm1, %v18369_v0 }
 0xfdb   :  { %17624 = vmatprep.subr.mxu1 %v18369_v0 }
 0xfdd   :  { %17647 = vmatmul.mubr.f32.vlgmr.msra.gmra.mrb[34].mxu0 %v19982_v39 }
 0xfde   :  { %17650 = vmatpush3.msra.mxu0 %v15748_v50  ;;  %17651 = vmatprep.mubr.msk.f32.mxu0 %vm18370_vm1, %v18369_v0 }
 0xfdf   :  { %17654 = vmatprep.subr.mxu0 %v18369_v0 }
 0xfe1   :  { %17622 = vmatmul.mubr.f32.vlgmr.msra.gmra.mrb[32].mxu1 %v15285_v5 }
 0xfe2   :  { %17625 = vmatpush3.msra.mxu1 %v19967_v53  ;;  %17626 = vmatprep.mubr.msk.f32.mxu1 %vm18370_vm1, %v18369_v0 }
 0xfe3   :  { %17629 = vmatprep.subr.mxu1 %v18369_v0 }
 0xfe5   :  { %17652 = vmatmul.mubr.f32.vlgmr.msra.gmra.mrb[34].mxu0 %v15737_v11 }
 0xfe6   :  { %17655 = vmatpush3.msra.mxu0 %v19963_v45  ;;  %17656 = vmatprep.mubr.msk.f32.mxu0 %vm18370_vm1, %v18369_v0 }
 0xfe7   :  { %17659 = vmatprep.subr.mxu0 %v18369_v0 }
 0xfe9   :  { %17627 = vmatmul.mubr.f32.vlgmr.msra.gmra.mrb[32].mxu1 %v15286_v42 }
 0xfea   :  { %17630 = vmatpush3.msra.mxu1 %v15297_v9  ;;  %17631 = vmatprep.mubr.msk.f32.mxu1 %vm18370_vm1, %v18369_v0 }
 0xfeb   :  { %v4112_v25 = vpop.xlane.xlu1 %4111  ;;  %17634 = vmatprep.subr.mxu1 %v18369_v0 }
 0xfec   :  { %18259 = vrcp.f32 %v4112_v25 }
 0xfed   :  { %17657 = vmatmul.mubr.f32.vlgmr.msra.gmra.mrb[34].mxu0 %v15738_v10 }
 0xfee   :  { %17660 = vmatpush3.msra.mxu0 %v15749_v31  ;;  %17661 = vmatprep.mubr.msk.f32.mxu0 %vm18370_vm1, %v18369_v0 }
 0xfef   :  { %v5966_v33 = vpop.xlane.xlu1 %5965  ;;  %v4115_v37 = vpop.xlane.xlu0 %4114  ;;  %17664 = vmatprep.subr.mxu0 %v18369_v0 }
 0xff0   :  { %18261 = vrcp.f32 %v5966_v33 }
 0xff1   :  { %18263 = vrcp.f32 %v4115_v37  ;;  %17632 = vmatmul.mubr.f32.vlgmr.msra.gmra.mrb[32].mxu1 %v19974_v48 }
 0xff2   :  { %17635 = vmatpush3.msra.mxu1 %v19967_v53  ;;  %17636 = vmatprep.mubr.msk.f32.mxu1 %vm18370_vm1, %v18369_v0 }
 0xff3   :  { %v7815_v17 = vpop.xlane.xlu1 %7814  ;;  %v5963_v21 = vpop.xlane.xlu0 %5962 }
 0xff4   :  { %18265 = vrcp.f32 %v7815_v17 }
 0xff5   :  { %18267 = vrcp.f32 %v5963_v21  ;;  %17662 = vmatmul.mubr.f32.vlgmr.msra.gmra.mrb[34].mxu0 %v19982_v39 }
 0xff6   :  { %v18260_v30 = vpop.eup %18259  ;;  %17665 = vmatpush3.msra.mxu0 %v19963_v45  ;;  %17666 = vmatprep.mubr.msk.f32.mxu0 %vm18370_vm1, %v18369_v0 }
 0xff7   :  { %v9664_v29 = vpop.xlane.xlu1 %9663  ;;  %v7812_v52 = vpop.xlane.xlu0 %7811  ;;  %v5026_v12 = vmul.f32 %v18260_v30, %v19155_v61 }
 0xff8   :  { %18269 = vrcp.f32 %v9664_v29 }
 0xff9   :  { %18271 = vrcp.f32 %v7812_v52  ;;  %5030 = vrot.lane.b32.xlu0 %v5026_v12, %s18377_s13  ;;  %17637 = vmatmul.mubr.f32.vlgmr.msra.gmra.mrb[32].mxu1 %v19974_v48 }
 0xffa   :  { %v18262_v49 = vpop.eup %18261 }
 0xffb   :  { %v18264_v3 = vpop.eup %18263  ;;  %v11513_v51 = vpop.xlane.xlu1 %11512  ;;  %v6876_v23 = vmul.f32 %v18262_v49, %v19311_v26 }
 0xffc   :  { %v9661_v60 = vpop.xlane.xlu0 %9660  ;;  %18273 = vrcp.f32 %v11513_v51  ;;  %v5027_v57 = vmul.f32 %v18264_v3, %v19157_v36 }
 0xffd   :  { %18275 = vrcp.f32 %v9661_v60  ;;  %6881 = vrot.lane.b32.xlu0 %v6876_v23, %s18376_s12  ;;  %17667 = vmatmul.mubr.f32.vlgmr.msra.gmra.mrb[34].mxu0 %v19982_v39 }
 0xffe   :  { %v18266_v0 = vpop.eup %18265  ;;  %5032 = vrot.lane.b32.xlu1 %v5027_v57, %s18377_s13 }
 0xfff   :  { %v18268_v61 = vpop.eup %18267  ;;  %v13362_v4 = vpop.xlane.xlu1 %13361  ;;  %v8725_v56 = vmul.f32 %v18266_v0, %v19465_v34 }
0x1000   :  { %v11510_v24 = vpop.xlane.xlu0 %11509  ;;  %18277 = vrcp.f32 %v13362_v4  ;;  %v6875_v45 = vmul.f32 %v18268_v61, %v19309_v19 }
0x1001   :  { %18279 = vrcp.f32 %v11510_v24  ;;  %8730 = vrot.lane.b32.xlu0 %v8725_v56, %s18375_s11 }
0x1002   :  { %v18270_v36 = vpop.eup %18269  ;;  %6879 = vrot.lane.b32.xlu1 %v6875_v45, %s18376_s12 }
0x1003   :  { %v18272_v26 = vpop.eup %18271  ;;  %v10574_v41 = vmul.f32 %v18270_v36, %v19619_v8 }
0x1004   :  { %v13359_v7 = vpop.xlane.xlu0 %13358  ;;  %v8724_v44 = vmul.f32 %v18272_v26, %v19463_v32 }
0x1005   :  { %18281 = vrcp.f32 %v13359_v7  ;;  %10579 = vrot.lane.b32.xlu0 %v10574_v41, %s18374_s10 }
0x1006   :  { %v18274_v53 = vpop.eup %18273  ;;  %8728 = vrot.lane.b32.xlu1 %v8724_v44, %s18375_s11 }
0x1007   :  { %v18276_v34 = vpop.eup %18275  ;;  %v12423_v19 = vmul.f32 %v18274_v53, %v19773_v47 }
0x1008   :  { %v10573_v54 = vmul.f32 %v18276_v34, %v19617_v46 }
0x1009   :  { %12428 = vrot.lane.b32.xlu0 %v12423_v19, %s18373_s9 }
0x100a   :  { %v18278_v2 = vpop.eup %18277  ;;  %10577 = vrot.lane.b32.xlu1 %v10573_v54, %s18374_s10 }
0x100b   :  { %v18280_v16 = vpop.eup %18279  ;;  %v14272_v8 = vmul.f32 %v18278_v2, %v19927_v6 }
0x100c   :  { %v12422_v32 = vmul.f32 %v18280_v16, %v19771_v38 }
0x100d   :  { %14277 = vrot.lane.b32.xlu0 %v14272_v8, %s18372_s8 }
0x100e   :  { %12426 = vrot.lane.b32.xlu1 %v12422_v32, %s18373_s9 }
0x100f   :  { %v18282_v18 = vpop.eup %18281 }
0x1010   :  { %v14271_v48 = vmul.f32 %v18282_v18, %v19925_v28 }
0x1012   :  { %14275 = vrot.lane.b32.xlu1 %v14271_v48, %s18372_s8 }
0x1054   :  { %v15208_v46 = vpop.xlane.xlu0 %15207 }
0x1058   :  { %v15211_v47 = vpop.xlane.xlu1 %15210  ;;  %v2278_v50 = vpop.xlane.xlu0 %2277 }
0x1059   :  { %18283 = vrcp.f32 %v2278_v50 }
0x105c   :  { %v2281_v9 = vpop.xlane.xlu1 %2280 }
0x105d   :  { %18285 = vrcp.f32 %v2281_v9 }
0x105e   :  { %18287 = vrcp.f32 %v15208_v46 }
0x105f   :  { %18289 = vrcp.f32 %v15211_v47 }
0x1063   :  { %v18284_v58 = vpop.eup %18283 }
0x1064   :  { %v3184_v6 = vmul.f32 %v18284_v58, %v19001_v1 }
0x1066   :  { %3186 = vst.msk [vmem:[#allocation7] sm:$0xff] %vm1354_vm2, %v3184_v6 }
0x1067   :  { %v18286_v5 = vpop.eup %18285 }
0x1068   :  { %v3185_v38 = vmul.f32 %v18286_v5, %v19003_v40  ;;  %v18288_v35 = vpop.eup %18287 }
0x1069   :  { %v18290_v15 = vpop.eup %18289 }
0x106a   :  { %3187 = vst.msk [vmem:[#allocation7 + $0x8] sm:$0xff] %vm1354_vm2, %v3185_v38 }
0x106b   :  { %v5031_v28 = vpop.permute.xlu0 %5030 }
0x106c   :  { %5037 = vst.msk [vmem:[#allocation7] sm:$0xff] %vm5036_vm5, %v5031_v28 }
0x106f   :  { %v6882_v20 = vpop.permute.xlu0 %6881 }
0x1070   :  { %v5033_v59 = vpop.permute.xlu1 %5032 }
0x1071   :  { %5038 = vst.msk [vmem:[#allocation7 + $0x8] sm:$0xff] %vm5036_vm5, %v5033_v59 }
0x1072   :  { %6887 = vst.msk [vmem:[#allocation7 + $0x8] sm:$0xff] %vm6885_vm6, %v6882_v20 }
0x1073   :  { %v8731_v22 = vpop.permute.xlu0 %8730 }
0x1074   :  { %v6880_v39 = vpop.permute.xlu1 %6879  ;;  %8736 = vst.msk [vmem:[#allocation7 + $0x8] sm:$0xff] %vm8734_vm7, %v8731_v22 }
0x1075   :  { %6886 = vst.msk [vmem:[#allocation7] sm:$0xff] %vm6885_vm6, %v6880_v39 }
0x1077   :  { %v10580_v1 = vpop.permute.xlu0 %10579 }
0x1078   :  { %v8729_v42 = vpop.permute.xlu1 %8728  ;;  %10585 = vst.msk [vmem:[#allocation7 + $0x8] sm:$0xff] %vm10583_vm8, %v10580_v1 }
0x1079   :  { %8735 = vst.msk [vmem:[#allocation7] sm:$0xff] %vm8734_vm7, %v8729_v42 }
0x107b   :  { %v12429_v40 = vpop.permute.xlu0 %12428 }
0x107c   :  { %v10578_v31 = vpop.permute.xlu1 %10577  ;;  %12434 = vst.msk [vmem:[#allocation7 + $0x8] sm:$0xff] %vm12432_vm9, %v12429_v40 }
0x107d   :  { %10584 = vst.msk [vmem:[#allocation7] sm:$0xff] %vm10583_vm8, %v10578_v31 }
0x107f   :  { %v14278_v55 = vpop.permute.xlu0 %14277 }
0x1080   :  { %v12427_v27 = vpop.permute.xlu1 %12426  ;;  %14283 = vst.msk [vmem:[#allocation7 + $0x8] sm:$0xff] %vm14281_vm10, %v14278_v55 }
0x1081   :  { %12433 = vst.msk [vmem:[#allocation7] sm:$0xff] %vm12432_vm9, %v12427_v27 }
0x1084   :  { %v14276_v11 = vpop.permute.xlu1 %14275 }
0x1085   :  { %14282 = vst.msk [vmem:[#allocation7] sm:$0xff] %vm14281_vm10, %v14276_v11 }
0x10cc   :  { %v15660_v62 = vpop.f32.mrb[32].mxu1 }
0x10cd   :  { %v16120_v10 = vmul.f32 %v18288_v35, %v15660_v62  ;;  %v17638_v43 = vpop.f32.mrb[33].mxu1 }
0x10cf   :  { %16124 = vrot.lane.b32.xlu1 %v16120_v10, %s18371_s1 }
0x10d0   :  { %v16112_v13 = vpop.f32.mrb[34].mxu0 }
0x10d1   :  { %v16121_v63 = vmul.f32 %v18290_v15, %v16112_v13  ;;  %v17668_v14 = vpop.f32.mrb[35].mxu0 }
0x10d3   :  { %16126 = vrot.lane.b32.xlu0 %v16121_v63, %s18371_s1 }
0x1141   :  { %v16125_v25 = vpop.permute.xlu1 %16124 }
0x1142   :  { %16131 = vst.msk [vmem:[#allocation7] sm:$0xff] %vm16130_vm11, %v16125_v25 }
0x1145   :  { %v16127_v33 = vpop.permute.xlu0 %16126 }
0x1146   :  { %16132 = vst.msk [vmem:[#allocation7 + $0x8] sm:$0xff] %vm16130_vm11, %v16127_v33 }
0x1147   :  { %18346 = shalt.err (!%p18343_p6)
}
0x1148   :  { %s18347_s21 = scalar_lea.hbm %s20072_s2, 256 }
0x1149   :  { %p18348_p7 = scmp.ne.s32.totalorder %s20072_s2, %s18347_s21  ;;  %p18351_p8 = scmp.lt.u32.totalorder %s18347_s21, %s20072_s2 }
0x114b   :  { %p18353_p9 = pnand %p18351_p8, %p18348_p7 }
0x114d   :  { %18356 = shalt.err (!%p18353_p9)
}
0x114e   :  { %16144 = dma.vmem_to_hbm [thread:$0]  %s16139_s15, 256, %s20072_s2, [#allocation4], %s18364_s19, %s18364_s19, %s18365_s20  }
0x114f   :  { %18361 = dma.done.wait [#allocation4], 256  }
0x1150   :  { %18362 = vsyncadd [#allocation4], 4294967040 }
0x1151   :  { %16148 = vsyncpa [#allocation3], 1 }
0x1152   :  { %16149 = vsyncpa [#allocation6], 1 }
0x1153   :  { %16150 = vsyncpa [#allocation4], 1 }

</bundles_post_ra>
